<compile_context>
chip_gen: v5e
topology: v5e:2x2
jax: 0.10.0
libtpu: 0.0.40
codegen_flags: <defaults>
</compile_context>

<pallas_src>
import jax
import jax.numpy as jnp
from jax import lax
from jax.experimental import pallas as pl
from jax.experimental.pallas import tpu as pltpu


# Left guard columns inside the padded VMEM strips: interior stores start at a
# sublane-aligned column; the logical 1-pixel left pad lives at column _LP - 1.
_LP = 8


# ----------------------------- Pallas kernel ------------------------------- #

def _decoder_block_kernel(xm_ref, xt_ref, xb_ref, skm_ref, skt_ref, skb_ref,
                          w1_ref, sb1_ref, w2_ref, sb2_ref,
                          o_ref, xpad_ref, ypad_ref):
    """One (batch, row-tile) step of the fused decoder block.

    xm_ref : (1, TH/2, W, Cx)  x at half height (width already doubled)
    xt_ref : (1, 1,    W, Cx)  x row feeding the 2-row top halo
    xb_ref : (1, 1,    W, Cx)  x row feeding the 2-row bottom halo
    skm_ref: (1, TH,   W, Cs)  skip rows of this tile
    skt_ref: (1, 2,    W, Cs)  skip rows of the top halo
    skb_ref: (1, 2,    W, Cs)  skip rows of the bottom halo
    w1_ref : (9, Cin, Co)      conv1 weights, tap-major (tap = 3*ky + kx)
    sb1_ref: (2, Co)           folded BN1 (row 0 = scale, row 1 = bias), f32
    w2_ref : (9, Co, Co)       conv2 weights, tap-major
    sb2_ref: (2, Co)
    o_ref  : (1, TH, W, Co)
    xpad_ref: VMEM (TH+4, _LP+W+1, Cin) padded concat([x_up, skip]) strip
    ypad_ref: VMEM (TH+2, _LP+W+1, Co)  padded conv1 output strip
    """
    t = pl.program_id(1)
    last_t = pl.num_programs(1) - 1
    _, TH, W, Co = o_ref.shape
    Cx = xm_ref.shape[-1]
    Cin = xpad_ref.shape[-1]
    Wp = xpad_ref.shape[1]

    def conv3x3_bn_relu(src_ref, w_ref, sb_ref, out_rows):
        # 9 accumulating per-tap MXU matmuls on an explicit 2-D LHS; no
        # (rows, W, 9*C) im2col patch buffer is ever materialized.
        c_in = src_ref.shape[-1]
        c_out = w_ref.shape[-1]
        m = out_rows * W
        acc = jnp.zeros((m, c_out), jnp.float32)
        for ky in range(3):
            for kx in range(3):
                win = src_ref[ky:ky + out_rows,
                              (_LP - 1 + kx):(_LP - 1 + kx) + W, :]
                acc = acc + lax.dot_general(
                    win.reshape(m, c_in), w_ref[3 * ky + kx],
                    dimension_numbers=(((1,), (0,)), ((), ())),
                    preferred_element_type=jnp.float32)
        y = jnp.maximum(acc * sb_ref[0:1, :] + sb_ref[1:2, :], 0.0)
        return y.reshape(out_rows, W, c_out)

    # -- guard columns: the only zero columns the 3x3 windows actually read. -
    xz = jnp.zeros((TH + 4, 1, Cin), xpad_ref.dtype)
    xpad_ref[:, _LP - 1:_LP, :] = xz
    xpad_ref[:, _LP + W:_LP + W + 1, :] = xz
    yz = jnp.zeros((TH + 2, 1, Co), ypad_ref.dtype)
    ypad_ref[:, _LP - 1:_LP, :] = yz
    ypad_ref[:, _LP + W:_LP + W + 1, :] = yz

    # -- stage 0: build the (TH+4)-row padded input strip in VMEM. -----------
    # Nearest 2x row-upsample of x is folded here (each half-height row is
    # written twice); the channel concat is two channel-range stores.
    xpad_ref[2:TH + 2, _LP:_LP + W, 0:Cx] = jnp.repeat(xm_ref[0], 2, axis=0)
    xpad_ref[2:TH + 2, _LP:_LP + W, Cx:Cin] = skm_ref[0]
    xpad_ref[0:2, _LP:_LP + W, 0:Cx] = jnp.broadcast_to(xt_ref[0], (2, W, Cx))
    xpad_ref[0:2, _LP:_LP + W, Cx:Cin] = skt_ref[0]
    xpad_ref[TH + 2:TH + 4, _LP:_LP + W, 0:Cx] = jnp.broadcast_to(
        xb_ref[0], (2, W, Cx))
    xpad_ref[TH + 2:TH + 4, _LP:_LP + W, Cx:Cin] = skb_ref[0]

    @pl.when(t == 0)
    def _():  # top image boundary: halo rows are SAME-padding zeros
        xpad_ref[0:2, :, :] = jnp.zeros((2, Wp, Cin), xpad_ref.dtype)

    @pl.when(t == last_t)
    def _():  # bottom image boundary
        xpad_ref[TH + 2:TH + 4, :, :] = jnp.zeros((2, Wp, Cin), xpad_ref.dtype)

    # -- stage 1: conv1 + BN + ReLU on TH+2 rows (1-row halo for conv2). -----
    y1 = conv3x3_bn_relu(xpad_ref, w1_ref, sb1_ref, TH + 2)
    ypad_ref[:, _LP:_LP + W, :] = y1.astype(ypad_ref.dtype)

    @pl.when(t == 0)
    def _():  # conv2's zero pad row above the image
        ypad_ref[0:1, :, :] = jnp.zeros((1, Wp, Co), ypad_ref.dtype)

    @pl.when(t == last_t)
    def _():  # conv2's zero pad row below the image
        ypad_ref[TH + 1:TH + 2, :, :] = jnp.zeros((1, Wp, Co), ypad_ref.dtype)

    # -- stage 2: conv2 + BN + ReLU -> output tile. ---------------------------
    y2 = conv3x3_bn_relu(ypad_ref, w2_ref, sb2_ref, TH)
    o_ref[0] = y2.astype(o_ref.dtype)


# ----------------------------- Wrapper / tiling ----------------------------- #

def _vmem_capacity_bytes():
    default = 64 * 1024 * 1024  # smallest across v5e/v6e/v7x -> always safe
    try:
        info_fn = getattr(pltpu, "get_tpu_info", None)
        if info_fn is None:
            return default
        cap = getattr(info_fn(), "vmem_capacity_bytes", None)
        return int(cap) if cap else default
    except Exception:
        return default


def _pick_tile_rows(H, W, Cx, Cs, Co, act_bytes, budget_bytes):
    """Largest even row-tile TH dividing H whose working set fits the budget."""
    Cin = Cx + Cs
    Wp = _LP + W + 1
    best = 2
    for th in range(2, H + 1, 2):
        if H % th:
            continue
        scratch = ((th + 4) * Wp * Cin + (th + 2) * Wp * Co) * act_bytes
        io = 2 * act_bytes * ((th // 2 + 2) * W * Cx + (th + 4) * W * Cs)
        io += 2 * 4 * th * W * Co                       # f32 output, dbl-buffered
        wts = 2 * (9 * (Cin + Co) * Co * act_bytes + 4 * 4 * Co)
        live = 4 * (th + 2) * W * (Cin + 2 * Co)        # matmul window + f32 acc
        if scratch + io + wts + live <= budget_bytes:
            best = th
    return best


def fused_decoder_block(x_half, skip, w1, sb1, w2, sb2, *, tile_rows=None):
    """Fused (2x upsample + concat + conv/BN/ReLU x2) on NHWC tensors.

    x_half: (B, H/2, W, Cx)  x with width already doubled, height still halved
    skip:   (B, H,   W, Cs)
    w1:     (9, Cx+Cs, Co) tap-major conv1 weights; w2: (9, Co, Co)
    sb1/2:  (2, Co) folded BN scale/bias (f32)
    """
    B, Hh, W, Cx = x_half.shape
    Bs, H, Ws, Cs = skip.shape
    assert (Bs, Ws) == (B, W) and H == 2 * Hh, (x_half.shape, skip.shape)
    assert W % 8 == 0, "width must be a multiple of 8 (sublane tile)"
    Cin = Cx + Cs
    Co = w1.shape[-1]
    assert w1.shape == (9, Cin, Co) and w2.shape == (9, Co, Co)
    act_dtype = x_half.dtype
    act_bytes = jnp.dtype(act_dtype).itemsize

    cap = _vmem_capacity_bytes()
    if tile_rows is None:
        tile_rows = _pick_tile_rows(H, W, Cx, Cs, Co, act_bytes, int(cap * 0.55))
    TH = int(tile_rows)
    assert H % TH == 0 and TH % 2 == 0, (H, TH)
    HT = TH // 2
    T = H // TH
    Wp = _LP + W + 1

    # Halo index maps (clamped at the image boundary; the kernel re-zeros the
    # boundary halo rows under pl.when, so the clamped rows are never used).
    top_halo = lambda b, t: (b, jnp.maximum(t * HT - 1, 0), 0, 0)
    bot_halo = lambda b, t: (b, jnp.minimum((t + 1) * HT, Hh - 1), 0, 0)

    return pl.pallas_call(
        _decoder_block_kernel,
        out_shape=jax.ShapeDtypeStruct((B, H, W, Co), jnp.float32),
        grid_spec=pltpu.PrefetchScalarGridSpec(
            num_scalar_prefetch=0,
            grid=(B, T),
            in_specs=[
                pl.BlockSpec((1, HT, W, Cx), lambda b, t: (b, t, 0, 0)),
                pl.BlockSpec((1, 1, W, Cx), top_halo),
                pl.BlockSpec((1, 1, W, Cx), bot_halo),
                pl.BlockSpec((1, TH, W, Cs), lambda b, t: (b, t, 0, 0)),
                pl.BlockSpec((1, 2, W, Cs), top_halo),
                pl.BlockSpec((1, 2, W, Cs), bot_halo),
                pl.BlockSpec((9, Cin, Co), lambda b, t: (0, 0, 0)),
                pl.BlockSpec((2, Co), lambda b, t: (0, 0)),
                pl.BlockSpec((9, Co, Co), lambda b, t: (0, 0, 0)),
                pl.BlockSpec((2, Co), lambda b, t: (0, 0)),
            ],
            out_specs=pl.BlockSpec((1, TH, W, Co), lambda b, t: (b, t, 0, 0)),
            scratch_shapes=[
                pltpu.VMEM((TH + 4, Wp, Cin), act_dtype),
                pltpu.VMEM((TH + 2, Wp, Co), act_dtype),
            ],
        ),
        compiler_params=pltpu.CompilerParams(
            dimension_semantics=("parallel", "parallel"),
            vmem_limit_bytes=int(cap * 0.75)),
    )(x_half, x_half, x_half, skip, skip, skip, w1, sb1, w2, sb2)


# ----------------------------- Module wrapper ------------------------------ #

def init_decoder_block_params(key, in_channels, skip_channels, out_channels,
                              eps=1e-5):
    """Deterministic synthetic parameters (conv weights + folded eval-mode BN)."""
    conv_in = in_channels + skip_channels
    ks = jax.random.split(key, 4)

    def conv_w(k, cin, cout):
        std = (2.0 / (cin * 9)) ** 0.5                  # HWIO, kaiming-ish
        return std * jax.random.normal(k, (3, 3, cin, cout), jnp.float32)

    def bn_fold(k, c):
        kg, kb, km, kv = jax.random.split(k, 4)
        gamma = 1.0 + 0.1 * jax.random.normal(kg, (c,), jnp.float32)
        beta = 0.1 * jax.random.normal(kb, (c,), jnp.float32)
        mean = 0.1 * jax.random.normal(km, (c,), jnp.float32)
        var = jnp.abs(jax.random.normal(kv, (c,), jnp.float32)) + 0.5
        scale = gamma / jnp.sqrt(var + eps)
        bias = beta - mean * scale
        return scale.reshape(1, c), bias.reshape(1, c)

    w1 = conv_w(ks[0], conv_in, out_channels)
    scale1, bias1 = bn_fold(ks[1], out_channels)
    w2 = conv_w(ks[2], out_channels, out_channels)
    scale2, bias2 = bn_fold(ks[3], out_channels)
    return dict(w1=w1, scale1=scale1, bias1=bias1,
                w2=w2, scale2=scale2, bias2=bias2)


def decoder_block_forward(params, x_nchw, skip_nchw, *,
                          act_dtype=jnp.bfloat16, tile_rows=None):
    """NCHW in / NCHW out, matching DecoderBlock.forward (eval mode, dropout=0)."""
    # NCHW -> NHWC so channels ride the 128-lane axis inside the kernel.
    x = jnp.transpose(x_nchw, (0, 2, 3, 1))
    skip = jnp.transpose(skip_nchw, (0, 2, 3, 1))
    # Width half of the nearest 2x upsample stays in the wrapper (done at half
    # height); the height half is folded into the kernel.
    # TODO(synk): fold the width repeat in-kernel too (sublane interleave store).
    x_half = jnp.repeat(x, 2, axis=2).astype(act_dtype)       # (B, H/2, W, Cx)
    skip = skip.astype(act_dtype)

    cin = x.shape[-1] + skip.shape[-1]
    co = params["w1"].shape[-1]
    w1 = params["w1"].reshape(9, cin, co).astype(act_dtype)   # tap-major (ky, kx)
    w2 = params["w2"].reshape(9, co, co).astype(act_dtype)
    sb1 = jnp.concatenate([params["scale1"], params["bias1"]], axis=0)  # (2, Co)
    sb2 = jnp.concatenate([params["scale2"], params["bias2"]], axis=0)

    out = fused_decoder_block(x_half, skip, w1, sb1, w2, sb2, tile_rows=tile_rows)
    return jnp.transpose(out, (0, 3, 1, 2))                   # back to NCHW


# ----------------------------- Pure-JAX reference -------------------------- #

def _ref_conv_bn_relu(x_nhwc, w_hwio, scale, bias):
    y = lax.conv_general_dilated(
        x_nhwc, w_hwio, window_strides=(1, 1), padding="SAME",
        dimension_numbers=("NHWC", "HWIO", "NHWC"),
        precision=lax.Precision.HIGHEST)
    y = y * scale[0] + bias[0]
    return jnp.maximum(y, 0.0)


def decoder_block_reference(params, x_nchw, skip_nchw):
    x = jnp.repeat(jnp.repeat(x_nchw, 2, axis=2), 2, axis=3)
    x = jnp.concatenate([x, skip_nchw], axis=1)
    x = jnp.transpose(x, (0, 2, 3, 1))
    x = _ref_conv_bn_relu(x, params["w1"], params["scale1"], params["bias1"])
    x = _ref_conv_bn_relu(x, params["w2"], params["scale2"], params["bias2"])
    return jnp.transpose(x, (0, 3, 1, 2))


# ----------------------------------- Main ----------------------------------- #

if __name__ == "__main__":
    B = 2
    in_channels, skip_channels, out_channels = 4, 4, 8
    H_in = W_in = 8   # decoder input spatial; skip / output are 16x16

    key = jax.random.PRNGKey(0)
    kx, ks, kp = jax.random.split(key, 3)
    x = jax.random.normal(kx, (B, in_channels, H_in, W_in), jnp.float32)
    skip = jax.random.normal(ks, (B, skip_channels, 2 * H_in, 2 * W_in),
                             jnp.float32)
    params = init_decoder_block_params(kp, in_channels, skip_channels,
                                       out_channels)

    ref = jax.block_until_ready(decoder_block_reference(params, x, skip))

    # f32 path, forced to 2 row-tiles: exercises the halo / boundary logic.
    out_f32 = jax.block_until_ready(
        decoder_block_forward(params, x, skip, act_dtype=jnp.float32,
                              tile_rows=8))
    assert out_f32.shape == (B, out_channels, 2 * H_in, 2 * W_in), out_f32.shape
    assert jnp.allclose(out_f32, ref, atol=1e-3, rtol=1e-3), "f32 path mismatch"

    # bf16 default path, auto tile selection (single tile at this size).
    out_bf16 = jax.block_until_ready(decoder_block_forward(params, x, skip))
    assert out_bf16.shape == ref.shape, out_bf16.shape
    assert jnp.allclose(out_bf16, ref, atol=6e-2, rtol=6e-2), "bf16 path mismatch"

    print("KERNEL_OK")
</pallas_src>

<mosaic_0001>
module attributes {stable_mosaic.version = 11 : i64} {
  func.func @_decoder_block_kernel(%arg0: i32, %arg1: i32, %arg2: memref<1x4x16x4xf32, #tpu.memory_space<vmem>>, %arg3: memref<1x1x16x4xf32, #tpu.memory_space<vmem>>, %arg4: memref<1x1x16x4xf32, #tpu.memory_space<vmem>>, %arg5: memref<1x8x16x4xf32, #tpu.memory_space<vmem>>, %arg6: memref<1x2x16x4xf32, #tpu.memory_space<vmem>>, %arg7: memref<1x2x16x4xf32, #tpu.memory_space<vmem>>, %arg8: memref<9x8x8xf32, #tpu.memory_space<vmem>>, %arg9: memref<2x8xf32, #tpu.memory_space<vmem>>, %arg10: memref<9x8x8xf32, #tpu.memory_space<vmem>>, %arg11: memref<2x8xf32, #tpu.memory_space<vmem>>, %arg12: memref<1x8x16x8xf32, #tpu.memory_space<vmem>>, %arg13: memref<12x25x8xf32, #tpu.memory_space<vmem>>, %arg14: memref<10x25x8xf32, #tpu.memory_space<vmem>>) attributes {dimension_semantics = [#tpu.dimension_semantics<parallel>, #tpu.dimension_semantics<parallel>], iteration_bounds = array<i64: 2, 2>, scalar_prefetch = 0 : i64, scratch_operands = 2 : i64, tpu.core_type = #tpu.core_type<tc>, window_params = [{transform_indices = @transform_0, window_bounds = array<i64: 1, 4, 16, 4>}, {transform_indices = @transform_1, window_bounds = array<i64: 1, 1, 16, 4>}, {transform_indices = @transform_2, window_bounds = array<i64: 1, 1, 16, 4>}, {transform_indices = @transform_3, window_bounds = array<i64: 1, 8, 16, 4>}, {transform_indices = @transform_4, window_bounds = array<i64: 1, 2, 16, 4>}, {transform_indices = @transform_5, window_bounds = array<i64: 1, 2, 16, 4>}, {pipeline_mode = #tpu.pipeline_mode<synchronous>, transform_indices = @transform_6, window_bounds = array<i64: 9, 8, 8>}, {pipeline_mode = #tpu.pipeline_mode<synchronous>, transform_indices = @transform_7, window_bounds = array<i64: 2, 8>}, {pipeline_mode = #tpu.pipeline_mode<synchronous>, transform_indices = @transform_8, window_bounds = array<i64: 9, 8, 8>}, {pipeline_mode = #tpu.pipeline_mode<synchronous>, transform_indices = @transform_9, window_bounds = array<i64: 2, 8>}, {transform_indices = @transform_10, window_bounds = array<i64: 1, 8, 16, 8>}]} {
    %cst = arith.constant 0.000000e+00 : f32
    %0 = vector.broadcast %cst : f32 to vector<12x1x8xf32>
    %c0 = arith.constant 0 : index
    %c7 = arith.constant 7 : index
    %c0_0 = arith.constant 0 : index
    %1 = vector.load %arg13[%c0, %c7, %c0_0] : memref<12x25x8xf32, #tpu.memory_space<vmem>>, vector<12x1x8xf32>
    tpu.vector_store %arg13[%c0, %c7, %c0_0], %0 {strides = array<i32>} : memref<12x25x8xf32, #tpu.memory_space<vmem>>, vector<12x1x8xf32>,
    %c0_1 = arith.constant 0 : index
    %c24 = arith.constant 24 : index
    %c0_2 = arith.constant 0 : index
    %2 = vector.load %arg13[%c0_1, %c24, %c0_2] : memref<12x25x8xf32, #tpu.memory_space<vmem>>, vector<12x1x8xf32>
    tpu.vector_store %arg13[%c0_1, %c24, %c0_2], %0 {strides = array<i32>} : memref<12x25x8xf32, #tpu.memory_space<vmem>>, vector<12x1x8xf32>,
    %cst_3 = arith.constant 0.000000e+00 : f32
    %3 = vector.broadcast %cst_3 : f32 to vector<10x1x8xf32>
    %c0_4 = arith.constant 0 : index
    %c7_5 = arith.constant 7 : index
    %c0_6 = arith.constant 0 : index
    %4 = vector.load %arg14[%c0_4, %c7_5, %c0_6] : memref<10x25x8xf32, #tpu.memory_space<vmem>>, vector<10x1x8xf32>
    tpu.vector_store %arg14[%c0_4, %c7_5, %c0_6], %3 {strides = array<i32>} : memref<10x25x8xf32, #tpu.memory_space<vmem>>, vector<10x1x8xf32>,
    %c0_7 = arith.constant 0 : index
    %c24_8 = arith.constant 24 : index
    %c0_9 = arith.constant 0 : index
    %5 = vector.load %arg14[%c0_7, %c24_8, %c0_9] : memref<10x25x8xf32, #tpu.memory_space<vmem>>, vector<10x1x8xf32>
    tpu.vector_store %arg14[%c0_7, %c24_8, %c0_9], %3 {strides = array<i32>} : memref<10x25x8xf32, #tpu.memory_space<vmem>>, vector<10x1x8xf32>,
    %c0_10 = arith.constant 0 : index
    %c0_11 = arith.constant 0 : index
    %c0_12 = arith.constant 0 : index
    %c0_13 = arith.constant 0 : index
    %6 = vector.load %arg2[%c0_10, %c0_11, %c0_12, %c0_13] : memref<1x4x16x4xf32, #tpu.memory_space<vmem>>, vector<1x4x16x4xf32>
    %7 = vector.shape_cast %6 : vector<1x4x16x4xf32> to vector<4x16x4xf32>
    %8 = vector.shape_cast %7 : vector<4x16x4xf32> to vector<4x1x16x4xf32>
    %9 = vector.broadcast %8 : vector<4x1x16x4xf32> to vector<4x2x16x4xf32>
    %10 = vector.shape_cast %9 : vector<4x2x16x4xf32> to vector<8x16x4xf32>
    %c2 = arith.constant 2 : index
    %c8 = arith.constant 8 : index
    %c0_14 = arith.constant 0 : index
    %11 = vector.load %arg13[%c2, %c8, %c0_14] : memref<12x25x8xf32, #tpu.memory_space<vmem>>, vector<8x16x4xf32>
    tpu.vector_store %arg13[%c2, %c8, %c0_14], %10 {strides = array<i32>} : memref<12x25x8xf32, #tpu.memory_space<vmem>>, vector<8x16x4xf32>,
    %c0_15 = arith.constant 0 : index
    %c0_16 = arith.constant 0 : index
    %c0_17 = arith.constant 0 : index
    %c0_18 = arith.constant 0 : index
    %12 = vector.load %arg5[%c0_15, %c0_16, %c0_17, %c0_18] : memref<1x8x16x4xf32, #tpu.memory_space<vmem>>, vector<1x8x16x4xf32>
    %13 = vector.shape_cast %12 : vector<1x8x16x4xf32> to vector<8x16x4xf32>
    %c2_19 = arith.constant 2 : index
    %c8_20 = arith.constant 8 : index
    %c4 = arith.constant 4 : index
    %14 = vector.load %arg13[%c2_19, %c8_20, %c4] : memref<12x25x8xf32, #tpu.memory_space<vmem>>, vector<8x16x4xf32>
    tpu.vector_store %arg13[%c2_19, %c8_20, %c4], %13 {strides = array<i32>} : memref<12x25x8xf32, #tpu.memory_space<vmem>>, vector<8x16x4xf32>,
    %c0_21 = arith.constant 0 : index
    %c0_22 = arith.constant 0 : index
    %c0_23 = arith.constant 0 : index
    %c0_24 = arith.constant 0 : index
    %15 = vector.load %arg3[%c0_21, %c0_22, %c0_23, %c0_24] : memref<1x1x16x4xf32, #tpu.memory_space<vmem>>, vector<1x1x16x4xf32>
    %16 = vector.shape_cast %15 : vector<1x1x16x4xf32> to vector<1x16x4xf32>
    %17 = vector.shape_cast %16 : vector<1x16x4xf32> to vector<1x16x4xf32>
    %18 = vector.broadcast %17 : vector<1x16x4xf32> to vector<2x16x4xf32>
    %c0_25 = arith.constant 0 : index
    %c8_26 = arith.constant 8 : index
    %c0_27 = arith.constant 0 : index
    %19 = vector.load %arg13[%c0_25, %c8_26, %c0_27] : memref<12x25x8xf32, #tpu.memory_space<vmem>>, vector<2x16x4xf32>
    tpu.vector_store %arg13[%c0_25, %c8_26, %c0_27], %18 {strides = array<i32>} : memref<12x25x8xf32, #tpu.memory_space<vmem>>, vector<2x16x4xf32>,
    %c0_28 = arith.constant 0 : index
    %c0_29 = arith.constant 0 : index
    %c0_30 = arith.constant 0 : index
    %c0_31 = arith.constant 0 : index
    %20 = vector.load %arg6[%c0_28, %c0_29, %c0_30, %c0_31] : memref<1x2x16x4xf32, #tpu.memory_space<vmem>>, vector<1x2x16x4xf32>
    %21 = vector.shape_cast %20 : vector<1x2x16x4xf32> to vector<2x16x4xf32>
    %c0_32 = arith.constant 0 : index
    %c8_33 = arith.constant 8 : index
    %c4_34 = arith.constant 4 : index
    %22 = vector.load %arg13[%c0_32, %c8_33, %c4_34] : memref<12x25x8xf32, #tpu.memory_space<vmem>>, vector<2x16x4xf32>
    tpu.vector_store %arg13[%c0_32, %c8_33, %c4_34], %21 {strides = array<i32>} : memref<12x25x8xf32, #tpu.memory_space<vmem>>, vector<2x16x4xf32>,
    %c0_35 = arith.constant 0 : index
    %c0_36 = arith.constant 0 : index
    %c0_37 = arith.constant 0 : index
    %c0_38 = arith.constant 0 : index
    %23 = vector.load %arg4[%c0_35, %c0_36, %c0_37, %c0_38] : memref<1x1x16x4xf32, #tpu.memory_space<vmem>>, vector<1x1x16x4xf32>
    %24 = vector.shape_cast %23 : vector<1x1x16x4xf32> to vector<1x16x4xf32>
    %25 = vector.shape_cast %24 : vector<1x16x4xf32> to vector<1x16x4xf32>
    %26 = vector.broadcast %25 : vector<1x16x4xf32> to vector<2x16x4xf32>
    %c10 = arith.constant 10 : index
    %c8_39 = arith.constant 8 : index
    %c0_40 = arith.constant 0 : index
    %27 = vector.load %arg13[%c10, %c8_39, %c0_40] : memref<12x25x8xf32, #tpu.memory_space<vmem>>, vector<2x16x4xf32>
    tpu.vector_store %arg13[%c10, %c8_39, %c0_40], %26 {strides = array<i32>} : memref<12x25x8xf32, #tpu.memory_space<vmem>>, vector<2x16x4xf32>,
    %c0_41 = arith.constant 0 : index
    %c0_42 = arith.constant 0 : index
    %c0_43 = arith.constant 0 : index
    %c0_44 = arith.constant 0 : index
    %28 = vector.load %arg7[%c0_41, %c0_42, %c0_43, %c0_44] : memref<1x2x16x4xf32, #tpu.memory_space<vmem>>, vector<1x2x16x4xf32>
    %29 = vector.shape_cast %28 : vector<1x2x16x4xf32> to vector<2x16x4xf32>
    %c10_45 = arith.constant 10 : index
    %c8_46 = arith.constant 8 : index
    %c4_47 = arith.constant 4 : index
    %30 = vector.load %arg13[%c10_45, %c8_46, %c4_47] : memref<12x25x8xf32, #tpu.memory_space<vmem>>, vector<2x16x4xf32>
    tpu.vector_store %arg13[%c10_45, %c8_46, %c4_47], %29 {strides = array<i32>} : memref<12x25x8xf32, #tpu.memory_space<vmem>>, vector<2x16x4xf32>,
    %c0_i32 = arith.constant 0 : i32
    %31 = arith.cmpi eq, %arg1, %c0_i32 : i32
    %32 = arith.extui %31 : i1 to i32
    %c0_i32_48 = arith.constant 0 : i32
    %33 = arith.cmpi ne, %32, %c0_i32_48 : i32
    scf.if %33 {
      %cst_194 = arith.constant 0.000000e+00 : f32
      %175 = vector.broadcast %cst_194 : f32 to vector<2x25x8xf32>
      %c0_195 = arith.constant 0 : index
      %c0_196 = arith.constant 0 : index
      %c0_197 = arith.constant 0 : index
      %176 = vector.load %arg13[%c0_195, %c0_196, %c0_197] : memref<12x25x8xf32, #tpu.memory_space<vmem>>, vector<2x25x8xf32>
      tpu.vector_store %arg13[%c0_195, %c0_196, %c0_197], %175 {strides = array<i32>} : memref<12x25x8xf32, #tpu.memory_space<vmem>>, vector<2x25x8xf32>,
    } else {
    }
    %c1_i32 = arith.constant 1 : i32
    %34 = arith.cmpi eq, %arg1, %c1_i32 : i32
    %35 = arith.extui %34 : i1 to i32
    %c0_i32_49 = arith.constant 0 : i32
    %36 = arith.cmpi ne, %35, %c0_i32_49 : i32
    scf.if %36 {
      %cst_194 = arith.constant 0.000000e+00 : f32
      %175 = vector.broadcast %cst_194 : f32 to vector<2x25x8xf32>
      %c10_195 = arith.constant 10 : index
      %c0_196 = arith.constant 0 : index
      %c0_197 = arith.constant 0 : index
      %176 = vector.load %arg13[%c10_195, %c0_196, %c0_197] : memref<12x25x8xf32, #tpu.memory_space<vmem>>, vector<2x25x8xf32>
      tpu.vector_store %arg13[%c10_195, %c0_196, %c0_197], %175 {strides = array<i32>} : memref<12x25x8xf32, #tpu.memory_space<vmem>>, vector<2x25x8xf32>,
    } else {
    }
    %cst_50 = arith.constant 0.000000e+00 : f32
    %37 = vector.broadcast %cst_50 : f32 to vector<160x8xf32>
    %c0_51 = arith.constant 0 : index
    %c7_52 = arith.constant 7 : index
    %c0_53 = arith.constant 0 : index
    %38 = vector.load %arg13[%c0_51, %c7_52, %c0_53] : memref<12x25x8xf32, #tpu.memory_space<vmem>>, vector<10x16x8xf32>
    %39 = vector.shape_cast %38 : vector<10x16x8xf32> to vector<160x8xf32>
    %c0_54 = arith.constant 0 : index
    %c0_55 = arith.constant 0 : index
    %c0_56 = arith.constant 0 : index
    %40 = vector.load %arg8[%c0_54, %c0_55, %c0_56] : memref<9x8x8xf32, #tpu.memory_space<vmem>>, vector<1x8x8xf32>
    %41 = vector.shape_cast %40 : vector<1x8x8xf32> to vector<8x8xf32>
    %cst_57 = arith.constant dense<0.000000e+00> : vector<160x8xf32>
    %42 = tpu.matmul %39, %41, %cst_57 {dimension_numbers = #tpu.dot_dimension_numbers<[1], [0], [0], [1], [0, 0, 1, 1], [], []>} : vector<160x8xf32>, vector<8x8xf32>, vector<160x8xf32> -> vector<160x8xf32>
    %43 = arith.addf %37, %42 : vector<160x8xf32>
    %c0_58 = arith.constant 0 : index
    %c8_59 = arith.constant 8 : index
    %c0_60 = arith.constant 0 : index
    %44 = vector.load %arg13[%c0_58, %c8_59, %c0_60] : memref<12x25x8xf32, #tpu.memory_space<vmem>>, vector<10x16x8xf32>
    %45 = vector.shape_cast %44 : vector<10x16x8xf32> to vector<160x8xf32>
    %c1 = arith.constant 1 : index
    %c0_61 = arith.constant 0 : index
    %c0_62 = arith.constant 0 : index
    %46 = vector.load %arg8[%c1, %c0_61, %c0_62] : memref<9x8x8xf32, #tpu.memory_space<vmem>>, vector<1x8x8xf32>
    %47 = vector.shape_cast %46 : vector<1x8x8xf32> to vector<8x8xf32>
    %cst_63 = arith.constant dense<0.000000e+00> : vector<160x8xf32>
    %48 = tpu.matmul %45, %47, %cst_63 {dimension_numbers = #tpu.dot_dimension_numbers<[1], [0], [0], [1], [0, 0, 1, 1], [], []>} : vector<160x8xf32>, vector<8x8xf32>, vector<160x8xf32> -> vector<160x8xf32>
    %49 = arith.addf %43, %48 : vector<160x8xf32>
    %c0_64 = arith.constant 0 : index
    %c9 = arith.constant 9 : index
    %c0_65 = arith.constant 0 : index
    %50 = vector.load %arg13[%c0_64, %c9, %c0_65] : memref<12x25x8xf32, #tpu.memory_space<vmem>>, vector<10x16x8xf32>
    %51 = vector.shape_cast %50 : vector<10x16x8xf32> to vector<160x8xf32>
    %c2_66 = arith.constant 2 : index
    %c0_67 = arith.constant 0 : index
    %c0_68 = arith.constant 0 : index
    %52 = vector.load %arg8[%c2_66, %c0_67, %c0_68] : memref<9x8x8xf32, #tpu.memory_space<vmem>>, vector<1x8x8xf32>
    %53 = vector.shape_cast %52 : vector<1x8x8xf32> to vector<8x8xf32>
    %cst_69 = arith.constant dense<0.000000e+00> : vector<160x8xf32>
    %54 = tpu.matmul %51, %53, %cst_69 {dimension_numbers = #tpu.dot_dimension_numbers<[1], [0], [0], [1], [0, 0, 1, 1], [], []>} : vector<160x8xf32>, vector<8x8xf32>, vector<160x8xf32> -> vector<160x8xf32>
    %55 = arith.addf %49, %54 : vector<160x8xf32>
    %c1_70 = arith.constant 1 : index
    %c7_71 = arith.constant 7 : index
    %c0_72 = arith.constant 0 : index
    %56 = vector.load %arg13[%c1_70, %c7_71, %c0_72] : memref<12x25x8xf32, #tpu.memory_space<vmem>>, vector<10x16x8xf32>
    %57 = vector.shape_cast %56 : vector<10x16x8xf32> to vector<160x8xf32>
    %c3 = arith.constant 3 : index
    %c0_73 = arith.constant 0 : index
    %c0_74 = arith.constant 0 : index
    %58 = vector.load %arg8[%c3, %c0_73, %c0_74] : memref<9x8x8xf32, #tpu.memory_space<vmem>>, vector<1x8x8xf32>
    %59 = vector.shape_cast %58 : vector<1x8x8xf32> to vector<8x8xf32>
    %cst_75 = arith.constant dense<0.000000e+00> : vector<160x8xf32>
    %60 = tpu.matmul %57, %59, %cst_75 {dimension_numbers = #tpu.dot_dimension_numbers<[1], [0], [0], [1], [0, 0, 1, 1], [], []>} : vector<160x8xf32>, vector<8x8xf32>, vector<160x8xf32> -> vector<160x8xf32>
    %61 = arith.addf %55, %60 : vector<160x8xf32>
    %c1_76 = arith.constant 1 : index
    %c8_77 = arith.constant 8 : index
    %c0_78 = arith.constant 0 : index
    %62 = vector.load %arg13[%c1_76, %c8_77, %c0_78] : memref<12x25x8xf32, #tpu.memory_space<vmem>>, vector<10x16x8xf32>
    %63 = vector.shape_cast %62 : vector<10x16x8xf32> to vector<160x8xf32>
    %c4_79 = arith.constant 4 : index
    %c0_80 = arith.constant 0 : index
    %c0_81 = arith.constant 0 : index
    %64 = vector.load %arg8[%c4_79, %c0_80, %c0_81] : memref<9x8x8xf32, #tpu.memory_space<vmem>>, vector<1x8x8xf32>
    %65 = vector.shape_cast %64 : vector<1x8x8xf32> to vector<8x8xf32>
    %cst_82 = arith.constant dense<0.000000e+00> : vector<160x8xf32>
    %66 = tpu.matmul %63, %65, %cst_82 {dimension_numbers = #tpu.dot_dimension_numbers<[1], [0], [0], [1], [0, 0, 1, 1], [], []>} : vector<160x8xf32>, vector<8x8xf32>, vector<160x8xf32> -> vector<160x8xf32>
    %67 = arith.addf %61, %66 : vector<160x8xf32>
    %c1_83 = arith.constant 1 : index
    %c9_84 = arith.constant 9 : index
    %c0_85 = arith.constant 0 : index
    %68 = vector.load %arg13[%c1_83, %c9_84, %c0_85] : memref<12x25x8xf32, #tpu.memory_space<vmem>>, vector<10x16x8xf32>
    %69 = vector.shape_cast %68 : vector<10x16x8xf32> to vector<160x8xf32>
    %c5 = arith.constant 5 : index
    %c0_86 = arith.constant 0 : index
    %c0_87 = arith.constant 0 : index
    %70 = vector.load %arg8[%c5, %c0_86, %c0_87] : memref<9x8x8xf32, #tpu.memory_space<vmem>>, vector<1x8x8xf32>
    %71 = vector.shape_cast %70 : vector<1x8x8xf32> to vector<8x8xf32>
    %cst_88 = arith.constant dense<0.000000e+00> : vector<160x8xf32>
    %72 = tpu.matmul %69, %71, %cst_88 {dimension_numbers = #tpu.dot_dimension_numbers<[1], [0], [0], [1], [0, 0, 1, 1], [], []>} : vector<160x8xf32>, vector<8x8xf32>, vector<160x8xf32> -> vector<160x8xf32>
    %73 = arith.addf %67, %72 : vector<160x8xf32>
    %c2_89 = arith.constant 2 : index
    %c7_90 = arith.constant 7 : index
    %c0_91 = arith.constant 0 : index
    %74 = vector.load %arg13[%c2_89, %c7_90, %c0_91] : memref<12x25x8xf32, #tpu.memory_space<vmem>>, vector<10x16x8xf32>
    %75 = vector.shape_cast %74 : vector<10x16x8xf32> to vector<160x8xf32>
    %c6 = arith.constant 6 : index
    %c0_92 = arith.constant 0 : index
    %c0_93 = arith.constant 0 : index
    %76 = vector.load %arg8[%c6, %c0_92, %c0_93] : memref<9x8x8xf32, #tpu.memory_space<vmem>>, vector<1x8x8xf32>
    %77 = vector.shape_cast %76 : vector<1x8x8xf32> to vector<8x8xf32>
    %cst_94 = arith.constant dense<0.000000e+00> : vector<160x8xf32>
    %78 = tpu.matmul %75, %77, %cst_94 {dimension_numbers = #tpu.dot_dimension_numbers<[1], [0], [0], [1], [0, 0, 1, 1], [], []>} : vector<160x8xf32>, vector<8x8xf32>, vector<160x8xf32> -> vector<160x8xf32>
    %79 = arith.addf %73, %78 : vector<160x8xf32>
    %c2_95 = arith.constant 2 : index
    %c8_96 = arith.constant 8 : index
    %c0_97 = arith.constant 0 : index
    %80 = vector.load %arg13[%c2_95, %c8_96, %c0_97] : memref<12x25x8xf32, #tpu.memory_space<vmem>>, vector<10x16x8xf32>
    %81 = vector.shape_cast %80 : vector<10x16x8xf32> to vector<160x8xf32>
    %c7_98 = arith.constant 7 : index
    %c0_99 = arith.constant 0 : index
    %c0_100 = arith.constant 0 : index
    %82 = vector.load %arg8[%c7_98, %c0_99, %c0_100] : memref<9x8x8xf32, #tpu.memory_space<vmem>>, vector<1x8x8xf32>
    %83 = vector.shape_cast %82 : vector<1x8x8xf32> to vector<8x8xf32>
    %cst_101 = arith.constant dense<0.000000e+00> : vector<160x8xf32>
    %84 = tpu.matmul %81, %83, %cst_101 {dimension_numbers = #tpu.dot_dimension_numbers<[1], [0], [0], [1], [0, 0, 1, 1], [], []>} : vector<160x8xf32>, vector<8x8xf32>, vector<160x8xf32> -> vector<160x8xf32>
    %85 = arith.addf %79, %84 : vector<160x8xf32>
    %c2_102 = arith.constant 2 : index
    %c9_103 = arith.constant 9 : index
    %c0_104 = arith.constant 0 : index
    %86 = vector.load %arg13[%c2_102, %c9_103, %c0_104] : memref<12x25x8xf32, #tpu.memory_space<vmem>>, vector<10x16x8xf32>
    %87 = vector.shape_cast %86 : vector<10x16x8xf32> to vector<160x8xf32>
    %c8_105 = arith.constant 8 : index
    %c0_106 = arith.constant 0 : index
    %c0_107 = arith.constant 0 : index
    %88 = vector.load %arg8[%c8_105, %c0_106, %c0_107] : memref<9x8x8xf32, #tpu.memory_space<vmem>>, vector<1x8x8xf32>
    %89 = vector.shape_cast %88 : vector<1x8x8xf32> to vector<8x8xf32>
    %cst_108 = arith.constant dense<0.000000e+00> : vector<160x8xf32>
    %90 = tpu.matmul %87, %89, %cst_108 {dimension_numbers = #tpu.dot_dimension_numbers<[1], [0], [0], [1], [0, 0, 1, 1], [], []>} : vector<160x8xf32>, vector<8x8xf32>, vector<160x8xf32> -> vector<160x8xf32>
    %91 = arith.addf %85, %90 : vector<160x8xf32>
    %c0_109 = arith.constant 0 : index
    %c0_110 = arith.constant 0 : index
    %92 = vector.load %arg9[%c0_109, %c0_110] : memref<2x8xf32, #tpu.memory_space<vmem>>, vector<1x8xf32>
    %93 = vector.broadcast %92 : vector<1x8xf32> to vector<160x8xf32>
    %94 = arith.mulf %91, %93 : vector<160x8xf32>
    %c1_111 = arith.constant 1 : index
    %c0_112 = arith.constant 0 : index
    %95 = vector.load %arg9[%c1_111, %c0_112] : memref<2x8xf32, #tpu.memory_space<vmem>>, vector<1x8xf32>
    %96 = vector.broadcast %95 : vector<1x8xf32> to vector<160x8xf32>
    %97 = arith.addf %94, %96 : vector<160x8xf32>
    %cst_113 = arith.constant 0.000000e+00 : f32
    %98 = vector.broadcast %cst_113 : f32 to vector<160x8xf32>
    %99 = arith.maximumf %97, %98 : vector<160x8xf32>
    %100 = vector.shape_cast %99 : vector<160x8xf32> to vector<10x16x8xf32>
    %c0_114 = arith.constant 0 : index
    %c8_115 = arith.constant 8 : index
    %c0_116 = arith.constant 0 : index
    %101 = vector.load %arg14[%c0_114, %c8_115, %c0_116] : memref<10x25x8xf32, #tpu.memory_space<vmem>>, vector<10x16x8xf32>
    tpu.vector_store %arg14[%c0_114, %c8_115, %c0_116], %100 {strides = array<i32>} : memref<10x25x8xf32, #tpu.memory_space<vmem>>, vector<10x16x8xf32>,
    %c0_i32_117 = arith.constant 0 : i32
    %102 = arith.cmpi eq, %arg1, %c0_i32_117 : i32
    %103 = arith.extui %102 : i1 to i32
    %c0_i32_118 = arith.constant 0 : i32
    %104 = arith.cmpi ne, %103, %c0_i32_118 : i32
    scf.if %104 {
      %cst_194 = arith.constant 0.000000e+00 : f32
      %175 = vector.broadcast %cst_194 : f32 to vector<1x25x8xf32>
      %c0_195 = arith.constant 0 : index
      %c0_196 = arith.constant 0 : index
      %c0_197 = arith.constant 0 : index
      %176 = vector.load %arg14[%c0_195, %c0_196, %c0_197] : memref<10x25x8xf32, #tpu.memory_space<vmem>>, vector<1x25x8xf32>
      tpu.vector_store %arg14[%c0_195, %c0_196, %c0_197], %175 {strides = array<i32>} : memref<10x25x8xf32, #tpu.memory_space<vmem>>, vector<1x25x8xf32>,
    } else {
    }
    %c1_i32_119 = arith.constant 1 : i32
    %105 = arith.cmpi eq, %arg1, %c1_i32_119 : i32
    %106 = arith.extui %105 : i1 to i32
    %c0_i32_120 = arith.constant 0 : i32
    %107 = arith.cmpi ne, %106, %c0_i32_120 : i32
    scf.if %107 {
      %cst_194 = arith.constant 0.000000e+00 : f32
      %175 = vector.broadcast %cst_194 : f32 to vector<1x25x8xf32>
      %c9_195 = arith.constant 9 : index
      %c0_196 = arith.constant 0 : index
      %c0_197 = arith.constant 0 : index
      %176 = vector.load %arg14[%c9_195, %c0_196, %c0_197] : memref<10x25x8xf32, #tpu.memory_space<vmem>>, vector<1x25x8xf32>
      tpu.vector_store %arg14[%c9_195, %c0_196, %c0_197], %175 {strides = array<i32>} : memref<10x25x8xf32, #tpu.memory_space<vmem>>, vector<1x25x8xf32>,
    } else {
    }
    %cst_121 = arith.constant 0.000000e+00 : f32
    %108 = vector.broadcast %cst_121 : f32 to vector<128x8xf32>
    %c0_122 = arith.constant 0 : index
    %c7_123 = arith.constant 7 : index
    %c0_124 = arith.constant 0 : index
    %109 = vector.load %arg14[%c0_122, %c7_123, %c0_124] : memref<10x25x8xf32, #tpu.memory_space<vmem>>, vector<8x16x8xf32>
    %110 = vector.shape_cast %109 : vector<8x16x8xf32> to vector<128x8xf32>
    %c0_125 = arith.constant 0 : index
    %c0_126 = arith.constant 0 : index
    %c0_127 = arith.constant 0 : index
    %111 = vector.load %arg10[%c0_125, %c0_126, %c0_127] : memref<9x8x8xf32, #tpu.memory_space<vmem>>, vector<1x8x8xf32>
    %112 = vector.shape_cast %111 : vector<1x8x8xf32> to vector<8x8xf32>
    %cst_128 = arith.constant dense<0.000000e+00> : vector<128x8xf32>
    %113 = tpu.matmul %110, %112, %cst_128 {dimension_numbers = #tpu.dot_dimension_numbers<[1], [0], [0], [1], [0, 0, 1, 1], [], []>} : vector<128x8xf32>, vector<8x8xf32>, vector<128x8xf32> -> vector<128x8xf32>
    %114 = arith.addf %108, %113 : vector<128x8xf32>
    %c0_129 = arith.constant 0 : index
    %c8_130 = arith.constant 8 : index
    %c0_131 = arith.constant 0 : index
    %115 = vector.load %arg14[%c0_129, %c8_130, %c0_131] : memref<10x25x8xf32, #tpu.memory_space<vmem>>, vector<8x16x8xf32>
    %116 = vector.shape_cast %115 : vector<8x16x8xf32> to vector<128x8xf32>
    %c1_132 = arith.constant 1 : index
    %c0_133 = arith.constant 0 : index
    %c0_134 = arith.constant 0 : index
    %117 = vector.load %arg10[%c1_132, %c0_133, %c0_134] : memref<9x8x8xf32, #tpu.memory_space<vmem>>, vector<1x8x8xf32>
    %118 = vector.shape_cast %117 : vector<1x8x8xf32> to vector<8x8xf32>
    %cst_135 = arith.constant dense<0.000000e+00> : vector<128x8xf32>
    %119 = tpu.matmul %116, %118, %cst_135 {dimension_numbers = #tpu.dot_dimension_numbers<[1], [0], [0], [1], [0, 0, 1, 1], [], []>} : vector<128x8xf32>, vector<8x8xf32>, vector<128x8xf32> -> vector<128x8xf32>
    %120 = arith.addf %114, %119 : vector<128x8xf32>
    %c0_136 = arith.constant 0 : index
    %c9_137 = arith.constant 9 : index
    %c0_138 = arith.constant 0 : index
    %121 = vector.load %arg14[%c0_136, %c9_137, %c0_138] : memref<10x25x8xf32, #tpu.memory_space<vmem>>, vector<8x16x8xf32>
    %122 = vector.shape_cast %121 : vector<8x16x8xf32> to vector<128x8xf32>
    %c2_139 = arith.constant 2 : index
    %c0_140 = arith.constant 0 : index
    %c0_141 = arith.constant 0 : index
    %123 = vector.load %arg10[%c2_139, %c0_140, %c0_141] : memref<9x8x8xf32, #tpu.memory_space<vmem>>, vector<1x8x8xf32>
    %124 = vector.shape_cast %123 : vector<1x8x8xf32> to vector<8x8xf32>
    %cst_142 = arith.constant dense<0.000000e+00> : vector<128x8xf32>
    %125 = tpu.matmul %122, %124, %cst_142 {dimension_numbers = #tpu.dot_dimension_numbers<[1], [0], [0], [1], [0, 0, 1, 1], [], []>} : vector<128x8xf32>, vector<8x8xf32>, vector<128x8xf32> -> vector<128x8xf32>
    %126 = arith.addf %120, %125 : vector<128x8xf32>
    %c1_143 = arith.constant 1 : index
    %c7_144 = arith.constant 7 : index
    %c0_145 = arith.constant 0 : index
    %127 = vector.load %arg14[%c1_143, %c7_144, %c0_145] : memref<10x25x8xf32, #tpu.memory_space<vmem>>, vector<8x16x8xf32>
    %128 = vector.shape_cast %127 : vector<8x16x8xf32> to vector<128x8xf32>
    %c3_146 = arith.constant 3 : index
    %c0_147 = arith.constant 0 : index
    %c0_148 = arith.constant 0 : index
    %129 = vector.load %arg10[%c3_146, %c0_147, %c0_148] : memref<9x8x8xf32, #tpu.memory_space<vmem>>, vector<1x8x8xf32>
    %130 = vector.shape_cast %129 : vector<1x8x8xf32> to vector<8x8xf32>
    %cst_149 = arith.constant dense<0.000000e+00> : vector<128x8xf32>
    %131 = tpu.matmul %128, %130, %cst_149 {dimension_numbers = #tpu.dot_dimension_numbers<[1], [0], [0], [1], [0, 0, 1, 1], [], []>} : vector<128x8xf32>, vector<8x8xf32>, vector<128x8xf32> -> vector<128x8xf32>
    %132 = arith.addf %126, %131 : vector<128x8xf32>
    %c1_150 = arith.constant 1 : index
    %c8_151 = arith.constant 8 : index
    %c0_152 = arith.constant 0 : index
    %133 = vector.load %arg14[%c1_150, %c8_151, %c0_152] : memref<10x25x8xf32, #tpu.memory_space<vmem>>, vector<8x16x8xf32>
    %134 = vector.shape_cast %133 : vector<8x16x8xf32> to vector<128x8xf32>
    %c4_153 = arith.constant 4 : index
    %c0_154 = arith.constant 0 : index
    %c0_155 = arith.constant 0 : index
    %135 = vector.load %arg10[%c4_153, %c0_154, %c0_155] : memref<9x8x8xf32, #tpu.memory_space<vmem>>, vector<1x8x8xf32>
    %136 = vector.shape_cast %135 : vector<1x8x8xf32> to vector<8x8xf32>
    %cst_156 = arith.constant dense<0.000000e+00> : vector<128x8xf32>
    %137 = tpu.matmul %134, %136, %cst_156 {dimension_numbers = #tpu.dot_dimension_numbers<[1], [0], [0], [1], [0, 0, 1, 1], [], []>} : vector<128x8xf32>, vector<8x8xf32>, vector<128x8xf32> -> vector<128x8xf32>
    %138 = arith.addf %132, %137 : vector<128x8xf32>
    %c1_157 = arith.constant 1 : index
    %c9_158 = arith.constant 9 : index
    %c0_159 = arith.constant 0 : index
    %139 = vector.load %arg14[%c1_157, %c9_158, %c0_159] : memref<10x25x8xf32, #tpu.memory_space<vmem>>, vector<8x16x8xf32>
    %140 = vector.shape_cast %139 : vector<8x16x8xf32> to vector<128x8xf32>
    %c5_160 = arith.constant 5 : index
    %c0_161 = arith.constant 0 : index
    %c0_162 = arith.constant 0 : index
    %141 = vector.load %arg10[%c5_160, %c0_161, %c0_162] : memref<9x8x8xf32, #tpu.memory_space<vmem>>, vector<1x8x8xf32>
    %142 = vector.shape_cast %141 : vector<1x8x8xf32> to vector<8x8xf32>
    %cst_163 = arith.constant dense<0.000000e+00> : vector<128x8xf32>
    %143 = tpu.matmul %140, %142, %cst_163 {dimension_numbers = #tpu.dot_dimension_numbers<[1], [0], [0], [1], [0, 0, 1, 1], [], []>} : vector<128x8xf32>, vector<8x8xf32>, vector<128x8xf32> -> vector<128x8xf32>
    %144 = arith.addf %138, %143 : vector<128x8xf32>
    %c2_164 = arith.constant 2 : index
    %c7_165 = arith.constant 7 : index
    %c0_166 = arith.constant 0 : index
    %145 = vector.load %arg14[%c2_164, %c7_165, %c0_166] : memref<10x25x8xf32, #tpu.memory_space<vmem>>, vector<8x16x8xf32>
    %146 = vector.shape_cast %145 : vector<8x16x8xf32> to vector<128x8xf32>
    %c6_167 = arith.constant 6 : index
    %c0_168 = arith.constant 0 : index
    %c0_169 = arith.constant 0 : index
    %147 = vector.load %arg10[%c6_167, %c0_168, %c0_169] : memref<9x8x8xf32, #tpu.memory_space<vmem>>, vector<1x8x8xf32>
    %148 = vector.shape_cast %147 : vector<1x8x8xf32> to vector<8x8xf32>
    %cst_170 = arith.constant dense<0.000000e+00> : vector<128x8xf32>
    %149 = tpu.matmul %146, %148, %cst_170 {dimension_numbers = #tpu.dot_dimension_numbers<[1], [0], [0], [1], [0, 0, 1, 1], [], []>} : vector<128x8xf32>, vector<8x8xf32>, vector<128x8xf32> -> vector<128x8xf32>
    %150 = arith.addf %144, %149 : vector<128x8xf32>
    %c2_171 = arith.constant 2 : index
    %c8_172 = arith.constant 8 : index
    %c0_173 = arith.constant 0 : index
    %151 = vector.load %arg14[%c2_171, %c8_172, %c0_173] : memref<10x25x8xf32, #tpu.memory_space<vmem>>, vector<8x16x8xf32>
    %152 = vector.shape_cast %151 : vector<8x16x8xf32> to vector<128x8xf32>
    %c7_174 = arith.constant 7 : index
    %c0_175 = arith.constant 0 : index
    %c0_176 = arith.constant 0 : index
    %153 = vector.load %arg10[%c7_174, %c0_175, %c0_176] : memref<9x8x8xf32, #tpu.memory_space<vmem>>, vector<1x8x8xf32>
    %154 = vector.shape_cast %153 : vector<1x8x8xf32> to vector<8x8xf32>
    %cst_177 = arith.constant dense<0.000000e+00> : vector<128x8xf32>
    %155 = tpu.matmul %152, %154, %cst_177 {dimension_numbers = #tpu.dot_dimension_numbers<[1], [0], [0], [1], [0, 0, 1, 1], [], []>} : vector<128x8xf32>, vector<8x8xf32>, vector<128x8xf32> -> vector<128x8xf32>
    %156 = arith.addf %150, %155 : vector<128x8xf32>
    %c2_178 = arith.constant 2 : index
    %c9_179 = arith.constant 9 : index
    %c0_180 = arith.constant 0 : index
    %157 = vector.load %arg14[%c2_178, %c9_179, %c0_180] : memref<10x25x8xf32, #tpu.memory_space<vmem>>, vector<8x16x8xf32>
    %158 = vector.shape_cast %157 : vector<8x16x8xf32> to vector<128x8xf32>
    %c8_181 = arith.constant 8 : index
    %c0_182 = arith.constant 0 : index
    %c0_183 = arith.constant 0 : index
    %159 = vector.load %arg10[%c8_181, %c0_182, %c0_183] : memref<9x8x8xf32, #tpu.memory_space<vmem>>, vector<1x8x8xf32>
    %160 = vector.shape_cast %159 : vector<1x8x8xf32> to vector<8x8xf32>
    %cst_184 = arith.constant dense<0.000000e+00> : vector<128x8xf32>
    %161 = tpu.matmul %158, %160, %cst_184 {dimension_numbers = #tpu.dot_dimension_numbers<[1], [0], [0], [1], [0, 0, 1, 1], [], []>} : vector<128x8xf32>, vector<8x8xf32>, vector<128x8xf32> -> vector<128x8xf32>
    %162 = arith.addf %156, %161 : vector<128x8xf32>
    %c0_185 = arith.constant 0 : index
    %c0_186 = arith.constant 0 : index
    %163 = vector.load %arg11[%c0_185, %c0_186] : memref<2x8xf32, #tpu.memory_space<vmem>>, vector<1x8xf32>
    %164 = vector.broadcast %163 : vector<1x8xf32> to vector<128x8xf32>
    %165 = arith.mulf %162, %164 : vector<128x8xf32>
    %c1_187 = arith.constant 1 : index
    %c0_188 = arith.constant 0 : index
    %166 = vector.load %arg11[%c1_187, %c0_188] : memref<2x8xf32, #tpu.memory_space<vmem>>, vector<1x8xf32>
    %167 = vector.broadcast %166 : vector<1x8xf32> to vector<128x8xf32>
    %168 = arith.addf %165, %167 : vector<128x8xf32>
    %cst_189 = arith.constant 0.000000e+00 : f32
    %169 = vector.broadcast %cst_189 : f32 to vector<128x8xf32>
    %170 = arith.maximumf %168, %169 : vector<128x8xf32>
    %171 = vector.shape_cast %170 : vector<128x8xf32> to vector<8x16x8xf32>
    %c0_190 = arith.constant 0 : index
    %c0_191 = arith.constant 0 : index
    %c0_192 = arith.constant 0 : index
    %c0_193 = arith.constant 0 : index
    %172 = vector.load %arg12[%c0_190, %c0_191, %c0_192, %c0_193] : memref<1x8x16x8xf32, #tpu.memory_space<vmem>>, vector<1x8x16x8xf32>
    %173 = vector.shape_cast %172 : vector<1x8x16x8xf32> to vector<8x16x8xf32>
    %174 = vector.shape_cast %171 : vector<8x16x8xf32> to vector<1x8x16x8xf32>
    tpu.vector_store %arg12[%c0_190, %c0_191, %c0_192, %c0_193], %174 {strides = array<i32>} : memref<1x8x16x8xf32, #tpu.memory_space<vmem>>, vector<1x8x16x8xf32>,
    return
  }
  func.func @transform_0(%arg0: i32, %arg1: i32) -> (i32, i32, i32, i32) {
    %c0_i32 = arith.constant 0 : i32
    %c0_i32_0 = arith.constant 0 : i32
    %c0_i32_1 = arith.constant 0 : i32
    return %arg0, %arg1, %c0_i32, %c0_i32_0 : i32, i32, i32, i32
  }
  func.func @transform_1(%arg0: i32, %arg1: i32) -> (i32, i32, i32, i32) {
    %c4_i32 = arith.constant 4 : i32
    %0 = arith.muli %arg1, %c4_i32 : i32
    %c1_i32 = arith.constant 1 : i32
    %1 = arith.subi %0, %c1_i32 : i32
    %c0_i32 = arith.constant 0 : i32
    %2 = arith.maxsi %1, %c0_i32 : i32
    %c0_i32_0 = arith.constant 0 : i32
    %c0_i32_1 = arith.constant 0 : i32
    %c0_i32_2 = arith.constant 0 : i32
    return %arg0, %2, %c0_i32_0, %c0_i32_1 : i32, i32, i32, i32
  }
  func.func @transform_2(%arg0: i32, %arg1: i32) -> (i32, i32, i32, i32) {
    %c1_i32 = arith.constant 1 : i32
    %0 = arith.addi %arg1, %c1_i32 : i32
    %c4_i32 = arith.constant 4 : i32
    %1 = arith.muli %0, %c4_i32 : i32
    %c7_i32 = arith.constant 7 : i32
    %2 = arith.minsi %1, %c7_i32 : i32
    %c0_i32 = arith.constant 0 : i32
    %c0_i32_0 = arith.constant 0 : i32
    %c0_i32_1 = arith.constant 0 : i32
    return %arg0, %2, %c0_i32, %c0_i32_0 : i32, i32, i32, i32
  }
  func.func @transform_3(%arg0: i32, %arg1: i32) -> (i32, i32, i32, i32) {
    %c0_i32 = arith.constant 0 : i32
    %c0_i32_0 = arith.constant 0 : i32
    %c0_i32_1 = arith.constant 0 : i32
    return %arg0, %arg1, %c0_i32, %c0_i32_0 : i32, i32, i32, i32
  }
  func.func @transform_4(%arg0: i32, %arg1: i32) -> (i32, i32, i32, i32) {
    %c4_i32 = arith.constant 4 : i32
    %0 = arith.muli %arg1, %c4_i32 : i32
    %c1_i32 = arith.constant 1 : i32
    %1 = arith.subi %0, %c1_i32 : i32
    %c0_i32 = arith.constant 0 : i32
    %2 = arith.maxsi %1, %c0_i32 : i32
    %c0_i32_0 = arith.constant 0 : i32
    %c0_i32_1 = arith.constant 0 : i32
    %c0_i32_2 = arith.constant 0 : i32
    return %arg0, %2, %c0_i32_0, %c0_i32_1 : i32, i32, i32, i32
  }
  func.func @transform_5(%arg0: i32, %arg1: i32) -> (i32, i32, i32, i32) {
    %c1_i32 = arith.constant 1 : i32
    %0 = arith.addi %arg1, %c1_i32 : i32
    %c4_i32 = arith.constant 4 : i32
    %1 = arith.muli %0, %c4_i32 : i32
    %c7_i32 = arith.constant 7 : i32
    %2 = arith.minsi %1, %c7_i32 : i32
    %c0_i32 = arith.constant 0 : i32
    %c0_i32_0 = arith.constant 0 : i32
    %c0_i32_1 = arith.constant 0 : i32
    return %arg0, %2, %c0_i32, %c0_i32_0 : i32, i32, i32, i32
  }
  func.func @transform_6(%arg0: i32, %arg1: i32) -> (i32, i32, i32) {
    %c0_i32 = arith.constant 0 : i32
    %c0_i32_0 = arith.constant 0 : i32
    %c0_i32_1 = arith.constant 0 : i32
    %c0_i32_2 = arith.constant 0 : i32
    return %c0_i32, %c0_i32_0, %c0_i32_1 : i32, i32, i32
  }
  func.func @transform_7(%arg0: i32, %arg1: i32) -> (i32, i32) {
    %c0_i32 = arith.constant 0 : i32
    %c0_i32_0 = arith.constant 0 : i32
    %c0_i32_1 = arith.constant 0 : i32
    return %c0_i32, %c0_i32_0 : i32, i32
  }
  func.func @transform_8(%arg0: i32, %arg1: i32) -> (i32, i32, i32) {
    %c0_i32 = arith.constant 0 : i32
    %c0_i32_0 = arith.constant 0 : i32
    %c0_i32_1 = arith.constant 0 : i32
    %c0_i32_2 = arith.constant 0 : i32
    return %c0_i32, %c0_i32_0, %c0_i32_1 : i32, i32, i32
  }
  func.func @transform_9(%arg0: i32, %arg1: i32) -> (i32, i32) {
    %c0_i32 = arith.constant 0 : i32
    %c0_i32_0 = arith.constant 0 : i32
    %c0_i32_1 = arith.constant 0 : i32
    return %c0_i32, %c0_i32_0 : i32, i32
  }
  func.func @transform_10(%arg0: i32, %arg1: i32) -> (i32, i32, i32, i32) {
    %c0_i32 = arith.constant 0 : i32
    %c0_i32_0 = arith.constant 0 : i32
    %c0_i32_1 = arith.constant 0 : i32
    return %arg0, %arg1, %c0_i32, %c0_i32_0 : i32, i32, i32, i32
  }
}

</mosaic_0001>

<bundles_post_ra>
// kernel: tpu_custom_call.1
= control target key start
LH: loop header
LB: loop body
LE: loop exit
PB: predicated region body
PF: predicated region fallthrough
CT: control target
= control target key end

     0   :  { %s4762_s13 = smov 0   ;;  %s4764_s14 = smov 0   ;;  %s6434_s0 = inlined_call_operand.vmem [shape: f32[2,8,16,4], index: 0, kind: input, shape index: {}]   ;;  %s6435_s1 = inlined_call_operand.vmem [shape: f32[2,8,16,4], index: 1, kind: input, shape index: {}]   ;;  %s6436_s2 = inlined_call_operand.vmem [shape: f32[2,8,16,4], index: 2, kind: input, shape index: {}]   ;;  %s6437_s3 = inlined_call_operand.vmem [shape: f32[2,16,16,4], index: 3, kind: input, shape index: {}]   ;;  %s6438_s4 = inlined_call_operand.vmem [shape: f32[2,16,16,4], index: 4, kind: input, shape index: {}]   ;;  %s6439_s5 = inlined_call_operand.vmem [shape: f32[2,16,16,4], index: 5, kind: input, shape index: {}]   ;;  %s6440_s6 = inlined_call_operand.vmem [shape: f32[9,8,8], index: 6, kind: input, shape index: {}]   ;;  %s6441_s7 = inlined_call_operand.vmem [shape: f32[2,8], index: 7, kind: input, shape index: {}]   ;;  %s6442_s8 = inlined_call_operand.vmem [shape: f32[9,8,8], index: 8, kind: input, shape index: {}]   ;;  %s6443_s9 = inlined_call_operand.vmem [shape: f32[2,8], index: 9, kind: input, shape index: {}]   ;;  %s6444_s10 = inlined_call_operand.vmem [shape: f32[2,16,16,8], index: 10, kind: output, shape index: {}]  }
   0x1   :  { %6445 = sst [smem:[#allocation39_spill]] %s6437_s3  ;;  %s4766_s15 = smov 0  }
   0x2   :  { %6446 = sst [smem:[#allocation40_spill]] %s6444_s10  ;;  %s4768_s16 = smov 0  }
   0x3   :  { %s4770_s17 = smov 0  }
   0x4 LB: > { %s29_s18 = sadd.s32 1, %s4691_s15  ;;  %s32_s19 = sadd.s32 1, %s4695_s16  ;;  %s4699_s17 = sphi %s4770_s17, %s20_s17   ;;  %s4695_s16 = sphi %s4768_s16, %s6524_s16   ;;  %s4691_s15 = sphi %s4766_s15, %s6523_s15   ;;  %s4687_s14 = sphi %s4764_s14, %s6522_s14   ;;  %s4683_s13 = sphi %s4762_s13, %s6521_s13  }
   0x5   : > { %p30_p0 = scmp.ge.s32.totalorder %s29_s18, 2  ;;  %p4207_p1 = scmp.ge.s32.totalorder %s4699_s17, 1 }
   0x6   : > { %p484_p2 = scmp.lt.s32.totalorder %s4699_s17, 5 }
   0x7   : > { %s6526_s18 = smov (%p30_p0, %s29_s18), 0  ;;  %s6528_s19 = smov (!%p30_p0, %s32_s19), %s4695_s16 }
   0x8   : > { %p485_p3 = pnand %p4207_p1, %p484_p2  ;;  %p34_p4 = scmp.ge.s32.totalorder %s6528_s19, 2 }
   0xa   : > { %s6530_s19 = smov (%p34_p4, %s6528_s19), 0  ;;  %488 = sbr.rel (%p485_p3) target bundleno = 1407 (0x57f), region = 60 }
   0xf   : > { %p597_p5 = scmp.lt.s32.totalorder %s4687_s14, 1  ;;  %s4229_s20 = sshll.u32 %s4683_s13, 3  ;;  %vm755_vm0 = vcmask 31744   ;;  %vm852_vm1 = vcmask 64544   ;;  %vm701_vm2 = vcmask 57344   ;;  %v4702_v51 = vmov 0.0  }
  0x10   : > { %p644_p6 = scmp.lt.s32.totalorder %s4229_s20, 15  ;;  %s4802_s25 = sshll.u32 %s4683_s13, 2  ;;  %702 = vst.msk [vmem:[#allocation2 + $0x7] sm:$0x1] %vm701_vm2, %v4702_v51 }
  0x11   : > { %s6532_s14 = smov (!%p597_p5, %s4687_s14), 1  ;;  %s6447_s3 = sld [smem:[#allocation39_spill]]  ;;  %703 = vst.msk [vmem:[#allocation2 + $0x27] sm:$0x1] %vm701_vm2, %v4702_v51 }
  0x12   : > { %s6534_s20 = smov (!%p644_p6, %s4229_s20), 15  ;;  %s4798_s21 = sshll.u32 %s6532_s14, 5  ;;  %704 = vst.msk [vmem:[#allocation2 + $0x47] sm:$0x1] %vm701_vm2, %v4702_v51 }
  0x13   : > { %s4230_s22 = sshll.u32 %s6534_s20, 1  ;;  %s6448_s10 = sld [smem:[#allocation40_spill]]  ;;  %705 = vst.msk [vmem:[#allocation2 + $0x67] sm:$0x1] %vm701_vm2, %v4702_v51 }
  0x14   : > { %s648_s23 = sadd.s32 %s4798_s21, %s4230_s22  ;;  %s4701_s12 = smov 4   ;;  %706 = vst.msk [vmem:[#allocation2 + $0x87] sm:$0x1] %vm701_vm2, %v4702_v51 }
  0x15   : > { %s4232_s24 = sshll.u32 %s648_s23, 3  ;;  %s4213_s20 = sadd.s32 4294967295, %s4802_s25  ;;  %707 = vst.msk [vmem:[#allocation2 + $0xa7] sm:$0x1] %vm701_vm2, %v4702_v51 }
  0x16   : > { %p609_p7 = scmp.gt.s32.totalorder %s4213_s20, 0  ;;  %p4214_p10 = scmp.lt.s32.totalorder %s4213_s20, 7  ;;  %708 = vst.msk [vmem:[#allocation2 + $0xc7] sm:$0x1] %vm701_vm2, %v4702_v51 }
  0x17   : > { %s4807_s28 = scalar_lea.vmem %s6447_s3, %s4232_s24  ;;  %s4843_s27 = sshll.u32 %s6532_s14, 4  ;;  %709 = vst.msk [vmem:[#allocation2 + $0xe7] sm:$0x1] %vm701_vm2, %v4702_v51 }
  0x18   : > { %v774_v0 = vld [vmem:[%s4807_s28 + $0x10] sm:$0xff]  ;;  %v772_v1 = vld [vmem:[%s4807_s28] sm:$0xff]  ;;  %v775_v3 = vld [vmem:[%s4807_s28 + $0x18] sm:$0xff]  ;;  %s610_s22 = scalar_select %p609_p7, %s4213_s20, 0  ;;  %710 = vst.msk [vmem:[#allocation2 + $0x107] sm:$0x1] %vm701_vm2, %v4702_v51 }
  0x19   : > { %s4812_s11 = scalar_lea.vmem %s6448_s10, %s4232_s24  ;;  %808 = vrot.lane.b32.xlu1 %v774_v0, %s4701_s12  ;;  %804 = vrot.lane.b32.xlu0 %v772_v1, %s4701_s12  ;;  %v776_v2 = vld [vmem:[%s4807_s28 + $0x20] sm:$0xff]  ;;  %v773_v4 = vld [vmem:[%s4807_s28 + $0x8] sm:$0xff]  ;;  %s4605_s24 = sadd.s32 4, %s4802_s25  ;;  %711 = vst.msk [vmem:[#allocation2 + $0x127] sm:$0x1] %vm701_vm2, %v4702_v51 }
  0x1a   : > { %812 = vrot.lane.b32.xlu2 %v776_v2, %s4701_s12  ;;  %v777_v5 = vld [vmem:[%s4807_s28 + $0x28] sm:$0xff]  ;;  %s4235_s23 = sshll.u32 %s610_s22, 1  ;;  %v779_v6 = vld [vmem:[%s4807_s28 + $0x38] sm:$0xff]  ;;  %v778_v7 = vld [vmem:[%s4807_s28 + $0x30] sm:$0xff]  ;;  %p4833_p9 = scmp.lt.s32.totalorder %s4605_s24, 7 }
  0x1b   : > { %v780_v8 = vld [vmem:[%s4807_s28 + $0x40] sm:$0xff]  ;;  %p659_p8 = scmp.lt.s32.totalorder %s4235_s23, 15  ;;  %s6538_s22 = smov (!%p4214_p10, %s610_s22), 7  ;;  %v782_v9 = vld [vmem:[%s4807_s28 + $0x50] sm:$0xff]  ;;  %v781_v10 = vld [vmem:[%s4807_s28 + $0x48] sm:$0xff] }
  0x1c   : > { %s6540_s24 = smov (!%p4833_p9, %s4605_s24), 7  ;;  %s4219_s29 = sshll.u32 %s6538_s22, 1  ;;  %v783_v11 = vld [vmem:[%s4807_s28 + $0x58] sm:$0xff]  ;;  %v785_v12 = vld [vmem:[%s4807_s28 + $0x68] sm:$0xff]  ;;  %v784_v13 = vld [vmem:[%s4807_s28 + $0x60] sm:$0xff] }
  0x1d   : > { %s6536_s23 = smov (!%p659_p8, %s4235_s23), 15  ;;  %s4847_s30 = sadd.s32 %s4219_s29, %s4843_s27  ;;  %v786_v14 = vld [vmem:[%s4807_s28 + $0x70] sm:$0xff]  ;;  %v787_v15 = vld [vmem:[%s4807_s28 + $0x78] sm:$0xff]  ;;  %712 = vst.msk [vmem:[#allocation2 + $0x147] sm:$0x1] %vm701_vm2, %v4702_v51 }
  0x1e   : > { %s4236_s20 = sshll.u32 %s6536_s23, 1  ;;  %s4240_s3 = sshll.u32 %s6540_s24, 1  ;;  %713 = vst.msk [vmem:[#allocation2 + $0x167] sm:$0x1] %vm701_vm2, %v4702_v51 }
  0x1f   : > { %s663_s10 = sadd.s32 %s4236_s20, %s4798_s21  ;;  %s6542_s24 = smov (!%p4833_p9, %s6540_s24), 7  ;;  %714 = vst.msk [vmem:[#allocation2 + $0x18] sm:$0x1] %vm701_vm2, %v4702_v51 }
  0x20   : > { %p678_p11 = scmp.lt.s32.totalorder %s4240_s3, 15  ;;  %s4857_s14 = sshll.u32 %s6542_s24, 1  ;;  %715 = vst.msk [vmem:[#allocation2 + $0x38] sm:$0x1] %vm701_vm2, %v4702_v51 }
  0x21   : > { %810 = vrot.lane.b32.xlu1 %v775_v3, %s4701_s12  ;;  %806 = vrot.lane.b32.xlu0 %v773_v4, %s4701_s12  ;;  %s4238_s22 = sshll.u32 %s663_s10, 3  ;;  %p599_p12 = scmp.lt.s32.totalorder %s4802_s25, 7  ;;  %716 = vst.msk [vmem:[#allocation2 + $0x58] sm:$0x1] %vm701_vm2, %v4702_v51 }
  0x22   : > { %814 = vrot.lane.b32.xlu2 %v777_v5, %s4701_s12  ;;  %s6544_s3 = smov (!%p678_p11, %s4240_s3), 15  ;;  %s665_s20 = scalar_lea.vmem %s6438_s4, %s4238_s22  ;;  %717 = vst.msk [vmem:[#allocation2 + $0x78] sm:$0x1] %vm701_vm2, %v4702_v51 }
  0x23   : > { %v875_v16 = vld [vmem:[%s665_s20] sm:$0xff]  ;;  %s4241_s24 = sshll.u32 %s6544_s3, 1  ;;  %v876_v17 = vld [vmem:[%s665_s20 + $0x8] sm:$0xff]  ;;  %s6546_s25 = smov (!%p599_p12, %s4802_s25), 7  ;;  %v877_v18 = vld [vmem:[%s665_s20 + $0x10] sm:$0xff] }
  0x24   : > { %s682_s10 = sadd.s32 %s4241_s24, %s4798_s21  ;;  %v878_v19 = vld [vmem:[%s665_s20 + $0x18] sm:$0xff]  ;;  %s4209_s3 = sshll.u32 %s6546_s25, 1  ;;  %718 = vst.msk [vmem:[#allocation2 + $0x98] sm:$0x1] %vm701_vm2, %v4702_v51 }
  0x25   : > { %s4243_s29 = sshll.u32 %s682_s10, 3  ;;  %s603_s26 = sadd.s32 %s4843_s27, %s4209_s3  ;;  %719 = vst.msk [vmem:[#allocation2 + $0xb8] sm:$0x1] %vm701_vm2, %v4702_v51 }
  0x26   : > { %s684_s28 = scalar_lea.vmem %s6439_s5, %s4243_s29  ;;  %s4211_s21 = sshll.u32 %s603_s26, 3  ;;  %720 = vst.msk [vmem:[#allocation2 + $0xd8] sm:$0x1] %vm701_vm2, %v4702_v51 }
  0x27   : > { %v906_v20 = vld [vmem:[%s684_s28] sm:$0xff]  ;;  %v907_v21 = vld [vmem:[%s684_s28 + $0x8] sm:$0xff]  ;;  %v908_v22 = vld [vmem:[%s684_s28 + $0x10] sm:$0xff]  ;;  %s4887_s29 = scalar_lea.vmem %s6434_s0, %s4211_s21  ;;  %s4221_s25 = sshll.u32 %s4847_s30, 3  ;;  %721 = vst.msk [vmem:[#allocation2 + $0xf8] sm:$0x1] %vm701_vm2, %v4702_v51 }
  0x28   : > { %v909_v23 = vld [vmem:[%s684_s28 + $0x18] sm:$0xff]  ;;  %v748_v24 = vld [vmem:[%s4887_s29 + $0x10] sm:$0xff]  ;;  %v746_v25 = vld [vmem:[%s4887_s29] sm:$0xff]  ;;  %s619_s22 = scalar_lea.vmem %s6435_s1, %s4221_s25  ;;  %s6450_s30 = sadd.s32 %s4857_s14, %s4843_s27  ;;  %722 = vst.msk [vmem:[#allocation2 + $0x118] sm:$0x1] %vm701_vm2, %v4702_v51 }
  0x29   : > { %818 = vrot.lane.b32.xlu1 %v779_v6, %s4701_s12  ;;  %816 = vrot.lane.b32.xlu0 %v778_v7, %s4701_s12  ;;  %760 = vst.msk [vmem:[#allocation2 + $0x88] sm:$0xff] %vm755_vm0, %v748_v24  ;;  %v749_v26 = vld [vmem:[%s4887_s29 + $0x18] sm:$0xff]  ;;  %v747_v27 = vld [vmem:[%s4887_s29 + $0x8] sm:$0xff]  ;;  %s4228_s23 = sshll.u32 %s6450_s30, 3  ;;  %p4248_p13 = scmp.ne.s32.totalorder %s4683_s13, 0 }
  0x2a   : > { %820 = vrot.lane.b32.xlu2 %v780_v8, %s4701_s12  ;;  %762 = vst.msk [vmem:[#allocation2 + $0xa8] sm:$0xff] %vm755_vm0, %v748_v24  ;;  %v750_v29 = vld [vmem:[%s4887_s29 + $0x20] sm:$0xff]  ;;  %v751_v31 = vld [vmem:[%s4887_s29 + $0x28] sm:$0xff]  ;;  %v752_v33 = vld [vmem:[%s4887_s29 + $0x30] sm:$0xff]  ;;  %s636_s26 = scalar_lea.vmem %s6436_s2, %s4228_s23 }
  0x2b   : > { %758 = vst.msk [vmem:[#allocation2 + $0x68] sm:$0xff] %vm755_vm0, %v746_v25  ;;  %v753_v36 = vld [vmem:[%s4887_s29 + $0x38] sm:$0xff]  ;;  %v870_v40 = vld [vmem:[%s619_s22 + $0x8] sm:$0xff]  ;;  %v869_v42 = vld [vmem:[%s619_s22] sm:$0xff] }
  0x2c   : > { %756 = vst.msk [vmem:[#allocation2 + $0x48] sm:$0xff] %vm755_vm0, %v746_v25  ;;  %v899_v45 = vld [vmem:[%s636_s26] sm:$0xff]  ;;  %v900_v47 = vld [vmem:[%s636_s26 + $0x8] sm:$0xff] }
  0x2d   : > { %761 = vst.msk [vmem:[#allocation2 + $0x90] sm:$0xff] %vm755_vm0, %v749_v26 }
  0x2e   : > { %763 = vst.msk [vmem:[#allocation2 + $0xb0] sm:$0xff] %vm755_vm0, %v749_v26 }
  0x2f   : > { %759 = vst.msk [vmem:[#allocation2 + $0x70] sm:$0xff] %vm755_vm0, %v747_v27 }
  0x30   : > { %757 = vst.msk [vmem:[#allocation2 + $0x50] sm:$0xff] %vm755_vm0, %v747_v27 }
  0x31   : > { %824 = vrot.lane.b32.xlu1 %v782_v9, %s4701_s12  ;;  %822 = vrot.lane.b32.xlu0 %v781_v10, %s4701_s12  ;;  %764 = vst.msk [vmem:[#allocation2 + $0xc8] sm:$0xff] %vm755_vm0, %v750_v29 }
  0x32   : > { %826 = vrot.lane.b32.xlu2 %v783_v11, %s4701_s12  ;;  %766 = vst.msk [vmem:[#allocation2 + $0xe8] sm:$0xff] %vm755_vm0, %v750_v29 }
  0x33   : > { %767 = vst.msk [vmem:[#allocation2 + $0xf0] sm:$0xff] %vm755_vm0, %v751_v31 }
  0x34   : > { %765 = vst.msk [vmem:[#allocation2 + $0xd0] sm:$0xff] %vm755_vm0, %v751_v31 }
  0x35   : > { %770 = vst.msk [vmem:[#allocation2 + $0x128] sm:$0xff] %vm755_vm0, %v752_v33 }
  0x36   : > { %768 = vst.msk [vmem:[#allocation2 + $0x108] sm:$0xff] %vm755_vm0, %v752_v33 }
  0x37   : > { %769 = vst.msk [vmem:[#allocation2 + $0x110] sm:$0xff] %vm755_vm0, %v753_v36 }
  0x38   : > { %771 = vst.msk [vmem:[#allocation2 + $0x130] sm:$0xff] %vm755_vm0, %v753_v36 }
  0x39   : > { %830 = vrot.lane.b32.xlu1 %v785_v12, %s4701_s12  ;;  %828 = vrot.lane.b32.xlu0 %v784_v13, %s4701_s12  ;;  %872 = vst.msk [vmem:[#allocation2 + $0x10] sm:$0xff] %vm755_vm0, %v870_v40 }
  0x3a   : > { %832 = vrot.lane.b32.xlu2 %v786_v14, %s4701_s12  ;;  %874 = vst.msk [vmem:[#allocation2 + $0x30] sm:$0xff] %vm755_vm0, %v870_v40 }
  0x3b   : > { %871 = vst.msk [vmem:[#allocation2 + $0x8] sm:$0xff] %vm755_vm0, %v869_v42 }
  0x3c   : > { %873 = vst.msk [vmem:[#allocation2 + $0x28] sm:$0xff] %vm755_vm0, %v869_v42 }
  0x3d   : > { %902 = vst.msk [vmem:[#allocation2 + $0x148] sm:$0xff] %vm755_vm0, %v899_v45 }
  0x3e   : > { %904 = vst.msk [vmem:[#allocation2 + $0x168] sm:$0xff] %vm755_vm0, %v899_v45 }
  0x3f   : > { %903 = vst.msk [vmem:[#allocation2 + $0x150] sm:$0xff] %vm755_vm0, %v900_v47 }
  0x40   : > { %905 = vst.msk [vmem:[#allocation2 + $0x170] sm:$0xff] %vm755_vm0, %v900_v47 }
  0x41   : > { %834 = vrot.lane.b32.xlu0 %v787_v15, %s4701_s12  ;;  %883 = vrot.lane.b32.xlu1 %v875_v16, %s4701_s12  ;;  %723 = vst.msk [vmem:[#allocation2 + $0x138] sm:$0x1] %vm701_vm2, %v4702_v51 }
  0x42   : > { %885 = vrot.lane.b32.xlu2 %v876_v17, %s4701_s12  ;;  %724 = vst.msk [vmem:[#allocation2 + $0x158] sm:$0x1] %vm701_vm2, %v4702_v51 }
  0x43   : > { %725 = vst.msk [vmem:[#allocation2 + $0x178] sm:$0x1] %vm701_vm2, %v4702_v51 }
  0x44   : > { %726 = vst.msk [vmem:[#allocation3 + $0x7] sm:$0x1] %vm701_vm2, %v4702_v51 }
  0x45   : > { %727 = vst.msk [vmem:[#allocation3 + $0x27] sm:$0x1] %vm701_vm2, %v4702_v51 }
  0x46   : > { %728 = vst.msk [vmem:[#allocation3 + $0x47] sm:$0x1] %vm701_vm2, %v4702_v51 }
  0x47   : > { %729 = vst.msk [vmem:[#allocation3 + $0x67] sm:$0x1] %vm701_vm2, %v4702_v51 }
  0x48   : > { %730 = vst.msk [vmem:[#allocation3 + $0x87] sm:$0x1] %vm701_vm2, %v4702_v51 }
  0x49   : > { %887 = vrot.lane.b32.xlu0 %v877_v18, %s4701_s12  ;;  %889 = vrot.lane.b32.xlu1 %v878_v19, %s4701_s12  ;;  %731 = vst.msk [vmem:[#allocation3 + $0xa7] sm:$0x1] %vm701_vm2, %v4702_v51 }
  0x4a   : > { %914 = vrot.lane.b32.xlu2 %v906_v20, %s4701_s12  ;;  %732 = vst.msk [vmem:[#allocation3 + $0xc7] sm:$0x1] %vm701_vm2, %v4702_v51 }
  0x4b   : > { %733 = vst.msk [vmem:[#allocation3 + $0xe7] sm:$0x1] %vm701_vm2, %v4702_v51 }
  0x4c   : > { %734 = vst.msk [vmem:[#allocation3 + $0x107] sm:$0x1] %vm701_vm2, %v4702_v51 }
  0x4d   : > { %735 = vst.msk [vmem:[#allocation3 + $0x127] sm:$0x1] %vm701_vm2, %v4702_v51 }
  0x4e   : > { %736 = vst.msk [vmem:[#allocation3 + $0x18] sm:$0x1] %vm701_vm2, %v4702_v51 }
  0x4f   : > { %737 = vst.msk [vmem:[#allocation3 + $0x38] sm:$0x1] %vm701_vm2, %v4702_v51 }
  0x50   : > { %738 = vst.msk [vmem:[#allocation3 + $0x58] sm:$0x1] %vm701_vm2, %v4702_v51 }
  0x51   : > { %916 = vrot.lane.b32.xlu0 %v907_v21, %s4701_s12  ;;  %918 = vrot.lane.b32.xlu1 %v908_v22, %s4701_s12  ;;  %739 = vst.msk [vmem:[#allocation3 + $0x78] sm:$0x1] %vm701_vm2, %v4702_v51 }
  0x52   : > { %920 = vrot.lane.b32.xlu2 %v909_v23, %s4701_s12  ;;  %740 = vst.msk [vmem:[#allocation3 + $0x98] sm:$0x1] %vm701_vm2, %v4702_v51 }
  0x53   : > { %741 = vst.msk [vmem:[#allocation3 + $0xb8] sm:$0x1] %vm701_vm2, %v4702_v51 }
  0x54   : > { %742 = vst.msk [vmem:[#allocation3 + $0xd8] sm:$0x1] %vm701_vm2, %v4702_v51 }
  0x55   : > { %743 = vst.msk [vmem:[#allocation3 + $0xf8] sm:$0x1] %vm701_vm2, %v4702_v51 }
  0x56   : > { %744 = vst.msk [vmem:[#allocation3 + $0x118] sm:$0x1] %vm701_vm2, %v4702_v51 }
  0x57   : > { %745 = vst.msk [vmem:[#allocation3 + $0x138] sm:$0x1] %vm701_vm2, %v4702_v51 }
  0x74   : > { %v813_v28 = vpop.permute.xlu2 %812 }
  0x75   : > { %857 = vst.msk [vmem:[#allocation2 + $0x88] sm:$0xff] %vm852_vm1, %v813_v28 }
  0x7c   : > { %v815_v30 = vpop.permute.xlu2 %814 }
  0x7d   : > { %858 = vst.msk [vmem:[#allocation2 + $0x90] sm:$0xff] %vm852_vm1, %v815_v30 }
  0x84   : > { %v821_v32 = vpop.permute.xlu2 %820 }
  0x85   : > { %861 = vst.msk [vmem:[#allocation2 + $0xc8] sm:$0xff] %vm852_vm1, %v821_v32 }
  0x8b   : > { %v809_v34 = vpop.permute.xlu1 %808  ;;  %v805_v35 = vpop.permute.xlu0 %804 }
  0x8c   : > { %855 = vst.msk [vmem:[#allocation2 + $0x68] sm:$0xff] %vm852_vm1, %v809_v34  ;;  %v827_v37 = vpop.permute.xlu2 %826 }
  0x8d   : > { %853 = vst.msk [vmem:[#allocation2 + $0x48] sm:$0xff] %vm852_vm1, %v805_v35 }
  0x8e   : > { %864 = vst.msk [vmem:[#allocation2 + $0xf0] sm:$0xff] %vm852_vm1, %v827_v37 }
  0x93   : > { %v811_v38 = vpop.permute.xlu1 %810  ;;  %v807_v39 = vpop.permute.xlu0 %806 }
  0x94   : > { %856 = vst.msk [vmem:[#allocation2 + $0x70] sm:$0xff] %vm852_vm1, %v811_v38  ;;  %v833_v41 = vpop.permute.xlu2 %832 }
  0x95   : > { %854 = vst.msk [vmem:[#allocation2 + $0x50] sm:$0xff] %vm852_vm1, %v807_v39 }
  0x96   : > { %867 = vst.msk [vmem:[#allocation2 + $0x128] sm:$0xff] %vm852_vm1, %v833_v41 }
  0x9b   : > { %v819_v43 = vpop.permute.xlu1 %818  ;;  %v817_v44 = vpop.permute.xlu0 %816 }
  0x9c   : > { %860 = vst.msk [vmem:[#allocation2 + $0xb0] sm:$0xff] %vm852_vm1, %v819_v43  ;;  %v886_v46 = vpop.permute.xlu2 %885 }
  0x9d   : > { %859 = vst.msk [vmem:[#allocation2 + $0xa8] sm:$0xff] %vm852_vm1, %v817_v44 }
  0x9e   : > { %896 = vst.msk [vmem:[#allocation2 + $0x10] sm:$0xff] %vm852_vm1, %v886_v46 }
  0xa3   : > { %v825_v48 = vpop.permute.xlu1 %824  ;;  %v823_v49 = vpop.permute.xlu0 %822 }
  0xa4   : > { %863 = vst.msk [vmem:[#allocation2 + $0xe8] sm:$0xff] %vm852_vm1, %v825_v48  ;;  %v915_v50 = vpop.permute.xlu2 %914 }
  0xa5   : > { %862 = vst.msk [vmem:[#allocation2 + $0xd0] sm:$0xff] %vm852_vm1, %v823_v49 }
  0xa6   : > { %926 = vst.msk [vmem:[#allocation2 + $0x148] sm:$0xff] %vm852_vm1, %v915_v50 }
  0xab   : > { %v831_v52 = vpop.permute.xlu1 %830  ;;  %v829_v53 = vpop.permute.xlu0 %828 }
  0xac   : > { %866 = vst.msk [vmem:[#allocation2 + $0x110] sm:$0xff] %vm852_vm1, %v831_v52  ;;  %v921_v54 = vpop.permute.xlu2 %920 }
  0xad   : > { %865 = vst.msk [vmem:[#allocation2 + $0x108] sm:$0xff] %vm852_vm1, %v829_v53 }
  0xae   : > { %929 = vst.msk [vmem:[#allocation2 + $0x170] sm:$0xff] %vm852_vm1, %v921_v54 }
  0xb3   : > { %v835_v55 = vpop.permute.xlu0 %834  ;;  %v884_v56 = vpop.permute.xlu1 %883 }
  0xb4   : > { %868 = vst.msk [vmem:[#allocation2 + $0x130] sm:$0xff] %vm852_vm1, %v835_v55 }
  0xb5   : > { %895 = vst.msk [vmem:[#allocation2 + $0x8] sm:$0xff] %vm852_vm1, %v884_v56 }
  0xbb   : > { %v888_v57 = vpop.permute.xlu0 %887  ;;  %v890_v58 = vpop.permute.xlu1 %889 }
  0xbc   : > { %897 = vst.msk [vmem:[#allocation2 + $0x28] sm:$0xff] %vm852_vm1, %v888_v57 }
  0xbd   : > { %898 = vst.msk [vmem:[#allocation2 + $0x30] sm:$0xff] %vm852_vm1, %v890_v58 }
  0xc1   : > { %933 = sbr.rel (%p4248_p13) target bundleno = 207 (0xcf), region = 64 }
  0xc3   : > { %v917_v59 = vpop.permute.xlu0 %916  ;;  %v919_v60 = vpop.permute.xlu1 %918 }
  0xc4   : > { %927 = vst.msk [vmem:[#allocation2 + $0x150] sm:$0xff] %vm852_vm1, %v917_v59 }
  0xc5   : > { %928 = vst.msk [vmem:[#allocation2 + $0x168] sm:$0xff] %vm852_vm1, %v919_v60 }
  0xc6   : > { %vm934_vm3 = vcmask 64512   ;;  %v4703_v61 = vmov 0.0  }
  0xc7   : > { %935 = vst.msk [vmem:[#allocation2] sm:$0xff] %vm934_vm3, %v4703_v61 }
  0xc8   : > { %936 = vst.msk [vmem:[#allocation2 + $0x8] sm:$0xff] %vm934_vm3, %v4703_v61 }
  0xc9   : > { %937 = vst.msk [vmem:[#allocation2 + $0x10] sm:$0xff] %vm934_vm3, %v4703_v61 }
  0xca   : > { %938 = vst.msk [vmem:[#allocation2 + $0x18] sm:$0x1] %vm701_vm2, %v4703_v61 }
  0xcb   : > { %939 = vst.msk [vmem:[#allocation2 + $0x20] sm:$0xff] %vm934_vm3, %v4703_v61 }
  0xcc   : > { %940 = vst.msk [vmem:[#allocation2 + $0x28] sm:$0xff] %vm934_vm3, %v4703_v61 }
  0xcd   : > { %941 = vst.msk [vmem:[#allocation2 + $0x30] sm:$0xff] %vm934_vm3, %v4703_v61 }
  0xce   : > { %942 = vst.msk [vmem:[#allocation2 + $0x38] sm:$0x1] %vm701_vm2, %v4703_v61 }
  0xcf PF: > { %p4249_p0 = scmp.ne.s32.totalorder %s4683_s13, 1 }
  0xd1   : > { %946 = sbr.rel (%p4249_p0) target bundleno = 223 (0xdf), region = 68 }
  0xd6   : > { %vm947_vm4 = vcmask 64512   ;;  %v4704_v62 = vmov 0.0  }
  0xd7   : > { %948 = vst.msk [vmem:[#allocation2 + $0x140] sm:$0xff] %vm947_vm4, %v4704_v62 }
  0xd8   : > { %949 = vst.msk [vmem:[#allocation2 + $0x148] sm:$0xff] %vm947_vm4, %v4704_v62 }
  0xd9   : > { %950 = vst.msk [vmem:[#allocation2 + $0x150] sm:$0xff] %vm947_vm4, %v4704_v62 }
  0xda   : > { %951 = vst.msk [vmem:[#allocation2 + $0x158] sm:$0x1] %vm701_vm2, %v4704_v62 }
  0xdb   : > { %952 = vst.msk [vmem:[#allocation2 + $0x160] sm:$0xff] %vm947_vm4, %v4704_v62 }
  0xdc   : > { %953 = vst.msk [vmem:[#allocation2 + $0x168] sm:$0xff] %vm947_vm4, %v4704_v62 }
  0xdd   : > { %954 = vst.msk [vmem:[#allocation2 + $0x170] sm:$0xff] %vm947_vm4, %v4704_v62 }
  0xde   : > { %955 = vst.msk [vmem:[#allocation2 + $0x178] sm:$0x1] %vm701_vm2, %v4704_v62 }
  0xdf PF: > { %v4250_v63 = vld [vmem:[%s6440_s6 + $0x8] sm:$0xff]  ;;  %v976_v0 = vld [vmem:[%s6440_s6] sm:$0xff]  ;;  %vm999_vm5 = vcmask 64512   ;;  %v4291_v4 = vld [vmem:[%s6440_s6 + $0x10] sm:$0xff] }
  0xe0   : > { %v977_v1 = vld [vmem:[#allocation2 + $0x8] sm:$0xff]  ;;  %1075 = vmatpush.msra.mxu0 %v4250_v63  ;;  %4608 = vmatpush.msra.mxu3 %v4250_v63  ;;  %v5025_v5 = vld [vmem:[#allocation2 + $0x71] sm:$0xff]  ;;  %v4333_v53 = vld [vmem:[%s6440_s6 + $0x20] sm:$0xff] }
  0xe1   : > { %v5016_v2 = vld [vmem:[#allocation2 + $0x128] sm:$0xff]  ;;  %1212 = vmatpush.msra.mxu1 %v976_v0  ;;  %4251 = vmatmul.msk.f32.vlgmr.msra.gmra.mxu0 %vm999_vm5, %v977_v1  ;;  %v978_v6 = vld [vmem:[#allocation2 + $0x10] sm:$0xff]  ;;  %v4312_v21 = vld [vmem:[%s6440_s6 + $0x18] sm:$0xff] }
  0xe2   : > { %v956_v3 = vld [vmem:[#allocation2 + $0x7] sm:$0xff]  ;;  %4269 = vmatmul.msk.f32.vlgmr.msra.gmra.mxu3 %vm999_vm5, %v5016_v2  ;;  %1371 = vmatpush.msrb.mxu0 %v4291_v4  ;;  %v5029_v7 = vld [vmem:[#allocation2 + $0x130] sm:$0xff] }
  0xe3   : > { %4271 = vmatmul.msk.f32.vlgmr.msra.gmra.mxu1 %vm999_vm5, %v956_v3  ;;  %4609 = vmatpush.msrb.mxu3 %v976_v0  ;;  %v957_v8 = vld [vmem:[#allocation2 + $0xf] sm:$0xff]  ;;  %v958_v11 = vld [vmem:[#allocation2 + $0x27] sm:$0xff] }
  0xe4   : > { %4610 = vmatpush.msra.mxu2 %v4291_v4  ;;  %v5035_v9 = vld [vmem:[#allocation2 + $0x89] sm:$0xff]  ;;  %v5048_v13 = vld [vmem:[#allocation2 + $0x91] sm:$0xff]  ;;  %1730 = vmatpush.msra.mxu0 %v4333_v53 }
  0xe5   : > { %4299 = vmatmul.msk.f32.vlgmr.msra.gmra.mxu2 %vm999_vm5, %v5025_v5  ;;  %v5037_v10 = vld [vmem:[#allocation2 + $0x28] sm:$0xff]  ;;  %v5050_v14 = vld [vmem:[#allocation2 + $0x30] sm:$0xff]  ;;  %1551 = vmatpush.msra.mxu3 %v4312_v21  ;;  %v4396_v53 = vld [vmem:[%s6440_s6 + $0x38] sm:$0xff] }
  0xe6   : > { %v5041_v12 = vld [vmem:[#allocation2 + $0xcf] sm:$0xff]  ;;  %v5054_v16 = vld [vmem:[#allocation2 + $0xe7] sm:$0xff] }
  0xe7   : > { %v959_v15 = vld [vmem:[#allocation2 + $0x2f] sm:$0xff]  ;;  %v5067_v19 = vld [vmem:[#allocation2 + $0x47] sm:$0xff] }
  0xe8   : > { %v5061_v17 = vld [vmem:[#allocation2 + $0xa9] sm:$0xff]  ;;  %v5080_v22 = vld [vmem:[#allocation2 + $0xb1] sm:$0xff] }
  0xe9   : > { %4252 = vmatmul.msk.f32.gmra.mxu0 %vm999_vm5, %v978_v6  ;;  %v5063_v18 = vld [vmem:[#allocation2 + $0x48] sm:$0xff]  ;;  %v5082_v23 = vld [vmem:[#allocation2 + $0x50] sm:$0xff] }
  0xea   : > { %4270 = vmatmul.msk.f32.gmra.mxu3 %vm999_vm5, %v5029_v7  ;;  %v5069_v20 = vld [vmem:[#allocation2 + $0xef] sm:$0xff]  ;;  %v5088_v25 = vld [vmem:[#allocation2 + $0x107] sm:$0xff] }
  0xeb   : > { %4272 = vmatmul.msk.f32.gmra.mxu1 %vm999_vm5, %v957_v8  ;;  %v5086_v24 = vld [vmem:[#allocation2 + $0x4f] sm:$0xff]  ;;  %v5102_v28 = vld [vmem:[#allocation2 + $0x67] sm:$0xff] }
  0xec   : > { %v5096_v26 = vld [vmem:[#allocation2 + $0xc9] sm:$0xff]  ;;  %v5112_v30 = vld [vmem:[#allocation2 + $0xd1] sm:$0xff] }
  0xed   : > { %4300 = vmatmul.msk.f32.gmra.mxu2 %vm999_vm5, %v5035_v9  ;;  %v5098_v27 = vld [vmem:[#allocation2 + $0x68] sm:$0xff]  ;;  %v5114_v31 = vld [vmem:[#allocation2 + $0x70] sm:$0xff] }
  0xee   : > { %v5104_v29 = vld [vmem:[#allocation2 + $0x10f] sm:$0xff]  ;;  %v5120_v33 = vld [vmem:[#allocation2 + $0x127] sm:$0xff] }
  0xef   : > { %v5118_v32 = vld [vmem:[#allocation2 + $0x6f] sm:$0xff]  ;;  %v5134_v36 = vld [vmem:[#allocation2 + $0x87] sm:$0xff] }
  0xf0   : > { %v5128_v34 = vld [vmem:[#allocation2 + $0xe9] sm:$0xff]  ;;  %v5144_v38 = vld [vmem:[#allocation2 + $0xf1] sm:$0xff] }
  0xf1   : > { %4253 = vmatmul.msk.f32.gmra.mxu0 %vm999_vm5, %v5037_v10  ;;  %v5130_v35 = vld [vmem:[#allocation2 + $0x88] sm:$0xff]  ;;  %v5146_v39 = vld [vmem:[#allocation2 + $0x90] sm:$0xff] }
  0xf2   : > { %4284 = vmatmul.msk.f32.vlgmr.msrb.gmra.mxu3 %vm999_vm5, %v5041_v12  ;;  %v5136_v37 = vld [vmem:[#allocation2 + $0x12f] sm:$0xff]  ;;  %v5163_v43 = vld [vmem:[#allocation2 + $0xa7] sm:$0xff] }
  0xf3   : > { %4273 = vmatmul.msk.f32.gmra.mxu1 %vm999_vm5, %v958_v11  ;;  %v5150_v40 = vld [vmem:[#allocation2 + $0x8f] sm:$0xff]  ;;  %v5190_v49 = vld [vmem:[#allocation2 + $0xc7] sm:$0xff]  ;;  %2267 = vmatpush.msrb.mxu3 %v4396_v53 }
  0xf4   : > { %v5157_v41 = vld [vmem:[#allocation2 + $0x109] sm:$0xff]  ;;  %v5170_v44 = vld [vmem:[#allocation2 + $0x111] sm:$0xff]  ;;  %v4417_v53 = vld [vmem:[%s6440_s6 + $0x40] sm:$0xff] }
  0xf5   : > { %4301 = vmatmul.msk.f32.gmra.mxu2 %vm999_vm5, %v5048_v13  ;;  %v5159_v42 = vld [vmem:[#allocation2 + $0xa8] sm:$0xff]  ;;  %v5172_v45 = vld [vmem:[#allocation2 + $0xb0] sm:$0xff] }
  0xf6   : > { %v5176_v46 = vld [vmem:[#allocation2 + $0xaf] sm:$0xff] }
  0xf7   : > { %v5184_v47 = vld [vmem:[#allocation2 + $0x129] sm:$0xff]  ;;  %v5198_v50 = vld [vmem:[#allocation2 + $0x131] sm:$0xff] }
  0xf8   : > { %v5186_v48 = vld [vmem:[#allocation2 + $0xc8] sm:$0xff]  ;;  %v5200_v51 = vld [vmem:[#allocation2 + $0xd0] sm:$0xff] }
  0xf9   : > { %4254 = vmatmul.msk.f32.gmra.mxu0 %vm999_vm5, %v5050_v14  ;;  %v5208_v52 = vld [vmem:[#allocation2 + $0xe8] sm:$0xff]  ;;  %v5217_v54 = vld [vmem:[#allocation2 + $0xf0] sm:$0xff] }
  0xfa   : > { %4285 = vmatmul.msk.f32.gmra.mxu3 %vm999_vm5, %v5054_v16  ;;  %v5225_v56 = vld [vmem:[#allocation2 + $0x108] sm:$0xff]  ;;  %v5233_v59 = vld [vmem:[#allocation2 + $0x110] sm:$0xff] }
  0xfb   : > { %4274 = vmatmul.msk.f32.gmra.mxu1 %vm999_vm5, %v959_v15  ;;  %v1274_v63 = vld [vmem:[#allocation2 + $0x9] sm:$0xff]  ;;  %v1275_v4 = vld [vmem:[#allocation2 + $0x11] sm:$0xff] }
  0xfd   : > { %4302 = vmatmul.msk.f32.gmra.mxu2 %vm999_vm5, %v5061_v17 }
 0x101   : > { %4255 = vmatmul.msk.f32.gmra.mxu0 %vm999_vm5, %v5063_v18 }
 0x102   : > { %4286 = vmatmul.msk.f32.gmra.mxu3 %vm999_vm5, %v5069_v20 }
 0x103   : > { %4275 = vmatmul.msk.f32.gmra.mxu1 %vm999_vm5, %v5067_v19 }
 0x105   : > { %4303 = vmatmul.msk.f32.gmra.mxu2 %vm999_vm5, %v5080_v22 }
 0x109   : > { %4256 = vmatmul.msk.f32.gmra.mxu0 %vm999_vm5, %v5082_v23 }
 0x10a   : > { %4287 = vmatmul.msk.f32.gmra.mxu3 %vm999_vm5, %v5088_v25 }
 0x10b   : > { %4276 = vmatmul.msk.f32.gmra.mxu1 %vm999_vm5, %v5086_v24 }
 0x10d   : > { %4304 = vmatmul.msk.f32.gmra.mxu2 %vm999_vm5, %v5096_v26 }
 0x111   : > { %4257 = vmatmul.msk.f32.gmra.mxu0 %vm999_vm5, %v5098_v27 }
 0x112   : > { %4288 = vmatmul.msk.f32.gmra.mxu3 %vm999_vm5, %v5104_v29 }
 0x113   : > { %4277 = vmatmul.msk.f32.gmra.mxu1 %vm999_vm5, %v5102_v28 }
 0x115   : > { %4305 = vmatmul.msk.f32.gmra.mxu2 %vm999_vm5, %v5112_v30 }
 0x119   : > { %4258 = vmatmul.msk.f32.gmra.mxu0 %vm999_vm5, %v5114_v31 }
 0x11a   : > { %4289 = vmatmul.msk.f32.gmra.mxu3 %vm999_vm5, %v5120_v33 }
 0x11b   : > { %4278 = vmatmul.msk.f32.gmra.mxu1 %vm999_vm5, %v5118_v32 }
 0x11d   : > { %4306 = vmatmul.msk.f32.gmra.mxu2 %vm999_vm5, %v5128_v34 }
 0x121   : > { %4259 = vmatmul.msk.f32.gmra.mxu0 %vm999_vm5, %v5130_v35 }
 0x122   : > { %4290 = vmatmul.msk.f32.gmra.mxu3 %vm999_vm5, %v5136_v37 }
 0x123   : > { %4279 = vmatmul.msk.f32.gmra.mxu1 %vm999_vm5, %v5134_v36 }
 0x125   : > { %4307 = vmatmul.msk.f32.gmra.mxu2 %vm999_vm5, %v5144_v38 }
 0x129   : > { %4260 = vmatmul.msk.f32.gmra.mxu0 %vm999_vm5, %v5146_v39 }
 0x12a   : > { %4313 = vmatmul.msk.f32.vlgmr.msra.gmra.mxu3 %vm999_vm5, %v958_v11 }
 0x12b   : > { %4280 = vmatmul.msk.f32.gmra.mxu1 %vm999_vm5, %v5150_v40 }
 0x12d   : > { %4308 = vmatmul.msk.f32.gmra.mxu2 %vm999_vm5, %v5157_v41 }
 0x131   : > { %4261 = vmatmul.msk.f32.gmra.mxu0 %vm999_vm5, %v5159_v42 }
 0x132   : > { %4314 = vmatmul.msk.f32.gmra.mxu3 %vm999_vm5, %v959_v15  ;;  %v1276_v15 = vld [vmem:[#allocation2 + $0x29] sm:$0xff] }
 0x133   : > { %4281 = vmatmul.msk.f32.gmra.mxu1 %vm999_vm5, %v5163_v43 }
 0x135   : > { %4309 = vmatmul.msk.f32.gmra.mxu2 %vm999_vm5, %v5170_v44 }
 0x139   : > { %4262 = vmatmul.msk.f32.gmra.mxu0 %vm999_vm5, %v5172_v45 }
 0x13a   : > { %4315 = vmatmul.msk.f32.gmra.mxu3 %vm999_vm5, %v5067_v19 }
 0x13b   : > { %4282 = vmatmul.msk.f32.gmra.mxu1 %vm999_vm5, %v5176_v46 }
 0x13d   : > { %4310 = vmatmul.msk.f32.gmra.mxu2 %vm999_vm5, %v5184_v47 }
 0x141   : > { %4263 = vmatmul.msk.f32.gmra.mxu0 %vm999_vm5, %v5186_v48 }
 0x142   : > { %4316 = vmatmul.msk.f32.gmra.mxu3 %vm999_vm5, %v5086_v24 }
 0x143   : > { %4283 = vmatmul.msk.f32.gmra.mxu1 %vm999_vm5, %v5190_v49 }
 0x145   : > { %4311 = vmatmul.msk.f32.gmra.mxu2 %vm999_vm5, %v5198_v50 }
 0x149   : > { %4264 = vmatmul.msk.f32.gmra.mxu0 %vm999_vm5, %v5200_v51 }
 0x14a   : > { %4317 = vmatmul.msk.f32.gmra.mxu3 %vm999_vm5, %v5102_v28 }
 0x151   : > { %4265 = vmatmul.msk.f32.gmra.mxu0 %vm999_vm5, %v5208_v52 }
 0x152   : > { %4318 = vmatmul.msk.f32.gmra.mxu3 %vm999_vm5, %v5118_v32 }
 0x159   : > { %4266 = vmatmul.msk.f32.gmra.mxu0 %vm999_vm5, %v5217_v54 }
 0x15a   : > { %4319 = vmatmul.msk.f32.gmra.mxu3 %vm999_vm5, %v5134_v36 }
 0x15e   : > { %v5223_v55 = vpop.f32.mrf.mxu0 }
 0x161   : > { %4267 = vmatmul.msk.f32.gmra.mxu0 %vm999_vm5, %v5225_v56 }
 0x162   : > { %4320 = vmatmul.msk.f32.gmra.mxu3 %vm999_vm5, %v5150_v40 }
 0x165   : > { %v1131_v57 = vpop.f32.mrf.mxu3 }
 0x166   : > { %v5231_v58 = vpop.f32.mrf.mxu0 }
 0x168   : > { %v5237_v60 = vpop.f32.mrf.mxu2 }
 0x169   : > { %4268 = vmatmul.msk.f32.gmra.mxu0 %vm999_vm5, %v5233_v59  ;;  %6451 = vst [vmem:[#allocation4_spill] sm:$0xff] %v5237_v60  ;;  %v5296_v60 = vld [vmem:[#allocation2 + $0x49] sm:$0xff] }
 0x16a   : > { %4321 = vmatmul.msk.f32.gmra.mxu3 %vm999_vm5, %v5163_v43 }
 0x16d   : > { %v5241_v61 = vpop.f32.mrf.mxu3 }
 0x16e   : > { %v5243_v62 = vpop.f32.mrf.mxu0 }
 0x16f   : > { %6452 = vst [vmem:[#allocation5_spill] sm:$0xff] %v5243_v62 }
 0x170   : > { %v5246_v0 = vpop.f32.mrf.mxu2 }
 0x171   : > { %4292 = vmatmul.msk.f32.vlgmr.msrb.gmra.mxu0 %vm999_vm5, %v1274_v63  ;;  %6453 = vst [vmem:[#allocation6_spill] sm:$0xff] %v5246_v0 }
 0x172   : > { %4322 = vmatmul.msk.f32.gmra.mxu3 %vm999_vm5, %v5176_v46  ;;  %2446 = vmatpush.msrb.mxu0 %v4417_v53  ;;  %v5313_v53 = vld [vmem:[#allocation2 + $0x51] sm:$0xff] }
 0x175   : > { %v5250_v1 = vpop.f32.mrf.mxu3 }
 0x176   : > { %6454 = vst [vmem:[#allocation7_spill] sm:$0xff] %v5250_v1  ;;  %v5252_v3 = vpop.f32.mrf.mxu0  ;;  %v4375_v1 = vld [vmem:[%s6440_s6 + $0x30] sm:$0xff] }
 0x177   : > { %6455 = vst [vmem:[#allocation8_spill] sm:$0xff] %v5252_v3  ;;  %2088 = vmatpush.msrb.mxu2 %v4375_v1  ;;  %v5329_v3 = vld [vmem:[#allocation2 + $0x69] sm:$0xff] }
 0x178   : > { %v5255_v6 = vpop.f32.mrf.mxu2  ;;  %4376 = vmatmul.msk.f32.vlgmr.msrb.gmra.mxu2 %vm999_vm5, %v5067_v19 }
 0x179   : > { %4293 = vmatmul.msk.f32.gmra.mxu0 %vm999_vm5, %v1275_v4 }
 0x17a   : > { %4323 = vmatmul.msk.f32.gmra.mxu3 %vm999_vm5, %v5190_v49 }
 0x17d   : > { %v5259_v8 = vpop.f32.mrf.mxu3 }
 0x17e   : > { %6456 = vst [vmem:[#allocation9_spill] sm:$0xff] %v5259_v8  ;;  %v5261_v11 = vpop.f32.mrf.mxu0  ;;  %v1277_v8 = vld [vmem:[#allocation2 + $0x31] sm:$0xff] }
 0x17f   : > { %6457 = vst [vmem:[#allocation10_spill] sm:$0xff] %v5261_v11 }
 0x180   : > { %v5264_v21 = vpop.f32.mrf.mxu2  ;;  %4377 = vmatmul.msk.f32.gmra.mxu2 %vm999_vm5, %v5086_v24 }
 0x181   : > { %4294 = vmatmul.msk.f32.gmra.mxu0 %vm999_vm5, %v1276_v15 }
 0x182   : > { %4324 = vmatmul.msk.f32.gmra.mxu3 %vm999_vm5, %v5041_v12 }
 0x185   : > { %v5271_v63 = vpop.f32.mrf.mxu3 }
 0x186   : > { %6458 = vst [vmem:[#allocation11_spill] sm:$0xff] %v5271_v63  ;;  %v5273_v4 = vpop.f32.mrf.mxu0  ;;  %v4354_v63 = vld [vmem:[%s6440_s6 + $0x28] sm:$0xff] }
 0x187   : > { %6459 = vst [vmem:[#allocation12_spill] sm:$0xff] %v5273_v4  ;;  %1909 = vmatpush.msrb.mxu1 %v4354_v63  ;;  %v5298_v4 = vpop.f32.mrf.mxu1 }
 0x188   : > { %v5281_v0 = vpop.f32.mrf.mxu2  ;;  %4355 = vmatmul.msk.f32.vlgmr.msrb.gmra.mxu1 %vm999_vm5, %v1276_v15  ;;  %4378 = vmatmul.msk.f32.gmra.mxu2 %vm999_vm5, %v5102_v28 }
 0x189   : > { %4295 = vmatmul.msk.f32.gmra.mxu0 %vm999_vm5, %v1277_v8 }
 0x18a   : > { %4325 = vmatmul.msk.f32.gmra.mxu3 %vm999_vm5, %v5054_v16 }
 0x18d   : > { %v5292_v19 = vpop.f32.mrf.mxu3 }
 0x18e   : > { %v5294_v1 = vpop.f32.mrf.mxu0 }
 0x18f   : > { %6460 = vst [vmem:[#allocation13_spill] sm:$0xff] %v5294_v1  ;;  %v5317_v24 = vpop.f32.mrf.mxu1 }
 0x190   : > { %v5304_v11 = vpop.f32.mrf.mxu2  ;;  %4356 = vmatmul.msk.f32.gmra.mxu1 %vm999_vm5, %v1277_v8  ;;  %6463 = vst [vmem:[#allocation16_spill] sm:$0xff] %v5317_v24  ;;  %4379 = vmatmul.msk.f32.gmra.mxu2 %vm999_vm5, %v5118_v32 }
 0x191   : > { %4296 = vmatmul.msk.f32.gmra.mxu0 %vm999_vm5, %v5296_v60  ;;  %6461 = vst [vmem:[#allocation14_spill] sm:$0xff] %v5304_v11 }
 0x192   : > { %4326 = vmatmul.msk.f32.gmra.mxu3 %vm999_vm5, %v5069_v20 }
 0x195   : > { %v5309_v15 = vpop.f32.mrf.mxu3 }
 0x196   : > { %v5311_v63 = vpop.f32.mrf.mxu0 }
 0x197   : > { %6462 = vst [vmem:[#allocation15_spill] sm:$0xff] %v5311_v63 }
 0x198   : > { %v5321_v11 = vpop.f32.mrf.mxu2  ;;  %4357 = vmatmul.msk.f32.gmra.mxu1 %vm999_vm5, %v5296_v60  ;;  %4380 = vmatmul.msk.f32.gmra.mxu2 %vm999_vm5, %v5134_v36 }
 0x199   : > { %4297 = vmatmul.msk.f32.gmra.mxu0 %vm999_vm5, %v5313_v53  ;;  %6464 = vst [vmem:[#allocation17_spill] sm:$0xff] %v5321_v11  ;;  %v5339_v11 = vpop.f32.mrf.mxu1 }
 0x19a   : > { %4327 = vmatmul.msk.f32.gmra.mxu3 %vm999_vm5, %v5088_v25  ;;  %6467 = vst [vmem:[#allocation20_spill] sm:$0xff] %v5339_v11  ;;  %v5380_v11 = vld [vmem:[#allocation2 + $0x147] sm:$0xff] }
 0x19d   : > { %v1268_v8 = vpop.f32.mrf.mxu3 }
 0x19e   : > { %v1269_v63 = vadd.f32 %v1268_v8, %v1131_v57  ;;  %v5327_v1 = vpop.f32.mrf.mxu0 }
 0x19f   : > { %6465 = vst [vmem:[#allocation18_spill] sm:$0xff] %v5327_v1 }
 0x1a0   : > { %v5335_v28 = vpop.f32.mrf.mxu2  ;;  %4358 = vmatmul.msk.f32.gmra.mxu1 %vm999_vm5, %v5313_v53  ;;  %4381 = vmatmul.msk.f32.gmra.mxu2 %vm999_vm5, %v5150_v40 }
 0x1a1   : > { %4298 = vmatmul.msk.f32.gmra.mxu0 %vm999_vm5, %v5329_v3  ;;  %6466 = vst [vmem:[#allocation19_spill] sm:$0xff] %v5335_v28  ;;  %v5358_v28 = vpop.f32.mrf.mxu1 }
 0x1a2   : > { %4328 = vmatmul.msk.f32.gmra.mxu3 %vm999_vm5, %v5104_v29  ;;  %6469 = vst [vmem:[#allocation22_spill] sm:$0xff] %v5358_v28 }
 0x1a5   : > { %v1271_v57 = vpop.f32.mrf.mxu3 }
 0x1a6   : > { %v5344_v8 = vadd.f32 %v1271_v57, %v5241_v61  ;;  %v5346_v1 = vpop.f32.mrf.mxu0 }
 0x1a8   : > { %v5352_v32 = vpop.f32.mrf.mxu2  ;;  %4359 = vmatmul.msk.f32.gmra.mxu1 %vm999_vm5, %v5329_v3  ;;  %4382 = vmatmul.msk.f32.gmra.mxu2 %vm999_vm5, %v5163_v43 }
 0x1a9   : > { %4334 = vmatmul.msk.f32.vlgmr.msra.gmra.mxu0 %vm999_vm5, %v5037_v10  ;;  %6468 = vst [vmem:[#allocation21_spill] sm:$0xff] %v5352_v32  ;;  %v5378_v28 = vpop.f32.mrf.mxu1 }
 0x1aa   : > { %4329 = vmatmul.msk.f32.gmra.mxu3 %vm999_vm5, %v5120_v33  ;;  %6471 = vst [vmem:[#allocation24_spill] sm:$0xff] %v5378_v28  ;;  %v5396_v28 = vld [vmem:[#allocation2 + $0x14f] sm:$0xff] }
 0x1ad   : > { %v5360_v61 = vpop.f32.mrf.mxu3 }
 0x1ae   : > { %v5362_v57 = vpop.f32.mrf.mxu0 }
 0x1b0   : > { %v5368_v10 = vpop.f32.mrf.mxu2  ;;  %4360 = vmatmul.msk.f32.gmra.mxu1 %vm999_vm5, %v5025_v5  ;;  %4383 = vmatmul.msk.f32.gmra.mxu2 %vm999_vm5, %v5176_v46 }
 0x1b1   : > { %4335 = vmatmul.msk.f32.gmra.mxu0 %vm999_vm5, %v5050_v14  ;;  %v5400_v43 = vpop.f32.mrf.mxu1 }
 0x1b2   : > { %4330 = vmatmul.msk.f32.gmra.mxu3 %vm999_vm5, %v5136_v37 }
 0x1b5   : > { %v5374_v36 = vpop.f32.mrf.mxu3 }
 0x1b6   : > { %6470 = vst [vmem:[#allocation23_spill] sm:$0xff] %v5374_v36  ;;  %v5376_v32 = vpop.f32.mrf.mxu0 }
 0x1b8   : > { %v5386_v14 = vpop.f32.mrf.mxu2  ;;  %4361 = vmatmul.msk.f32.gmra.mxu1 %vm999_vm5, %v5035_v9  ;;  %4384 = vmatmul.msk.f32.gmra.mxu2 %vm999_vm5, %v5190_v49 }
 0x1b9   : > { %4336 = vmatmul.msk.f32.gmra.mxu0 %vm999_vm5, %v5063_v18  ;;  %v5420_v46 = vpop.f32.mrf.mxu1 }
 0x1ba   : > { %4331 = vmatmul.msk.f32.gmra.mxu3 %vm999_vm5, %v5380_v11 }
 0x1bd   : > { %v5392_v40 = vpop.f32.mrf.mxu3 }
 0x1be   : > { %6472 = vst [vmem:[#allocation25_spill] sm:$0xff] %v5392_v40  ;;  %v5394_v62 = vpop.f32.mrf.mxu0 }
 0x1bf   : > { %6473 = vst [vmem:[#allocation26_spill] sm:$0xff] %v5394_v62 }
 0x1c0   : > { %v1427_v36 = vpop.f32.mrf.mxu2  ;;  %4362 = vmatmul.msk.f32.gmra.mxu1 %vm999_vm5, %v5048_v13  ;;  %4385 = vmatmul.msk.f32.gmra.mxu2 %vm999_vm5, %v5041_v12 }
 0x1c1   : > { %4337 = vmatmul.msk.f32.gmra.mxu0 %vm999_vm5, %v5082_v23  ;;  %v5406_v24 = vadd.f32 %v1427_v36, %v1269_v63 }
 0x1c2   : > { %4332 = vmatmul.msk.f32.gmra.mxu3 %vm999_vm5, %v5396_v28 }
 0x1c5   : > { %v5410_v62 = vpop.f32.mrf.mxu3 }
 0x1c6   : > { %v5412_v40 = vpop.f32.mrf.mxu0 }
 0x1c7   : > { %6474 = vst [vmem:[#allocation27_spill] sm:$0xff] %v5412_v40 }
 0x1c8   : > { %4363 = vmatmul.msk.f32.gmra.mxu1 %vm999_vm5, %v5061_v17  ;;  %4386 = vmatmul.msk.f32.gmra.mxu2 %vm999_vm5, %v5054_v16 }
 0x1c9   : > { %4338 = vmatmul.msk.f32.gmra.mxu0 %vm999_vm5, %v5098_v27 }
 0x1ca   : > { %4397 = vmatmul.msk.f32.vlgmr.msrb.gmra.mxu3 %vm999_vm5, %v5063_v18  ;;  %v5436_v18 = vpop.f32.mrf.mxu1 }
 0x1cb   : > { %6476 = vst [vmem:[#allocation29_spill] sm:$0xff] %v5436_v18 }
 0x1cd   : > { %v5424_v63 = vpop.f32.mrf.mxu3 }
 0x1ce   : > { %v5426_v36 = vpop.f32.mrf.mxu0 }
 0x1cf   : > { %6475 = vst [vmem:[#allocation28_spill] sm:$0xff] %v5426_v36 }
 0x1d0   : > { %4364 = vmatmul.msk.f32.gmra.mxu1 %vm999_vm5, %v5080_v22  ;;  %4387 = vmatmul.msk.f32.gmra.mxu2 %vm999_vm5, %v5069_v20 }
 0x1d1   : > { %4339 = vmatmul.msk.f32.gmra.mxu0 %vm999_vm5, %v5114_v31 }
 0x1d2   : > { %4398 = vmatmul.msk.f32.gmra.mxu3 %vm999_vm5, %v5082_v23  ;;  %v5454_v36 = vpop.f32.mrf.mxu1 }
 0x1d3   : > { %6478 = vst [vmem:[#allocation31_spill] sm:$0xff] %v5454_v36 }
 0x1d5   : > { %v5438_v49 = vpop.f32.mrf.mxu3 }
 0x1d6   : > { %v5440_v40 = vpop.f32.mrf.mxu0 }
 0x1d7   : > { %6477 = vst [vmem:[#allocation30_spill] sm:$0xff] %v5440_v40 }
 0x1d8   : > { %4365 = vmatmul.msk.f32.gmra.mxu1 %vm999_vm5, %v5096_v26  ;;  %4388 = vmatmul.msk.f32.gmra.mxu2 %vm999_vm5, %v5088_v25 }
 0x1d9   : > { %4340 = vmatmul.msk.f32.gmra.mxu0 %vm999_vm5, %v5130_v35 }
 0x1da   : > { %4399 = vmatmul.msk.f32.gmra.mxu3 %vm999_vm5, %v5098_v27  ;;  %v1241_v40 = vpop.f32.mrf.mxu1 }
 0x1db   : > { %v1242_v36 = vadd.f32 %v1241_v40, %v5346_v1 }
 0x1dd   : > { %v5450_v12 = vpop.f32.mrf.mxu3 }
 0x1de   : > { %v5452_v23 = vpop.f32.mrf.mxu0 }
 0x1e0   : > { %4366 = vmatmul.msk.f32.gmra.mxu1 %vm999_vm5, %v5112_v30  ;;  %4389 = vmatmul.msk.f32.gmra.mxu2 %vm999_vm5, %v5104_v29 }
 0x1e1   : > { %4341 = vmatmul.msk.f32.gmra.mxu0 %vm999_vm5, %v5146_v39 }
 0x1e2   : > { %4400 = vmatmul.msk.f32.gmra.mxu3 %vm999_vm5, %v5114_v31  ;;  %v1244_v25 = vpop.f32.mrf.mxu1 }
 0x1e3   : > { %v1245_v1 = vadd.f32 %v1244_v25, %v5362_v57 }
 0x1e5   : > { %v5464_v16 = vpop.f32.mrf.mxu3  ;;  %v1443_v29 = vadd.f32 %v5264_v21, %v1245_v1 }
 0x1e6   : > { %6479 = vst [vmem:[#allocation32_spill] sm:$0xff] %v5464_v16  ;;  %v5466_v27 = vpop.f32.mrf.mxu0 }
 0x1e7   : > { %v1266_v1 = vadd.f32 %v5309_v15, %v5466_v27 }
 0x1e8   : > { %4367 = vmatmul.msk.f32.gmra.mxu1 %vm999_vm5, %v5128_v34  ;;  %4390 = vmatmul.msk.f32.gmra.mxu2 %vm999_vm5, %v5120_v33 }
 0x1e9   : > { %4342 = vmatmul.msk.f32.gmra.mxu0 %vm999_vm5, %v5159_v42 }
 0x1ea   : > { %4401 = vmatmul.msk.f32.gmra.mxu3 %vm999_vm5, %v5130_v35  ;;  %v1442_v35 = vadd.f32 %v5255_v6, %v1242_v36  ;;  %v1263_v36 = vadd.f32 %v5292_v19, %v5452_v23  ;;  %v1450_v19 = vadd.f32 %v5386_v14, %v1266_v1  ;;  %v2360_v1 = vld [vmem:[#allocation2 + $0xf1] sm:$0xff] }
 0x1ed   : > { %v5476_v20 = vpop.f32.mrf.mxu3 }
 0x1ee   : > { %6480 = vst [vmem:[#allocation33_spill] sm:$0xff] %v5476_v20  ;;  %v5478_v31 = vpop.f32.mrf.mxu0 }
 0x1f0   : > { %4368 = vmatmul.msk.f32.gmra.mxu1 %vm999_vm5, %v5144_v38  ;;  %v1247_v38 = vpop.f32.mrf.mxu1  ;;  %4391 = vmatmul.msk.f32.gmra.mxu2 %vm999_vm5, %v5136_v37 }
 0x1f1   : > { %4343 = vmatmul.msk.f32.gmra.mxu0 %vm999_vm5, %v5172_v45  ;;  %v1248_v57 = vadd.f32 %v1247_v38, %v5376_v32 }
 0x1f2   : > { %4402 = vmatmul.msk.f32.gmra.mxu3 %vm999_vm5, %v5146_v39 }
 0x1f3   : > { %v1444_v33 = vadd.f32 %v5281_v0, %v1248_v57  ;;  %v5551_v0 = vld [vmem:[#allocation2 + $0x149] sm:$0xff] }
 0x1f5   : > { %v1580_v20 = vpop.f32.mrf.mxu3 }
 0x1f6   : > { %v5490_v16 = vadd.f32 %v1580_v20, %v1442_v35  ;;  %v5492_v18 = vpop.f32.mrf.mxu0 }
 0x1f8   : > { %4369 = vmatmul.msk.f32.gmra.mxu1 %vm999_vm5, %v5157_v41  ;;  %4392 = vmatmul.msk.f32.gmra.mxu2 %vm999_vm5, %v5380_v11  ;;  %v2010_v11 = vld [vmem:[#allocation2 + $0x16f] sm:$0xff] }
 0x1f9   : > { %4344 = vmatmul.msk.f32.gmra.mxu0 %vm999_vm5, %v5186_v48 }
 0x1fa   : > { %4403 = vmatmul.msk.f32.gmra.mxu3 %vm999_vm5, %v5159_v42 }
 0x1fd   : > { %v1583_v39 = vpop.f32.mrf.mxu3 }
 0x1fe   : > { %v5504_v6 = vadd.f32 %v1583_v39, %v1443_v29  ;;  %v5506_v40 = vpop.f32.mrf.mxu0  ;;  %v1652_v39 = vld [vmem:[#allocation2 + $0x150] sm:$0xff] }
 0x200   : > { %4370 = vmatmul.msk.f32.gmra.mxu1 %vm999_vm5, %v5170_v44  ;;  %4393 = vmatmul.msk.f32.gmra.mxu2 %vm999_vm5, %v5396_v28  ;;  %v5564_v28 = vld [vmem:[#allocation2 + $0x151] sm:$0xff] }
 0x201   : > { %4345 = vmatmul.msk.f32.gmra.mxu0 %vm999_vm5, %v5200_v51 }
 0x202   : > { %4404 = vmatmul.msk.f32.gmra.mxu3 %vm999_vm5, %v5172_v45 }
 0x205   : > { %v1586_v41 = vpop.f32.mrf.mxu3 }
 0x206   : > { %v5518_v42 = vadd.f32 %v1586_v41, %v1444_v33  ;;  %v5520_v21 = vpop.f32.mrf.mxu0 }
 0x208   : > { %4371 = vmatmul.msk.f32.gmra.mxu1 %vm999_vm5, %v5184_v47  ;;  %v2009_v47 = vld [vmem:[#allocation2 + $0x167] sm:$0xff] }
 0x209   : > { %4346 = vmatmul.msk.f32.gmra.mxu0 %vm999_vm5, %v5208_v52  ;;  %4394 = vmatmul.msk.f32.gmra.mxu2 %vm999_vm5, %v2009_v47 }
 0x20a   : > { %4405 = vmatmul.msk.f32.gmra.mxu3 %vm999_vm5, %v5186_v48 }
 0x20d   : > { %v5530_v37 = vpop.f32.mrf.mxu3 }
 0x20e   : > { %v5532_v44 = vpop.f32.mrf.mxu0 }
 0x210   : > { %4372 = vmatmul.msk.f32.gmra.mxu1 %vm999_vm5, %v5198_v50 }
 0x211   : > { %4347 = vmatmul.msk.f32.gmra.mxu0 %vm999_vm5, %v5217_v54  ;;  %4395 = vmatmul.msk.f32.gmra.mxu2 %vm999_vm5, %v2010_v11 }
 0x212   : > { %4406 = vmatmul.msk.f32.gmra.mxu3 %vm999_vm5, %v5200_v51 }
 0x215   : > { %v5542_v45 = vpop.f32.mrf.mxu3 }
 0x216   : > { %v5544_v48 = vpop.f32.mrf.mxu0 }
 0x218   : > { %4373 = vmatmul.msk.f32.gmra.mxu1 %vm999_vm5, %v5551_v0 }
 0x219   : > { %4348 = vmatmul.msk.f32.gmra.mxu0 %vm999_vm5, %v5225_v56 }
 0x21a   : > { %4407 = vmatmul.msk.f32.gmra.mxu3 %vm999_vm5, %v5208_v52 }
 0x21d   : > { %v5555_v51 = vpop.f32.mrf.mxu3 }
 0x21e   : > { %v5557_v50 = vpop.f32.mrf.mxu0 }
 0x220   : > { %4374 = vmatmul.msk.f32.gmra.mxu1 %vm999_vm5, %v5564_v28 }
 0x221   : > { %4349 = vmatmul.msk.f32.gmra.mxu0 %vm999_vm5, %v5233_v59 }
 0x222   : > { %4408 = vmatmul.msk.f32.gmra.mxu3 %vm999_vm5, %v5217_v54  ;;  %v1449_v54 = vadd.f32 %v5368_v10, %v1263_v36  ;;  %v1651_v10 = vld [vmem:[#allocation2 + $0x148] sm:$0xff] }
 0x225   : > { %v5568_v52 = vpop.f32.mrf.mxu3 }
 0x226   : > { %6481 = vst [vmem:[#allocation34_spill] sm:$0xff] %v5568_v52  ;;  %v5570_v32 = vpop.f32.mrf.mxu0 }
 0x229   : > { %4350 = vmatmul.msk.f32.gmra.mxu0 %vm999_vm5, %v5016_v2 }
 0x22a   : > { %4409 = vmatmul.msk.f32.gmra.mxu3 %vm999_vm5, %v5225_v56 }
 0x22d   : > { %v1601_v20 = vpop.f32.mrf.mxu3 }
 0x22e   : > { %v1629_v25 = vadd.f32 %v1601_v20, %v1449_v54  ;;  %v5579_v35 = vpop.f32.mrf.mxu0 }
 0x231   : > { %4351 = vmatmul.msk.f32.gmra.mxu0 %vm999_vm5, %v5029_v7 }
 0x232   : > { %4410 = vmatmul.msk.f32.gmra.mxu3 %vm999_vm5, %v5233_v59  ;;  %v1430_v59 = vpop.f32.mrf.mxu2 }
 0x233   : > { %v1452_v14 = vadd.f32 %v1430_v59, %v5344_v8 }
 0x235   : > { %v1604_v23 = vpop.f32.mrf.mxu3 }
 0x236   : > { %v1630_v29 = vadd.f32 %v1604_v23, %v1450_v19  ;;  %v5588_v56 = vpop.f32.mrf.mxu0 }
 0x239   : > { %4352 = vmatmul.msk.f32.gmra.mxu0 %vm999_vm5, %v1651_v10 }
 0x23a   : > { %4411 = vmatmul.msk.f32.gmra.mxu3 %vm999_vm5, %v5016_v2 }
 0x23d   : > { %v1607_v38 = vpop.f32.mrf.mxu3 }
 0x23e   : > { %v5594_v15 = vadd.f32 %v1607_v38, %v5406_v24  ;;  %v5596_v27 = vpop.f32.mrf.mxu0  ;;  %v2188_v24 = vld [vmem:[#allocation2 + $0x168] sm:$0xff] }
 0x23f   : > { %v2361_v38 = vld [vmem:[#allocation2 + $0x109] sm:$0xff] }
 0x241   : > { %4353 = vmatmul.msk.f32.gmra.mxu0 %vm999_vm5, %v1652_v39 }
 0x242   : > { %4412 = vmatmul.msk.f32.gmra.mxu3 %vm999_vm5, %v5029_v7 }
 0x245   : > { %v1610_v57 = vpop.f32.mrf.mxu3 }
 0x246   : > { %v5602_v33 = vadd.f32 %v1610_v57, %v1452_v14  ;;  %v5604_v41 = vpop.f32.mrf.mxu0 }
 0x249   : > { %4418 = vmatmul.msk.f32.vlgmr.msrb.gmra.mxu0 %vm999_vm5, %v5296_v60  ;;  %v2189_v60 = vld [vmem:[#allocation2 + $0x170] sm:$0xff] }
 0x24a   : > { %4413 = vmatmul.msk.f32.gmra.mxu3 %vm999_vm5, %v1651_v10 }
 0x24e   : > { %v5609_v2 = vpop.f32.mrf.mxu0 }
 0x251   : > { %4419 = vmatmul.msk.f32.gmra.mxu0 %vm999_vm5, %v5313_v53 }
 0x252   : > { %4414 = vmatmul.msk.f32.gmra.mxu3 %vm999_vm5, %v1652_v39 }
 0x256   : > { %v5614_v7 = vpop.f32.mrf.mxu0 }
 0x259   : > { %4420 = vmatmul.msk.f32.gmra.mxu0 %vm999_vm5, %v5329_v3 }
 0x25a   : > { %4415 = vmatmul.msk.f32.gmra.mxu3 %vm999_vm5, %v2188_v24 }
 0x25e   : > { %v5619_v8 = vpop.f32.mrf.mxu0 }
 0x261   : > { %4421 = vmatmul.msk.f32.gmra.mxu0 %vm999_vm5, %v5025_v5 }
 0x262   : > { %4416 = vmatmul.msk.f32.gmra.mxu3 %vm999_vm5, %v2189_v60  ;;  %v1215_v60 = vadd.f32 %v5298_v4, %v5223_v55 }
 0x266   : > { %v5624_v47 = vpop.f32.mrf.mxu0 }
 0x269   : > { %4422 = vmatmul.msk.f32.gmra.mxu0 %vm999_vm5, %v5035_v9  ;;  %v5644_v9 = vpop.f32.mrf.mxu1 }
 0x26e   : > { %v5628_v53 = vpop.f32.mrf.mxu0 }
 0x271   : > { %4423 = vmatmul.msk.f32.gmra.mxu0 %vm999_vm5, %v5048_v13  ;;  %v1911_v13 = vpop.f32.mrf.mxu1 }
 0x276   : > { %v5632_v3 = vpop.f32.mrf.mxu0 }
 0x279   : > { %4424 = vmatmul.msk.f32.gmra.mxu0 %vm999_vm5, %v5061_v17  ;;  %v2090_v17 = vpop.f32.mrf.mxu2  ;;  %v1914_v19 = vpop.f32.mrf.mxu1 }
 0x27e   : > { %v5636_v11 = vpop.f32.mrf.mxu0 }
 0x281   : > { %4425 = vmatmul.msk.f32.gmra.mxu0 %vm999_vm5, %v5080_v22  ;;  %v2269_v22 = vpop.f32.mrf.mxu3 }
 0x286   : > { %v5640_v5 = vpop.f32.mrf.mxu0 }
 0x289   : > { %4426 = vmatmul.msk.f32.gmra.mxu0 %vm999_vm5, %v5096_v26  ;;  %v2093_v26 = vpop.f32.mrf.mxu2  ;;  %v2272_v23 = vpop.f32.mrf.mxu3 }
 0x28e   : > { %v5646_v36 = vpop.f32.mrf.mxu0 }
 0x291   : > { %4427 = vmatmul.msk.f32.gmra.mxu0 %vm999_vm5, %v5112_v30  ;;  %v1917_v30 = vpop.f32.mrf.mxu1  ;;  %v2096_v59 = vpop.f32.mrf.mxu2 }
 0x292   : > { %v2275_v24 = vpop.f32.mrf.mxu3 }
 0x296   : > { %v5650_v54 = vpop.f32.mrf.mxu0 }
 0x299   : > { %4428 = vmatmul.msk.f32.gmra.mxu0 %vm999_vm5, %v5128_v34  ;;  %v2362_v34 = vld [vmem:[#allocation2 + $0x111] sm:$0xff] }
 0x29e   : > { %v5654_v20 = vpop.f32.mrf.mxu0 }
 0x29f   : > { %6482 = vst [vmem:[#allocation35_spill] sm:$0xff] %v5654_v20  ;;  %v1433_v20 = vadd.f32 %v5478_v31, %v1215_v60 }
 0x2a1   : > { %4429 = vmatmul.msk.f32.gmra.mxu0 %vm999_vm5, %v2360_v1  ;;  %v1920_v1 = vpop.f32.mrf.mxu1 }
 0x2a6   : > { %v1780_v10 = vpop.f32.mrf.mxu0 }
 0x2a7   : > { %v5657_v39 = vadd.f32 %v1780_v10, %v1629_v25  ;;  %v2363_v25 = vld [vmem:[#allocation2 + $0x129] sm:$0xff] }
 0x2a9   : > { %6483 = vst [vmem:[#allocation36_spill] sm:$0xff] %v5657_v39  ;;  %4430 = vmatmul.msk.f32.gmra.mxu0 %vm999_vm5, %v2361_v38  ;;  %v5669_v38 = vpop.f32.mrf.mxu2  ;;  %v1613_v39 = vadd.f32 %v5360_v61, %v1433_v20  ;;  %v5679_v31 = vpop.f32.mrf.mxu1  ;;  %v6487_v61 = vld [vmem:[#allocation23_spill] sm:$0xff] }
 0x2ab   : > { %v1792_v55 = vadd.f32 %v5570_v32, %v1613_v39 }
 0x2ae   : > { %v1783_v14 = vpop.f32.mrf.mxu0 }
 0x2af   : > { %v5660_v57 = vadd.f32 %v1783_v14, %v1630_v29  ;;  %v5673_v29 = vpop.f32.mrf.mxu3  ;;  %v6486_v14 = vld [vmem:[#allocation16_spill] sm:$0xff] }
 0x2b1   : > { %6484 = vst [vmem:[#allocation37_spill] sm:$0xff] %v5660_v57  ;;  %4431 = vmatmul.msk.f32.gmra.mxu0 %vm999_vm5, %v2362_v34  ;;  %v1218_v34 = vadd.f32 %v6486_v14, %v5231_v58  ;;  %v6488_v57 = vld [vmem:[#allocation5_spill] sm:$0xff]  ;;  %v6489_v58 = vld [vmem:[#allocation20_spill] sm:$0xff] }
 0x2b2   : > { %v1221_v14 = vadd.f32 %v6489_v58, %v6488_v57  ;;  %v5702_v57 = vld [vmem:[%s6441_s7 + $0x1] ss:$0 sm:$0xff] }
 0x2b3   : > { %v1434_v4 = vadd.f32 %v5492_v18, %v1218_v34 }
 0x2b4   : > { %v1435_v34 = vadd.f32 %v5506_v40, %v1221_v14 }
 0x2b5   : > { %v1614_v20 = vadd.f32 %v6487_v61, %v1434_v4 }
 0x2b6   : > { %v1786_v52 = vpop.f32.mrf.mxu0 }
 0x2b7   : > { %v5667_v10 = vadd.f32 %v1786_v52, %v5594_v15  ;;  %v2364_v52 = vld [vmem:[#allocation2 + $0x131] sm:$0xff]  ;;  %v1971_v15 = vadd.f32 %v1911_v13, %v1792_v55  ;;  %v1793_v18 = vadd.f32 %v5579_v35, %v1614_v20  ;;  %v5691_v39 = vpop.f32.mrf.mxu3  ;;  %v6490_v35 = vld [vmem:[#allocation25_spill] sm:$0xff] }
 0x2b9   : > { %6485 = vst [vmem:[#allocation38_spill] sm:$0xff] %v5667_v10  ;;  %4432 = vmatmul.msk.f32.gmra.mxu0 %vm999_vm5, %v2363_v25  ;;  %v5686_v25 = vpop.f32.mrf.mxu2  ;;  %v2150_v32 = vadd.f32 %v2090_v17, %v1971_v15  ;;  %v1972_v4 = vadd.f32 %v1914_v19, %v1793_v18  ;;  %v5704_v17 = vpop.f32.mrf.mxu1  ;;  %v6492_v15 = vld [vmem:[#allocation22_spill] sm:$0xff] }
 0x2bb   : > { %v2329_v13 = vadd.f32 %v2269_v22, %v2150_v32  ;;  %v6491_v22 = vld [vmem:[#allocation8_spill] sm:$0xff]  ;;  %v2151_v20 = vadd.f32 %v2093_v26, %v1972_v4  ;;  %v6493_v4 = vld [vmem:[#allocation10_spill] sm:$0xff] }
 0x2bc   : > { %v1224_v61 = vadd.f32 %v6492_v15, %v6491_v22 }
 0x2bd   : > { %v2330_v18 = vadd.f32 %v2272_v23, %v2151_v20 }
 0x2be   : > { %v1789_v60 = vpop.f32.mrf.mxu0  ;;  %v1436_v32 = vadd.f32 %v5520_v21, %v1224_v61 }
 0x2bf   : > { %v5682_v10 = vadd.f32 %v1789_v60, %v5602_v33  ;;  %v5697_v33 = vld [vmem:[%s6441_s7] ss:$0 sm:$0xff] }
 0x2c1   : > { %4433 = vmatmul.msk.f32.gmra.mxu0 %vm999_vm5, %v2364_v52  ;;  %v1615_v52 = vadd.f32 %v6490_v35, %v1435_v34  ;;  %v5714_v14 = vpop.f32.mrf.mxu2  ;;  %v5717_v34 = vpop.f32.mrf.mxu3  ;;  %v1616_v35 = vadd.f32 %v5410_v62, %v1436_v32 }
 0x2c3   : > { %v1794_v19 = vadd.f32 %v5588_v56, %v1615_v52  ;;  %v1929_v56 = vpop.f32.mrf.mxu1  ;;  %v6494_v52 = vld [vmem:[#allocation24_spill] sm:$0xff] }
 0x2c4   : > { %v1227_v21 = vadd.f32 %v6494_v52, %v6493_v4 }
 0x2c6   : > { %v2448_v55 = vpop.f32.mrf.mxu0 }
 0x2c7   : > { %v2508_v60 = vadd.f32 %v2448_v55, %v2329_v13 }
 0x2c9   : > { %v2530_v40 = vmul.f32 %v5697_v33, %v2508_v60  ;;  %4434 = vmatmul.msk.f32.gmra.mxu0 %vm999_vm5, %v5551_v0  ;;  %v1973_v60 = vadd.f32 %v1917_v30, %v1794_v19  ;;  %v1437_v30 = vadd.f32 %v5532_v44, %v1227_v21  ;;  %v2108_v20 = vpop.f32.mrf.mxu2  ;;  %v2367_v19 = vld [vmem:[#allocation2 + $0x169] sm:$0xff]  ;;  %v2287_v32 = vpop.f32.mrf.mxu3 }
 0x2cb   : > { %v2552_v58 = vadd.f32 %v5702_v57, %v2530_v40  ;;  %v2152_v23 = vadd.f32 %v2096_v59, %v1973_v60  ;;  %v1795_v40 = vadd.f32 %v5596_v27, %v1616_v35  ;;  %v6495_v27 = vld [vmem:[#allocation12_spill] sm:$0xff] }
 0x2cd   : > { %v2572_v13 = vmax.f32 %v2552_v58, 0.0  ;;  %v2331_v15 = vadd.f32 %v2275_v24, %v2152_v23  ;;  %v1974_v58 = vadd.f32 %v1920_v1, %v1795_v40  ;;  %v1932_v1 = vpop.f32.mrf.mxu1  ;;  %v6496_v23 = vld [vmem:[#allocation13_spill] sm:$0xff] }
 0x2ce   : > { %v2451_v55 = vpop.f32.mrf.mxu0 }
 0x2cf   : > { %2592 = vst.msk [vmem:[#allocation3 + $0x8] sm:$0xff] %vm999_vm5, %v2572_v13  ;;  %v2509_v0 = vadd.f32 %v2451_v55, %v2330_v18  ;;  %v1617_v18 = vadd.f32 %v5424_v63, %v1437_v30  ;;  %v1230_v13 = vadd.f32 %v5400_v43, %v6495_v27  ;;  %v2153_v44 = vadd.f32 %v5669_v38, %v1974_v58 }
 0x2d1   : > { %v2531_v26 = vmul.f32 %v5697_v33, %v2509_v0  ;;  %4435 = vmatmul.msk.f32.gmra.mxu0 %vm999_vm5, %v5564_v28  ;;  %v1796_v24 = vadd.f32 %v5604_v41, %v1617_v18  ;;  %v1438_v60 = vadd.f32 %v5544_v48, %v1230_v13  ;;  %v2332_v0 = vadd.f32 %v5673_v29, %v2153_v44  ;;  %v2111_v43 = vpop.f32.mrf.mxu2  ;;  %v2290_v21 = vpop.f32.mrf.mxu3 }
 0x2d2   : > { %v1233_v48 = vadd.f32 %v5420_v46, %v6496_v23 }
 0x2d3   : > { %v2553_v22 = vadd.f32 %v5702_v57, %v2531_v26  ;;  %v2368_v26 = vld [vmem:[#allocation2 + $0x171] sm:$0xff]  ;;  %v1975_v4 = vadd.f32 %v5679_v31, %v1796_v24  ;;  %v1618_v38 = vadd.f32 %v5438_v49, %v1438_v60  ;;  %v6499_v24 = vld [vmem:[#allocation4_spill] sm:$0xff] }
 0x2d5   : > { %v2573_v61 = vmax.f32 %v2553_v22, 0.0  ;;  %v2154_v29 = vadd.f32 %v5686_v25, %v1975_v4  ;;  %v1797_v40 = vadd.f32 %v5609_v2, %v1618_v38  ;;  %v1439_v22 = vadd.f32 %v5557_v50, %v1233_v48  ;;  %v1935_v49 = vpop.f32.mrf.mxu1  ;;  %v6497_v2 = vld [vmem:[#allocation15_spill] sm:$0xff] }
 0x2d6   : > { %v2454_v62 = vpop.f32.mrf.mxu0 }
 0x2d7   : > { %2593 = vst.msk [vmem:[#allocation3 + $0x10] sm:$0xff] %vm999_vm5, %v2573_v61  ;;  %v2510_v28 = vadd.f32 %v2454_v62, %v2331_v15  ;;  %v2333_v30 = vadd.f32 %v5691_v39, %v2154_v29  ;;  %v1976_v62 = vadd.f32 %v5704_v17, %v1797_v40  ;;  %v1619_v46 = vadd.f32 %v5450_v12, %v1439_v22  ;;  %v6503_v40 = vld [vmem:[#allocation6_spill] sm:$0xff] }
 0x2d9   : > { %v2532_v59 = vmul.f32 %v5697_v33, %v2510_v28  ;;  %4436 = vmatmul.msk.f32.gmra.mxu0 %vm999_vm5, %v2367_v19  ;;  %v2114_v58 = vpop.f32.mrf.mxu2  ;;  %v6498_v28 = vld [vmem:[#allocation29_spill] sm:$0xff]  ;;  %v2155_v50 = vadd.f32 %v5714_v14, %v1976_v62  ;;  %v1798_v39 = vadd.f32 %v5614_v7, %v1619_v46  ;;  %v2293_v27 = vpop.f32.mrf.mxu3  ;;  %v6502_v7 = vld [vmem:[#allocation31_spill] sm:$0xff] }
 0x2da   : > { %v1236_v18 = vadd.f32 %v6498_v28, %v6497_v2 }
 0x2db   : > { %v2554_v55 = vadd.f32 %v5702_v57, %v2532_v59  ;;  %v2334_v17 = vadd.f32 %v5717_v34, %v2155_v50  ;;  %v1977_v12 = vadd.f32 %v1929_v56, %v1798_v39 }
 0x2dd   : > { %v2574_v35 = vmax.f32 %v2554_v55, 0.0  ;;  %v1440_v55 = vadd.f32 %v6499_v24, %v1236_v18 }
 0x2de   : > { %v2457_v63 = vpop.f32.mrf.mxu0 }
 0x2df   : > { %2594 = vst.msk [vmem:[#allocation3 + $0x28] sm:$0xff] %vm999_vm5, %v2574_v35  ;;  %v2511_v52 = vadd.f32 %v2457_v63, %v2332_v0  ;;  %v1938_v0 = vpop.f32.mrf.mxu1  ;;  %v6500_v35 = vld [vmem:[#allocation32_spill] sm:$0xff] }
 0x2e0   : > { %v1620_v63 = vadd.f32 %v6500_v35, %v1440_v55 }
 0x2e1   : > { %v2533_v41 = vmul.f32 %v5697_v33, %v2511_v52  ;;  %4437 = vmatmul.msk.f32.gmra.mxu0 %vm999_vm5, %v2368_v26  ;;  %v6501_v26 = vld [vmem:[#allocation18_spill] sm:$0xff]  ;;  %v2156_v52 = vadd.f32 %v2108_v20, %v1977_v12  ;;  %v2296_v56 = vpop.f32.mrf.mxu3 }
 0x2e2   : > { %v1239_v4 = vadd.f32 %v6502_v7, %v6501_v26  ;;  %v1799_v38 = vadd.f32 %v5619_v8, %v1620_v63 }
 0x2e3   : > { %v2555_v31 = vadd.f32 %v5702_v57, %v2533_v41  ;;  %v2117_v41 = vpop.f32.mrf.mxu2  ;;  %v2335_v23 = vadd.f32 %v2287_v32, %v2156_v52  ;;  %v6505_v52 = vld [vmem:[#allocation26_spill] sm:$0xff] }
 0x2e4   : > { %v1978_v22 = vadd.f32 %v1932_v1, %v1799_v38  ;;  %v1251_v38 = vadd.f32 %v5644_v9, %v6505_v52 }
 0x2e5   : > { %v2575_v15 = vmax.f32 %v2555_v31, 0.0  ;;  %v1441_v31 = vadd.f32 %v6503_v40, %v1239_v4 }
 0x2e6   : > { %v2460_v61 = vpop.f32.mrf.mxu0 }
 0x2e7   : > { %2595 = vst.msk [vmem:[#allocation3 + $0x30] sm:$0xff] %vm999_vm5, %v2575_v15  ;;  %v2512_v19 = vadd.f32 %v2460_v61, %v2333_v30  ;;  %v6504_v15 = vld [vmem:[#allocation33_spill] sm:$0xff]  ;;  %v1941_v20 = vpop.f32.mrf.mxu1 }
 0x2e8   : > { %v1621_v61 = vadd.f32 %v6504_v15, %v1441_v31 }
 0x2e9   : > { %v2534_v25 = vmul.f32 %v5697_v33, %v2512_v19  ;;  %v2157_v19 = vadd.f32 %v2111_v43, %v1978_v22  ;;  %v2299_v50 = vpop.f32.mrf.mxu3 }
 0x2ea   : > { %v1800_v8 = vadd.f32 %v5624_v47, %v1621_v61  ;;  %v6507_v61 = vld [vmem:[#allocation27_spill] sm:$0xff] }
 0x2eb   : > { %v2556_v59 = vadd.f32 %v5702_v57, %v2534_v25  ;;  %v2336_v32 = vadd.f32 %v2290_v21, %v2157_v19  ;;  %v2120_v2 = vpop.f32.mrf.mxu2 }
 0x2ec   : > { %v1979_v18 = vadd.f32 %v1935_v49, %v1800_v8 }
 0x2ed   : > { %v2576_v13 = vmax.f32 %v2556_v59, 0.0 }
 0x2ee   : > { %v2463_v44 = vpop.f32.mrf.mxu0  ;;  %v2158_v59 = vadd.f32 %v2114_v58, %v1979_v18  ;;  %v1802_v58 = vadd.f32 %v5632_v3, %v5504_v6  ;;  %v1803_v6 = vadd.f32 %v5636_v11, %v5518_v42 }
 0x2ef   : > { %2596 = vst.msk [vmem:[#allocation3 + $0x48] sm:$0xff] %vm999_vm5, %v2576_v13  ;;  %v2513_v60 = vadd.f32 %v2463_v44, %v2334_v17  ;;  %v1801_v17 = vadd.f32 %v5628_v53, %v5490_v16  ;;  %v1944_v47 = vpop.f32.mrf.mxu1 }
 0x2f0   : > { %v2337_v13 = vadd.f32 %v2293_v27, %v2158_v59  ;;  %v1981_v26 = vadd.f32 %v1941_v20, %v1802_v58  ;;  %v1982_v31 = vadd.f32 %v1944_v47, %v1803_v6 }
 0x2f1   : > { %v2535_v14 = vmul.f32 %v5697_v33, %v2513_v60  ;;  %v1980_v24 = vadd.f32 %v1938_v0, %v1801_v17  ;;  %v2302_v60 = vpop.f32.mrf.mxu3  ;;  %v6510_v17 = vld [vmem:[#allocation28_spill] sm:$0xff] }
 0x2f3   : > { %v2557_v34 = vadd.f32 %v5702_v57, %v2535_v14  ;;  %v2123_v55 = vpop.f32.mrf.mxu2  ;;  %v2159_v35 = vadd.f32 %v2117_v41, %v1980_v24 }
 0x2f4   : > { %v2161_v11 = vadd.f32 %v2123_v55, %v1982_v31 }
 0x2f5   : > { %v2577_v48 = vmax.f32 %v2557_v34, 0.0  ;;  %v2338_v53 = vadd.f32 %v2296_v56, %v2159_v35  ;;  %v2160_v34 = vadd.f32 %v2120_v2, %v1981_v26 }
 0x2f6   : > { %v2466_v29 = vpop.f32.mrf.mxu0 }
 0x2f7   : > { %2597 = vst.msk [vmem:[#allocation3 + $0x50] sm:$0xff] %vm999_vm5, %v2577_v48  ;;  %v2514_v30 = vadd.f32 %v2466_v29, %v2335_v23  ;;  %v1947_v14 = vpop.f32.mrf.mxu1  ;;  %v2339_v23 = vadd.f32 %v2299_v50, %v2160_v34  ;;  %v6506_v29 = vld [vmem:[#allocation14_spill] sm:$0xff]  ;;  %v6515_v34 = vld [vmem:[#allocation21_spill] sm:$0xff] }
 0x2f8   : > { %v1445_v40 = vadd.f32 %v6506_v29, %v1251_v38 }
 0x2f9   : > { %v2536_v62 = vmul.f32 %v5697_v33, %v2514_v30  ;;  %v2305_v41 = vpop.f32.mrf.mxu3 }
 0x2fa   : > { %v1625_v15 = vadd.f32 %v5530_v37, %v1445_v40 }
 0x2fb   : > { %v2558_v46 = vadd.f32 %v5702_v57, %v2536_v62  ;;  %v2126_v4 = vpop.f32.mrf.mxu2  ;;  %v6508_v62 = vld [vmem:[#allocation7_spill] sm:$0xff] }
 0x2fc   : > { %v1254_v42 = vadd.f32 %v6508_v62, %v6507_v61  ;;  %v1804_v20 = vadd.f32 %v5640_v5, %v1625_v15  ;;  %v6511_v5 = vld [vmem:[#allocation9_spill] sm:$0xff] }
 0x2fd   : > { %v2578_v25 = vmax.f32 %v2558_v46, 0.0  ;;  %v2340_v46 = vadd.f32 %v2302_v60, %v2161_v11 }
 0x2fe   : > { %v2469_v28 = vpop.f32.mrf.mxu0 }
 0x2ff   : > { %2598 = vst.msk [vmem:[#allocation3 + $0x68] sm:$0xff] %vm999_vm5, %v2578_v25  ;;  %v2515_v1 = vadd.f32 %v2469_v28, %v2336_v32  ;;  %v1950_v30 = vpop.f32.mrf.mxu1  ;;  %v6509_v28 = vld [vmem:[#allocation17_spill] sm:$0xff] }
 0x300   : > { %v1446_v18 = vadd.f32 %v6509_v28, %v1254_v42  ;;  %v6518_v28 = vld [vmem:[#allocation36_spill] sm:$0xff] }
 0x301   : > { %v2537_v39 = vmul.f32 %v5697_v33, %v2515_v1  ;;  %v2308_v25 = vpop.f32.mrf.mxu3  ;;  %v1983_v1 = vadd.f32 %v1947_v14, %v1804_v20  ;;  %v6514_v14 = vld [vmem:[#allocation11_spill] sm:$0xff] }
 0x302   : > { %v1626_v50 = vadd.f32 %v5542_v45, %v1446_v18 }
 0x303   : > { %v2559_v43 = vadd.f32 %v5702_v57, %v2537_v39  ;;  %v2129_v8 = vpop.f32.mrf.mxu2  ;;  %v2162_v47 = vadd.f32 %v2126_v4, %v1983_v1 }
 0x305   : > { %v2579_v44 = vmax.f32 %v2559_v43, 0.0  ;;  %v1257_v43 = vadd.f32 %v6511_v5, %v6510_v17 }
 0x306   : > { %v2472_v21 = vpop.f32.mrf.mxu0 }
 0x307   : > { %2599 = vst.msk [vmem:[#allocation3 + $0x70] sm:$0xff] %vm999_vm5, %v2579_v44  ;;  %v2516_v49 = vadd.f32 %v2472_v21, %v2337_v13  ;;  %v1953_v59 = vpop.f32.mrf.mxu1  ;;  %v1805_v13 = vadd.f32 %v5646_v36, %v1626_v50  ;;  %v2341_v21 = vadd.f32 %v2305_v41, %v2162_v47 }
 0x309   : > { %v2538_v12 = vmul.f32 %v5697_v33, %v2516_v49  ;;  %v1984_v35 = vadd.f32 %v1950_v30, %v1805_v13  ;;  %v2311_v58 = vpop.f32.mrf.mxu3 }
 0x30b   : > { %v2560_v16 = vadd.f32 %v5702_v57, %v2538_v12  ;;  %v2132_v49 = vpop.f32.mrf.mxu2  ;;  %v6512_v12 = vld [vmem:[#allocation19_spill] sm:$0xff] }
 0x30c   : > { %v1447_v60 = vadd.f32 %v6512_v12, %v1257_v43 }
 0x30d   : > { %v2580_v63 = vmax.f32 %v2560_v16, 0.0 }
 0x30e   : > { %v2475_v27 = vpop.f32.mrf.mxu0  ;;  %v1627_v16 = vadd.f32 %v5555_v51, %v1447_v60 }
 0x30f   : > { %2600 = vst.msk [vmem:[#allocation3 + $0x88] sm:$0xff] %vm999_vm5, %v2580_v63  ;;  %v2517_v0 = vadd.f32 %v2475_v27, %v2338_v53  ;;  %v6513_v63 = vld [vmem:[#allocation30_spill] sm:$0xff]  ;;  %v2163_v27 = vadd.f32 %v2129_v8, %v1984_v35 }
 0x310   : > { %v1260_v36 = vadd.f32 %v6514_v14, %v6513_v63  ;;  %v1806_v26 = vadd.f32 %v5650_v54, %v1627_v16  ;;  %v6517_v54 = vld [vmem:[#allocation35_spill] sm:$0xff] }
 0x311   : > { %v2539_v7 = vmul.f32 %v5697_v33, %v2517_v0  ;;  %v2342_v4 = vadd.f32 %v2308_v25, %v2163_v27  ;;  %v2314_v29 = vpop.f32.mrf.mxu3 }
 0x312   : > { %v1448_v6 = vadd.f32 %v6515_v34, %v1260_v36 }
 0x313   : > { %v2561_v3 = vadd.f32 %v5702_v57, %v2539_v7  ;;  %v1956_v7 = vpop.f32.mrf.mxu1  ;;  %v2135_v41 = vpop.f32.mrf.mxu2 }
 0x315   : > { %v2581_v48 = vmax.f32 %v2561_v3, 0.0  ;;  %v1985_v3 = vadd.f32 %v1953_v59, %v1806_v26 }
 0x316   : > { %v2478_v56 = vpop.f32.mrf.mxu0 }
 0x317   : > { %2601 = vst.msk [vmem:[#allocation3 + $0x90] sm:$0xff] %vm999_vm5, %v2581_v48  ;;  %v2518_v22 = vadd.f32 %v2478_v56, %v2339_v23  ;;  %v6516_v23 = vld [vmem:[#allocation34_spill] sm:$0xff]  ;;  %v2164_v40 = vadd.f32 %v2132_v49, %v1985_v3 }
 0x318   : > { %v1628_v48 = vadd.f32 %v6516_v23, %v1448_v6 }
 0x319   : > { %v2540_v9 = vmul.f32 %v5697_v33, %v2518_v22  ;;  %v2343_v30 = vadd.f32 %v2311_v58, %v2164_v40 }
 0x31a   : > { %v1807_v31 = vadd.f32 %v6517_v54, %v1628_v48 }
 0x31b   : > { %v2562_v19 = vadd.f32 %v5702_v57, %v2540_v9  ;;  %v1959_v9 = vpop.f32.mrf.mxu1  ;;  %v2138_v20 = vpop.f32.mrf.mxu2 }
 0x31c   : > { %v1986_v62 = vadd.f32 %v1956_v7, %v1807_v31  ;;  %v1987_v18 = vadd.f32 %v1959_v9, %v6518_v28 }
 0x31d   : > { %v2582_v32 = vmax.f32 %v2562_v19, 0.0 }
 0x31e   : > { %v2481_v2 = vpop.f32.mrf.mxu0  ;;  %v2165_v19 = vadd.f32 %v2135_v41, %v1986_v62 }
 0x31f   : > { %2602 = vst.msk [vmem:[#allocation3 + $0xa8] sm:$0xff] %vm999_vm5, %v2582_v32  ;;  %v2519_v37 = vadd.f32 %v2481_v2, %v2340_v46  ;;  %v2317_v46 = vpop.f32.mrf.mxu3 }
 0x320   : > { %v2344_v32 = vadd.f32 %v2314_v29, %v2165_v19 }
 0x321   : > { %v2541_v39 = vmul.f32 %v5697_v33, %v2519_v37 }
 0x323   : > { %v2563_v44 = vadd.f32 %v5702_v57, %v2541_v39  ;;  %v1962_v37 = vpop.f32.mrf.mxu1  ;;  %v2166_v39 = vadd.f32 %v2138_v20, %v1987_v18  ;;  %v2141_v17 = vpop.f32.mrf.mxu2 }
 0x325   : > { %v2583_v24 = vmax.f32 %v2563_v44, 0.0  ;;  %v2345_v5 = vadd.f32 %v2317_v46, %v2166_v39  ;;  %v6519_v44 = vld [vmem:[#allocation37_spill] sm:$0xff] }
 0x326   : > { %v2484_v55 = vpop.f32.mrf.mxu0 }
 0x327   : > { %2603 = vst.msk [vmem:[#allocation3 + $0xb0] sm:$0xff] %vm999_vm5, %v2583_v24  ;;  %v2520_v45 = vadd.f32 %v2484_v55, %v2341_v21  ;;  %v2320_v47 = vpop.f32.mrf.mxu3  ;;  %v1988_v21 = vadd.f32 %v1962_v37, %v6519_v44 }
 0x329   : > { %v2542_v53 = vmul.f32 %v5697_v33, %v2520_v45  ;;  %v2167_v12 = vadd.f32 %v2141_v17, %v1988_v21 }
 0x32b   : > { %v2564_v0 = vadd.f32 %v5702_v57, %v2542_v53  ;;  %v1965_v55 = vpop.f32.mrf.mxu1  ;;  %v2346_v35 = vadd.f32 %v2320_v47, %v2167_v12  ;;  %v2144_v58 = vpop.f32.mrf.mxu2  ;;  %v6520_v53 = vld [vmem:[#allocation38_spill] sm:$0xff] }
 0x32c   : > { %v1989_v63 = vadd.f32 %v1965_v55, %v6520_v53 }
 0x32d   : > { %v2584_v52 = vmax.f32 %v2564_v0, 0.0 }
 0x32e   : > { %v2487_v38 = vpop.f32.mrf.mxu0  ;;  %v2168_v26 = vadd.f32 %v2144_v58, %v1989_v63 }
 0x32f   : > { %2604 = vst.msk [vmem:[#allocation3 + $0xc8] sm:$0xff] %vm999_vm5, %v2584_v52  ;;  %v2521_v51 = vadd.f32 %v2487_v38, %v2342_v4  ;;  %v2323_v36 = vpop.f32.mrf.mxu3 }
 0x330   : > { %v2347_v4 = vadd.f32 %v2323_v36, %v2168_v26 }
 0x331   : > { %v2543_v56 = vmul.f32 %v5697_v33, %v2521_v51 }
 0x333   : > { %v2565_v22 = vadd.f32 %v5702_v57, %v2543_v56  ;;  %v1968_v7 = vpop.f32.mrf.mxu1  ;;  %v2147_v3 = vpop.f32.mrf.mxu2 }
 0x334   : > { %v1990_v34 = vadd.f32 %v1968_v7, %v5682_v10 }
 0x335   : > { %v2585_v15 = vmax.f32 %v2565_v22, 0.0 }
 0x336   : > { %v2490_v61 = vpop.f32.mrf.mxu0  ;;  %v2169_v23 = vadd.f32 %v2147_v3, %v1990_v34 }
 0x337   : > { %2605 = vst.msk [vmem:[#allocation3 + $0xd0] sm:$0xff] %vm999_vm5, %v2585_v15  ;;  %v2522_v42 = vadd.f32 %v2490_v61, %v2343_v30  ;;  %v2326_v41 = vpop.f32.mrf.mxu3 }
 0x338   : > { %v2348_v56 = vadd.f32 %v2326_v41, %v2169_v23 }
 0x339   : > { %v2544_v11 = vmul.f32 %v5697_v33, %v2522_v42 }
 0x33b   : > { %v2566_v8 = vadd.f32 %v5702_v57, %v2544_v11 }
 0x33d   : > { %v2586_v25 = vmax.f32 %v2566_v8, 0.0 }
 0x33e   : > { %v2493_v2 = vpop.f32.mrf.mxu0 }
 0x33f   : > { %2606 = vst.msk [vmem:[#allocation3 + $0xe8] sm:$0xff] %vm999_vm5, %v2586_v25  ;;  %v2523_v1 = vadd.f32 %v2493_v2, %v2344_v32 }
 0x341   : > { %v2545_v50 = vmul.f32 %v5697_v33, %v2523_v1 }
 0x343   : > { %v2567_v59 = vadd.f32 %v5702_v57, %v2545_v50 }
 0x345   : > { %v2587_v43 = vmax.f32 %v2567_v59, 0.0 }
 0x346   : > { %v2496_v13 = vpop.f32.mrf.mxu0 }
 0x347   : > { %2607 = vst.msk [vmem:[#allocation3 + $0xf0] sm:$0xff] %vm999_vm5, %v2587_v43  ;;  %v2524_v24 = vadd.f32 %v2496_v13, %v2345_v5 }
 0x349   : > { %v2546_v49 = vmul.f32 %v5697_v33, %v2524_v24 }
 0x34b   : > { %v2568_v60 = vadd.f32 %v5702_v57, %v2546_v49 }
 0x34d   : > { %v2588_v45 = vmax.f32 %v2568_v60, 0.0 }
 0x34e   : > { %v2499_v16 = vpop.f32.mrf.mxu0 }
 0x34f   : > { %2608 = vst.msk [vmem:[#allocation3 + $0x108] sm:$0xff] %vm999_vm5, %v2588_v45  ;;  %v2525_v14 = vadd.f32 %v2499_v16, %v2346_v35 }
 0x351   : > { %v2547_v27 = vmul.f32 %v5697_v33, %v2525_v14 }
 0x353   : > { %v2569_v0 = vadd.f32 %v5702_v57, %v2547_v27 }
 0x355   : > { %v2589_v52 = vmax.f32 %v2569_v0, 0.0 }
 0x356   : > { %v2502_v38 = vpop.f32.mrf.mxu0 }
 0x357   : > { %2609 = vst.msk [vmem:[#allocation3 + $0x110] sm:$0xff] %vm999_vm5, %v2589_v52  ;;  %v2526_v6 = vadd.f32 %v2502_v38, %v2347_v4 }
 0x359   : > { %v2548_v51 = vmul.f32 %v5697_v33, %v2526_v6 }
 0x35b   : > { %v2570_v48 = vadd.f32 %v5702_v57, %v2548_v51 }
 0x35d   : > { %v2590_v29 = vmax.f32 %v2570_v48, 0.0 }
 0x35e   : > { %v2505_v40 = vpop.f32.mrf.mxu0 }
 0x35f   : > { %2610 = vst.msk [vmem:[#allocation3 + $0x128] sm:$0xff] %vm999_vm5, %v2590_v29  ;;  %v2527_v54 = vadd.f32 %v2505_v40, %v2348_v56 }
 0x361   : > { %v2549_v31 = vmul.f32 %v5697_v33, %v2527_v54 }
 0x363   : > { %v2571_v10 = vadd.f32 %v5702_v57, %v2549_v31  ;;  %2614 = sbr.rel (%p4248_p13) target bundleno = 877 (0x36d), region = 72 }
 0x365   : > { %v2591_v22 = vmax.f32 %v2571_v10, 0.0 }
 0x367   : > { %2611 = vst.msk [vmem:[#allocation3 + $0x130] sm:$0xff] %vm999_vm5, %v2591_v22 }
 0x368   : > { %v4705_v30 = vmov 0.0  }
 0x369   : > { %2615 = vst.msk [vmem:[#allocation3] sm:$0xff] %vm999_vm5, %v4705_v30 }
 0x36a   : > { %2616 = vst.msk [vmem:[#allocation3 + $0x8] sm:$0xff] %vm999_vm5, %v4705_v30 }
 0x36b   : > { %2617 = vst.msk [vmem:[#allocation3 + $0x10] sm:$0xff] %vm999_vm5, %v4705_v30 }
 0x36c   : > { %2618 = vst.msk [vmem:[#allocation3 + $0x18] sm:$0x1] %vm701_vm2, %v4705_v30 }
 0x36d PF: > { %2621 = sbr.rel (%p4249_p0) target bundleno = 887 (0x377), region = 76 }
 0x372   : > { %v4706_v33 = vmov 0.0  }
 0x373   : > { %2623 = vst.msk [vmem:[#allocation3 + $0x120] sm:$0xff] %vm999_vm5, %v4706_v33 }
 0x374   : > { %2624 = vst.msk [vmem:[#allocation3 + $0x128] sm:$0xff] %vm999_vm5, %v4706_v33 }
 0x375   : > { %2625 = vst.msk [vmem:[#allocation3 + $0x130] sm:$0xff] %vm999_vm5, %v4706_v33 }
 0x376   : > { %2626 = vst.msk [vmem:[#allocation3 + $0x138] sm:$0x1] %vm701_vm2, %v4706_v33 }
 0x377 PF: > { %v4440_v57 = vld [vmem:[%s6442_s8 + $0x8] sm:$0xff]  ;;  %v2643_v15 = vld [vmem:[%s6442_s8] sm:$0xff]  ;;  %v4473_v42 = vld [vmem:[%s6442_s8 + $0x10] sm:$0xff] }
 0x378   : > { %v2644_v9 = vld [vmem:[#allocation3 + $0x8] sm:$0xff]  ;;  %2725 = vmatpush.msra.mxu1 %v4440_v57  ;;  %2838 = vmatpush.msra.mxu2 %v2643_v15  ;;  %v4507_v62 = vld [vmem:[%s6442_s8 + $0x20] sm:$0xff]  ;;  %v4490_v20 = vld [vmem:[%s6442_s8 + $0x18] sm:$0xff] }
 0x379   : > { %v2627_v61 = vld [vmem:[#allocation3 + $0x7] sm:$0xff]  ;;  %4441 = vmatmul.msk.f32.vlgmr.msra.gmra.mxu1 %vm999_vm5, %v2644_v9  ;;  %2969 = vmatpush.msra.mxu3 %v4473_v42  ;;  %v2645_v19 = vld [vmem:[#allocation3 + $0x10] sm:$0xff]  ;;  %v4558_v52 = vld [vmem:[%s6442_s8 + $0x38] sm:$0xff] }
 0x37a   : > { %4457 = vmatmul.msk.f32.vlgmr.msra.gmra.mxu2 %vm999_vm5, %v2627_v61  ;;  %v2888_v11 = vld [vmem:[#allocation3 + $0x9] sm:$0xff]  ;;  %3117 = vmatpush.msrb.mxu1 %v4490_v20  ;;  %v2889_v46 = vld [vmem:[#allocation3 + $0x11] sm:$0xff]  ;;  %v4575_v4 = vld [vmem:[%s6442_s8 + $0x40] sm:$0xff] }
 0x37b   : > { %3264 = vmatpush.msrb.mxu2 %v4507_v62  ;;  %4474 = vmatmul.msk.f32.vlgmr.msra.gmra.mxu3 %vm999_vm5, %v2888_v11  ;;  %v2628_v8 = vld [vmem:[#allocation3 + $0xf] sm:$0xff]  ;;  %v5881_v25 = vld [vmem:[#allocation3 + $0x27] sm:$0xff] }
 0x37c   : > { %v5879_v32 = vld [vmem:[#allocation3 + $0x28] sm:$0xff]  ;;  %v5891_v28 = vld [vmem:[#allocation3 + $0x30] sm:$0xff]  ;;  %3706 = vmatpush.msra.mxu1 %v4558_v52 }
 0x37d   : > { %v5883_v2 = vld [vmem:[#allocation3 + $0x29] sm:$0xff]  ;;  %v5895_v1 = vld [vmem:[#allocation3 + $0x31] sm:$0xff]  ;;  %3853 = vmatpush.msra.mxu2 %v4575_v4 }
 0x37e   : > { %v5893_v18 = vld [vmem:[#allocation3 + $0x2f] sm:$0xff]  ;;  %v5905_v50 = vld [vmem:[#allocation3 + $0x47] sm:$0xff] }
 0x37f   : > { %v5903_v37 = vld [vmem:[#allocation3 + $0x48] sm:$0xff]  ;;  %v5915_v59 = vld [vmem:[#allocation3 + $0x50] sm:$0xff] }
 0x380   : > { %v5907_v39 = vld [vmem:[#allocation3 + $0x49] sm:$0xff]  ;;  %v5919_v5 = vld [vmem:[#allocation3 + $0x51] sm:$0xff] }
 0x381   : > { %4442 = vmatmul.msk.f32.gmra.mxu1 %vm999_vm5, %v2645_v19  ;;  %v5917_v17 = vld [vmem:[#allocation3 + $0x4f] sm:$0xff]  ;;  %v5929_v47 = vld [vmem:[#allocation3 + $0x67] sm:$0xff] }
 0x382   : > { %4458 = vmatmul.msk.f32.gmra.mxu2 %vm999_vm5, %v2628_v8  ;;  %v5927_v43 = vld [vmem:[#allocation3 + $0x68] sm:$0xff]  ;;  %v5939_v44 = vld [vmem:[#allocation3 + $0x70] sm:$0xff] }
 0x383   : > { %4475 = vmatmul.msk.f32.gmra.mxu3 %vm999_vm5, %v2889_v46  ;;  %v5931_v13 = vld [vmem:[#allocation3 + $0x69] sm:$0xff]  ;;  %v5943_v24 = vld [vmem:[#allocation3 + $0x71] sm:$0xff] }
 0x384   : > { %v5941_v21 = vld [vmem:[#allocation3 + $0x6f] sm:$0xff]  ;;  %v5953_v55 = vld [vmem:[#allocation3 + $0x87] sm:$0xff] }
 0x385   : > { %v5951_v49 = vld [vmem:[#allocation3 + $0x88] sm:$0xff]  ;;  %v5963_v60 = vld [vmem:[#allocation3 + $0x90] sm:$0xff] }
 0x386   : > { %v5955_v12 = vld [vmem:[#allocation3 + $0x89] sm:$0xff]  ;;  %v5967_v45 = vld [vmem:[#allocation3 + $0x91] sm:$0xff] }
 0x387   : > { %v5965_v35 = vld [vmem:[#allocation3 + $0x8f] sm:$0xff]  ;;  %v5977_v16 = vld [vmem:[#allocation3 + $0xa7] sm:$0xff] }
 0x388   : > { %v5975_v58 = vld [vmem:[#allocation3 + $0xa8] sm:$0xff]  ;;  %v5987_v63 = vld [vmem:[#allocation3 + $0xb0] sm:$0xff] }
 0x389   : > { %4443 = vmatmul.msk.f32.gmra.mxu1 %vm999_vm5, %v5879_v32  ;;  %v5979_v53 = vld [vmem:[#allocation3 + $0xa9] sm:$0xff]  ;;  %v5991_v36 = vld [vmem:[#allocation3 + $0xb1] sm:$0xff] }
 0x38a   : > { %4459 = vmatmul.msk.f32.gmra.mxu2 %vm999_vm5, %v5881_v25  ;;  %v5989_v14 = vld [vmem:[#allocation3 + $0xaf] sm:$0xff]  ;;  %v6004_v0 = vld [vmem:[#allocation3 + $0xc7] sm:$0xff] }
 0x38b   : > { %4476 = vmatmul.msk.f32.gmra.mxu3 %vm999_vm5, %v5883_v2  ;;  %v4524_v27 = vld [vmem:[%s6442_s8 + $0x28] sm:$0xff]  ;;  %v6020_v38 = vld [vmem:[#allocation3 + $0xd0] sm:$0xff] }
 0x38c   : > { %3411 = vmatpush.msrb.mxu3 %v4524_v27  ;;  %v6002_v26 = vld [vmem:[#allocation3 + $0xc8] sm:$0xff]  ;;  %v6024_v6 = vld [vmem:[#allocation3 + $0xd1] sm:$0xff] }
 0x38d   : > { %v6006_v7 = vld [vmem:[#allocation3 + $0xc9] sm:$0xff]  ;;  %v6055_v29 = vld [vmem:[#allocation3 + $0xf1] sm:$0xff] }
 0x38e   : > { %v6022_v34 = vld [vmem:[#allocation3 + $0xcf] sm:$0xff]  ;;  %v6039_v41 = vld [vmem:[#allocation3 + $0xe7] sm:$0xff] }
 0x38f   : > { %v4541_v3 = vld [vmem:[%s6442_s8 + $0x30] sm:$0xff]  ;;  %v6037_v51 = vld [vmem:[#allocation3 + $0xe8] sm:$0xff] }
 0x390   : > { %3559 = vmatpush.msra.mxu0 %v4541_v3  ;;  %v6041_v23 = vld [vmem:[#allocation3 + $0xe9] sm:$0xff] }
 0x391   : > { %4444 = vmatmul.msk.f32.gmra.mxu1 %vm999_vm5, %v5891_v28  ;;  %4542 = vmatmul.msk.f32.vlgmr.msra.gmra.mxu0 %vm999_vm5, %v5905_v50  ;;  %v6051_v48 = vld [vmem:[#allocation3 + $0xf0] sm:$0xff] }
 0x392   : > { %4460 = vmatmul.msk.f32.gmra.mxu2 %vm999_vm5, %v5893_v18  ;;  %v6053_v56 = vld [vmem:[#allocation3 + $0xef] sm:$0xff] }
 0x393   : > { %4477 = vmatmul.msk.f32.gmra.mxu3 %vm999_vm5, %v5895_v1 }
 0x399   : > { %4445 = vmatmul.msk.f32.gmra.mxu1 %vm999_vm5, %v5903_v37  ;;  %4543 = vmatmul.msk.f32.gmra.mxu0 %vm999_vm5, %v5917_v17 }
 0x39a   : > { %4461 = vmatmul.msk.f32.gmra.mxu2 %vm999_vm5, %v5905_v50 }
 0x39b   : > { %4478 = vmatmul.msk.f32.gmra.mxu3 %vm999_vm5, %v5907_v39 }
 0x3a1   : > { %4446 = vmatmul.msk.f32.gmra.mxu1 %vm999_vm5, %v5915_v59  ;;  %4544 = vmatmul.msk.f32.gmra.mxu0 %vm999_vm5, %v5929_v47 }
 0x3a2   : > { %4462 = vmatmul.msk.f32.gmra.mxu2 %vm999_vm5, %v5917_v17 }
 0x3a3   : > { %4479 = vmatmul.msk.f32.gmra.mxu3 %vm999_vm5, %v5919_v5 }
 0x3a9   : > { %4447 = vmatmul.msk.f32.gmra.mxu1 %vm999_vm5, %v5927_v43  ;;  %4545 = vmatmul.msk.f32.gmra.mxu0 %vm999_vm5, %v5941_v21 }
 0x3aa   : > { %4463 = vmatmul.msk.f32.gmra.mxu2 %vm999_vm5, %v5929_v47 }
 0x3ab   : > { %4480 = vmatmul.msk.f32.gmra.mxu3 %vm999_vm5, %v5931_v13 }
 0x3b1   : > { %4448 = vmatmul.msk.f32.gmra.mxu1 %vm999_vm5, %v5939_v44  ;;  %4546 = vmatmul.msk.f32.gmra.mxu0 %vm999_vm5, %v5953_v55 }
 0x3b2   : > { %4464 = vmatmul.msk.f32.gmra.mxu2 %vm999_vm5, %v5941_v21 }
 0x3b3   : > { %4481 = vmatmul.msk.f32.gmra.mxu3 %vm999_vm5, %v5943_v24 }
 0x3b9   : > { %4449 = vmatmul.msk.f32.gmra.mxu1 %vm999_vm5, %v5951_v49  ;;  %4547 = vmatmul.msk.f32.gmra.mxu0 %vm999_vm5, %v5965_v35 }
 0x3ba   : > { %4465 = vmatmul.msk.f32.gmra.mxu2 %vm999_vm5, %v5953_v55 }
 0x3bb   : > { %4482 = vmatmul.msk.f32.gmra.mxu3 %vm999_vm5, %v5955_v12 }
 0x3c1   : > { %4450 = vmatmul.msk.f32.gmra.mxu1 %vm999_vm5, %v5963_v60  ;;  %4548 = vmatmul.msk.f32.gmra.mxu0 %vm999_vm5, %v5977_v16 }
 0x3c2   : > { %4466 = vmatmul.msk.f32.gmra.mxu2 %vm999_vm5, %v5965_v35 }
 0x3c3   : > { %4483 = vmatmul.msk.f32.gmra.mxu3 %vm999_vm5, %v5967_v45 }
 0x3c9   : > { %4451 = vmatmul.msk.f32.gmra.mxu1 %vm999_vm5, %v5975_v58  ;;  %4549 = vmatmul.msk.f32.gmra.mxu0 %vm999_vm5, %v5989_v14 }
 0x3ca   : > { %4467 = vmatmul.msk.f32.gmra.mxu2 %vm999_vm5, %v5977_v16 }
 0x3cb   : > { %4484 = vmatmul.msk.f32.gmra.mxu3 %vm999_vm5, %v5979_v53 }
 0x3d1   : > { %4452 = vmatmul.msk.f32.gmra.mxu1 %vm999_vm5, %v5987_v63  ;;  %4550 = vmatmul.msk.f32.gmra.mxu0 %vm999_vm5, %v6004_v0 }
 0x3d2   : > { %4468 = vmatmul.msk.f32.gmra.mxu2 %vm999_vm5, %v5989_v14 }
 0x3d3   : > { %4485 = vmatmul.msk.f32.gmra.mxu3 %vm999_vm5, %v5991_v36 }
 0x3d9   : > { %4453 = vmatmul.msk.f32.gmra.mxu1 %vm999_vm5, %v6002_v26  ;;  %4551 = vmatmul.msk.f32.gmra.mxu0 %vm999_vm5, %v6022_v34 }
 0x3da   : > { %4469 = vmatmul.msk.f32.gmra.mxu2 %vm999_vm5, %v6004_v0 }
 0x3db   : > { %4486 = vmatmul.msk.f32.gmra.mxu3 %vm999_vm5, %v6006_v7 }
 0x3e1   : > { %4454 = vmatmul.msk.f32.gmra.mxu1 %vm999_vm5, %v6020_v38  ;;  %4552 = vmatmul.msk.f32.gmra.mxu0 %vm999_vm5, %v6039_v41 }
 0x3e2   : > { %4470 = vmatmul.msk.f32.gmra.mxu2 %vm999_vm5, %v6022_v34 }
 0x3e3   : > { %4487 = vmatmul.msk.f32.gmra.mxu3 %vm999_vm5, %v6024_v6 }
 0x3e9   : > { %4455 = vmatmul.msk.f32.gmra.mxu1 %vm999_vm5, %v6037_v51  ;;  %4553 = vmatmul.msk.f32.gmra.mxu0 %vm999_vm5, %v6053_v56 }
 0x3ea   : > { %4471 = vmatmul.msk.f32.gmra.mxu2 %vm999_vm5, %v6039_v41 }
 0x3eb   : > { %4488 = vmatmul.msk.f32.gmra.mxu3 %vm999_vm5, %v6041_v23 }
 0x3f1   : > { %4456 = vmatmul.msk.f32.gmra.mxu1 %vm999_vm5, %v6051_v48 }
 0x3f2   : > { %4472 = vmatmul.msk.f32.gmra.mxu2 %vm999_vm5, %v6053_v56 }
 0x3f3   : > { %4489 = vmatmul.msk.f32.gmra.mxu3 %vm999_vm5, %v6055_v29 }
 0x3f6   : > { %v2727_v40 = vpop.f32.mrf.mxu1 }
 0x3f9   : > { %4491 = vmatmul.msk.f32.vlgmr.msrb.gmra.mxu1 %vm999_vm5, %v5881_v25 }
 0x3fa   : > { %4508 = vmatmul.msk.f32.vlgmr.msrb.gmra.mxu2 %vm999_vm5, %v5879_v32 }
 0x3fb   : > { %4525 = vmatmul.msk.f32.vlgmr.msrb.gmra.mxu3 %vm999_vm5, %v5883_v2 }
 0x3fd   : > { %v2840_v54 = vpop.f32.mrf.mxu2 }
 0x3fe   : > { %v2841_v31 = vadd.f32 %v2840_v54, %v2727_v40  ;;  %v2730_v10 = vpop.f32.mrf.mxu1  ;;  %v2971_v22 = vpop.f32.mrf.mxu3 }
 0x400   : > { %v6073_v30 = vadd.f32 %v2971_v22, %v2841_v31 }
 0x401   : > { %4492 = vmatmul.msk.f32.gmra.mxu1 %vm999_vm5, %v5893_v18 }
 0x402   : > { %4509 = vmatmul.msk.f32.gmra.mxu2 %vm999_vm5, %v5891_v28 }
 0x403   : > { %4526 = vmatmul.msk.f32.gmra.mxu3 %vm999_vm5, %v5895_v1 }
 0x405   : > { %v2843_v33 = vpop.f32.mrf.mxu2 }
 0x406   : > { %v2844_v57 = vadd.f32 %v2843_v33, %v2730_v10  ;;  %v2733_v15 = vpop.f32.mrf.mxu1  ;;  %v2974_v9 = vpop.f32.mrf.mxu3 }
 0x408   : > { %v6083_v61 = vadd.f32 %v2974_v9, %v2844_v57 }
 0x409   : > { %4493 = vmatmul.msk.f32.gmra.mxu1 %vm999_vm5, %v5905_v50 }
 0x40a   : > { %4510 = vmatmul.msk.f32.gmra.mxu2 %vm999_vm5, %v5903_v37 }
 0x40b   : > { %4527 = vmatmul.msk.f32.gmra.mxu3 %vm999_vm5, %v5907_v39 }
 0x40d   : > { %v2846_v62 = vpop.f32.mrf.mxu2 }
 0x40e   : > { %v2847_v42 = vadd.f32 %v2846_v62, %v2733_v15  ;;  %v2736_v11 = vpop.f32.mrf.mxu1  ;;  %v2977_v20 = vpop.f32.mrf.mxu3 }
 0x410   : > { %v6093_v19 = vadd.f32 %v2977_v20, %v2847_v42 }
 0x411   : > { %4494 = vmatmul.msk.f32.gmra.mxu1 %vm999_vm5, %v5917_v17 }
 0x412   : > { %4511 = vmatmul.msk.f32.gmra.mxu2 %vm999_vm5, %v5915_v59 }
 0x413   : > { %4528 = vmatmul.msk.f32.gmra.mxu3 %vm999_vm5, %v5919_v5 }
 0x415   : > { %v2849_v8 = vpop.f32.mrf.mxu2 }
 0x416   : > { %v2850_v46 = vadd.f32 %v2849_v8, %v2736_v11  ;;  %v2739_v32 = vpop.f32.mrf.mxu1  ;;  %v2980_v25 = vpop.f32.mrf.mxu3 }
 0x418   : > { %v6103_v2 = vadd.f32 %v2980_v25, %v2850_v46 }
 0x419   : > { %4495 = vmatmul.msk.f32.gmra.mxu1 %vm999_vm5, %v5929_v47 }
 0x41a   : > { %4512 = vmatmul.msk.f32.gmra.mxu2 %vm999_vm5, %v5927_v43 }
 0x41b   : > { %4529 = vmatmul.msk.f32.gmra.mxu3 %vm999_vm5, %v5931_v13 }
 0x41d   : > { %v2852_v28 = vpop.f32.mrf.mxu2 }
 0x41e   : > { %v2853_v18 = vadd.f32 %v2852_v28, %v2739_v32  ;;  %v2742_v1 = vpop.f32.mrf.mxu1  ;;  %v2983_v50 = vpop.f32.mrf.mxu3 }
 0x420   : > { %v6113_v17 = vadd.f32 %v2983_v50, %v2853_v18 }
 0x421   : > { %4496 = vmatmul.msk.f32.gmra.mxu1 %vm999_vm5, %v5941_v21 }
 0x422   : > { %4513 = vmatmul.msk.f32.gmra.mxu2 %vm999_vm5, %v5939_v44 }
 0x423   : > { %4530 = vmatmul.msk.f32.gmra.mxu3 %vm999_vm5, %v5943_v24 }
 0x425   : > { %v2855_v47 = vpop.f32.mrf.mxu2 }
 0x426   : > { %v2856_v27 = vadd.f32 %v2855_v47, %v2742_v1  ;;  %v2745_v4 = vpop.f32.mrf.mxu1  ;;  %v2986_v52 = vpop.f32.mrf.mxu3 }
 0x428   : > { %v6123_v3 = vadd.f32 %v2986_v52, %v2856_v27 }
 0x429   : > { %4497 = vmatmul.msk.f32.gmra.mxu1 %vm999_vm5, %v5953_v55 }
 0x42a   : > { %4514 = vmatmul.msk.f32.gmra.mxu2 %vm999_vm5, %v5951_v49 }
 0x42b   : > { %4531 = vmatmul.msk.f32.gmra.mxu3 %vm999_vm5, %v5955_v12 }
 0x42d   : > { %v2858_v21 = vpop.f32.mrf.mxu2 }
 0x42e   : > { %v2859_v40 = vadd.f32 %v2858_v21, %v2745_v4  ;;  %v2748_v54 = vpop.f32.mrf.mxu1  ;;  %v2989_v31 = vpop.f32.mrf.mxu3 }
 0x430   : > { %v6133_v10 = vadd.f32 %v2989_v31, %v2859_v40 }
 0x431   : > { %4498 = vmatmul.msk.f32.gmra.mxu1 %vm999_vm5, %v5965_v35 }
 0x432   : > { %4515 = vmatmul.msk.f32.gmra.mxu2 %vm999_vm5, %v5963_v60 }
 0x433   : > { %4532 = vmatmul.msk.f32.gmra.mxu3 %vm999_vm5, %v5967_v45 }
 0x435   : > { %v2861_v55 = vpop.f32.mrf.mxu2 }
 0x436   : > { %v2862_v22 = vadd.f32 %v2861_v55, %v2748_v54  ;;  %v2751_v33 = vpop.f32.mrf.mxu1  ;;  %v2992_v57 = vpop.f32.mrf.mxu3 }
 0x438   : > { %v6143_v15 = vadd.f32 %v2992_v57, %v2862_v22 }
 0x439   : > { %4499 = vmatmul.msk.f32.gmra.mxu1 %vm999_vm5, %v5977_v16  ;;  %v3490_v16 = vld [vmem:[#allocation3 + $0x107] sm:$0xff] }
 0x43a   : > { %4516 = vmatmul.msk.f32.gmra.mxu2 %vm999_vm5, %v5975_v58  ;;  %4554 = vmatmul.msk.f32.gmra.mxu0 %vm999_vm5, %v3490_v16 }
 0x43b   : > { %4533 = vmatmul.msk.f32.gmra.mxu3 %vm999_vm5, %v5979_v53 }
 0x43d   : > { %v2864_v35 = vpop.f32.mrf.mxu2 }
 0x43e   : > { %v2865_v9 = vadd.f32 %v2864_v35, %v2751_v33  ;;  %v2754_v62 = vpop.f32.mrf.mxu1  ;;  %v2995_v42 = vpop.f32.mrf.mxu3 }
 0x440   : > { %v6153_v11 = vadd.f32 %v2995_v42, %v2865_v9 }
 0x441   : > { %4500 = vmatmul.msk.f32.gmra.mxu1 %vm999_vm5, %v5989_v14  ;;  %v3491_v14 = vld [vmem:[#allocation3 + $0x10f] sm:$0xff] }
 0x442   : > { %4517 = vmatmul.msk.f32.gmra.mxu2 %vm999_vm5, %v5987_v63  ;;  %4555 = vmatmul.msk.f32.gmra.mxu0 %vm999_vm5, %v3491_v14 }
 0x443   : > { %4534 = vmatmul.msk.f32.gmra.mxu3 %vm999_vm5, %v5991_v36 }
 0x445   : > { %v2867_v20 = vpop.f32.mrf.mxu2 }
 0x446   : > { %v2868_v8 = vadd.f32 %v2867_v20, %v2754_v62  ;;  %v2757_v46 = vpop.f32.mrf.mxu1  ;;  %v2998_v32 = vpop.f32.mrf.mxu3  ;;  %v6197_v62 = vld [vmem:[#allocation3 + $0x108] sm:$0xff] }
 0x447   : > { %v6201_v20 = vld [vmem:[#allocation3 + $0x109] sm:$0xff] }
 0x448   : > { %v6162_v25 = vadd.f32 %v2998_v32, %v2868_v8 }
 0x449   : > { %4501 = vmatmul.msk.f32.gmra.mxu1 %vm999_vm5, %v6004_v0  ;;  %v3492_v0 = vld [vmem:[#allocation3 + $0x127] sm:$0xff] }
 0x44a   : > { %4518 = vmatmul.msk.f32.gmra.mxu2 %vm999_vm5, %v6002_v26  ;;  %4556 = vmatmul.msk.f32.gmra.mxu0 %vm999_vm5, %v3492_v0 }
 0x44b   : > { %4535 = vmatmul.msk.f32.gmra.mxu3 %vm999_vm5, %v6006_v7 }
 0x44d   : > { %v2870_v28 = vpop.f32.mrf.mxu2 }
 0x44e   : > { %v2871_v18 = vadd.f32 %v2870_v28, %v2757_v46  ;;  %v2760_v1 = vpop.f32.mrf.mxu1  ;;  %v3001_v50 = vpop.f32.mrf.mxu3  ;;  %v6208_v28 = vld [vmem:[#allocation3 + $0x110] sm:$0xff] }
 0x450   : > { %v6171_v47 = vadd.f32 %v3001_v50, %v2871_v18 }
 0x451   : > { %4502 = vmatmul.msk.f32.gmra.mxu1 %vm999_vm5, %v6022_v34  ;;  %v3493_v34 = vld [vmem:[#allocation3 + $0x12f] sm:$0xff] }
 0x452   : > { %4519 = vmatmul.msk.f32.gmra.mxu2 %vm999_vm5, %v6020_v38  ;;  %4557 = vmatmul.msk.f32.gmra.mxu0 %vm999_vm5, %v3493_v34 }
 0x453   : > { %4536 = vmatmul.msk.f32.gmra.mxu3 %vm999_vm5, %v6024_v6 }
 0x455   : > { %v2873_v27 = vpop.f32.mrf.mxu2 }
 0x456   : > { %v2874_v4 = vadd.f32 %v2873_v27, %v2760_v1  ;;  %v2763_v52 = vpop.f32.mrf.mxu1  ;;  %v3004_v21 = vpop.f32.mrf.mxu3  ;;  %v6212_v1 = vld [vmem:[#allocation3 + $0x111] sm:$0xff] }
 0x458   : > { %v6180_v40 = vadd.f32 %v3004_v21, %v2874_v4 }
 0x459   : > { %4503 = vmatmul.msk.f32.gmra.mxu1 %vm999_vm5, %v6039_v41 }
 0x45a   : > { %4520 = vmatmul.msk.f32.gmra.mxu2 %vm999_vm5, %v6037_v51 }
 0x45b   : > { %4537 = vmatmul.msk.f32.gmra.mxu3 %vm999_vm5, %v6041_v23 }
 0x45d   : > { %v2876_v54 = vpop.f32.mrf.mxu2 }
 0x45e   : > { %v2877_v31 = vadd.f32 %v2876_v54, %v2763_v52  ;;  %v2766_v55 = vpop.f32.mrf.mxu1  ;;  %v3007_v22 = vpop.f32.mrf.mxu3 }
 0x460   : > { %v6189_v33 = vadd.f32 %v3007_v22, %v2877_v31 }
 0x461   : > { %4504 = vmatmul.msk.f32.gmra.mxu1 %vm999_vm5, %v6053_v56 }
 0x462   : > { %4521 = vmatmul.msk.f32.gmra.mxu2 %vm999_vm5, %v6051_v48 }
 0x463   : > { %4538 = vmatmul.msk.f32.gmra.mxu3 %vm999_vm5, %v6055_v29 }
 0x465   : > { %v2879_v41 = vpop.f32.mrf.mxu2 }
 0x466   : > { %v2880_v57 = vadd.f32 %v2879_v41, %v2766_v55  ;;  %v2769_v35 = vpop.f32.mrf.mxu1  ;;  %v3010_v9 = vpop.f32.mrf.mxu3 }
 0x468   : > { %v6199_v42 = vadd.f32 %v3010_v9, %v2880_v57 }
 0x469   : > { %4505 = vmatmul.msk.f32.gmra.mxu1 %vm999_vm5, %v3490_v16 }
 0x46a   : > { %4522 = vmatmul.msk.f32.gmra.mxu2 %vm999_vm5, %v6197_v62 }
 0x46b   : > { %4539 = vmatmul.msk.f32.gmra.mxu3 %vm999_vm5, %v6201_v20 }
 0x46d   : > { %v2882_v56 = vpop.f32.mrf.mxu2 }
 0x46e   : > { %v2883_v8 = vadd.f32 %v2882_v56, %v2769_v35  ;;  %v2772_v46 = vpop.f32.mrf.mxu1  ;;  %v3013_v32 = vpop.f32.mrf.mxu3 }
 0x470   : > { %v6210_v18 = vadd.f32 %v3013_v32, %v2883_v8 }
 0x471   : > { %4506 = vmatmul.msk.f32.gmra.mxu1 %vm999_vm5, %v3491_v14 }
 0x472   : > { %4523 = vmatmul.msk.f32.gmra.mxu2 %vm999_vm5, %v6208_v28 }
 0x473   : > { %4540 = vmatmul.msk.f32.gmra.mxu3 %vm999_vm5, %v6212_v1 }
 0x475   : > { %v2885_v16 = vpop.f32.mrf.mxu2 }
 0x476   : > { %v2886_v50 = vadd.f32 %v2885_v16, %v2772_v46  ;;  %v3016_v0 = vpop.f32.mrf.mxu3  ;;  %v3119_v27 = vpop.f32.mrf.mxu1 }
 0x477   : > { %v3167_v14 = vadd.f32 %v3119_v27, %v6073_v30 }
 0x478   : > { %v6219_v4 = vadd.f32 %v3016_v0, %v2886_v50 }
 0x479   : > { %4559 = vmatmul.msk.f32.vlgmr.msra.gmra.mxu1 %vm999_vm5, %v5903_v37 }
 0x47a   : > { %4576 = vmatmul.msk.f32.vlgmr.msra.gmra.mxu2 %vm999_vm5, %v5907_v39 }
 0x47d   : > { %v3266_v52 = vpop.f32.mrf.mxu2 }
 0x47e   : > { %v6226_v21 = vadd.f32 %v3266_v52, %v3167_v14  ;;  %v3122_v34 = vpop.f32.mrf.mxu1 }
 0x47f   : > { %v3168_v54 = vadd.f32 %v3122_v34, %v6083_v61  ;;  %v3639_v34 = vld [vmem:[#allocation3 + $0x128] sm:$0xff] }
 0x481   : > { %4560 = vmatmul.msk.f32.gmra.mxu1 %vm999_vm5, %v5915_v59 }
 0x482   : > { %4577 = vmatmul.msk.f32.gmra.mxu2 %vm999_vm5, %v5919_v5 }
 0x485   : > { %v3269_v31 = vpop.f32.mrf.mxu2 }
 0x486   : > { %v6233_v55 = vadd.f32 %v3269_v31, %v3168_v54  ;;  %v3125_v37 = vpop.f32.mrf.mxu1 }
 0x487   : > { %v3169_v39 = vadd.f32 %v3125_v37, %v6093_v19 }
 0x489   : > { %4561 = vmatmul.msk.f32.gmra.mxu1 %vm999_vm5, %v5927_v43 }
 0x48a   : > { %4578 = vmatmul.msk.f32.gmra.mxu2 %vm999_vm5, %v5931_v13 }
 0x48d   : > { %v3272_v30 = vpop.f32.mrf.mxu2 }
 0x48e   : > { %v6240_v22 = vadd.f32 %v3272_v30, %v3169_v39  ;;  %v3128_v59 = vpop.f32.mrf.mxu1  ;;  %v3787_v30 = vld [vmem:[#allocation3 + $0x131] sm:$0xff] }
 0x48f   : > { %v3170_v5 = vadd.f32 %v3128_v59, %v6103_v2 }
 0x491   : > { %4562 = vmatmul.msk.f32.gmra.mxu1 %vm999_vm5, %v5939_v44 }
 0x492   : > { %4579 = vmatmul.msk.f32.gmra.mxu2 %vm999_vm5, %v5943_v24 }
 0x495   : > { %v3275_v61 = vpop.f32.mrf.mxu2 }
 0x496   : > { %v6247_v41 = vadd.f32 %v3275_v61, %v3170_v5  ;;  %v3131_v43 = vpop.f32.mrf.mxu1 }
 0x497   : > { %v3171_v13 = vadd.f32 %v3131_v43, %v6113_v17 }
 0x499   : > { %4563 = vmatmul.msk.f32.gmra.mxu1 %vm999_vm5, %v5951_v49 }
 0x49a   : > { %4580 = vmatmul.msk.f32.gmra.mxu2 %vm999_vm5, %v5955_v12 }
 0x49d   : > { %v3278_v19 = vpop.f32.mrf.mxu2 }
 0x49e   : > { %v6254_v57 = vadd.f32 %v3278_v19, %v3171_v13  ;;  %v3134_v44 = vpop.f32.mrf.mxu1 }
 0x49f   : > { %v3172_v24 = vadd.f32 %v3134_v44, %v6123_v3 }
 0x4a1   : > { %4564 = vmatmul.msk.f32.gmra.mxu1 %vm999_vm5, %v5963_v60 }
 0x4a2   : > { %4581 = vmatmul.msk.f32.gmra.mxu2 %vm999_vm5, %v5967_v45 }
 0x4a5   : > { %v3281_v2 = vpop.f32.mrf.mxu2 }
 0x4a6   : > { %v6261_v35 = vadd.f32 %v3281_v2, %v3172_v24  ;;  %v3137_v49 = vpop.f32.mrf.mxu1  ;;  %v6333_v2 = vld [vmem:[%s6443_s9] ss:$0 sm:$0xff] }
 0x4a7   : > { %v3173_v12 = vadd.f32 %v3137_v49, %v6133_v10 }
 0x4a9   : > { %4565 = vmatmul.msk.f32.gmra.mxu1 %vm999_vm5, %v5975_v58 }
 0x4aa   : > { %4582 = vmatmul.msk.f32.gmra.mxu2 %vm999_vm5, %v5979_v53 }
 0x4ad   : > { %v3284_v17 = vpop.f32.mrf.mxu2 }
 0x4ae   : > { %v6268_v9 = vadd.f32 %v3284_v17, %v3173_v12  ;;  %v3140_v60 = vpop.f32.mrf.mxu1 }
 0x4af   : > { %v3174_v45 = vadd.f32 %v3140_v60, %v6143_v15 }
 0x4b1   : > { %4566 = vmatmul.msk.f32.gmra.mxu1 %vm999_vm5, %v5987_v63 }
 0x4b2   : > { %4583 = vmatmul.msk.f32.gmra.mxu2 %vm999_vm5, %v5991_v36 }
 0x4b5   : > { %v3287_v3 = vpop.f32.mrf.mxu2 }
 0x4b6   : > { %v6275_v56 = vadd.f32 %v3287_v3, %v3174_v45  ;;  %v3143_v58 = vpop.f32.mrf.mxu1 }
 0x4b7   : > { %v3175_v53 = vadd.f32 %v3143_v58, %v6153_v11 }
 0x4b9   : > { %4567 = vmatmul.msk.f32.gmra.mxu1 %vm999_vm5, %v6002_v26 }
 0x4ba   : > { %4584 = vmatmul.msk.f32.gmra.mxu2 %vm999_vm5, %v6006_v7 }
 0x4bd   : > { %v3290_v10 = vpop.f32.mrf.mxu2 }
 0x4be   : > { %v6282_v8 = vadd.f32 %v3290_v10, %v3175_v53  ;;  %v3146_v63 = vpop.f32.mrf.mxu1 }
 0x4bf   : > { %v3176_v36 = vadd.f32 %v3146_v63, %v6162_v25 }
 0x4c1   : > { %4568 = vmatmul.msk.f32.gmra.mxu1 %vm999_vm5, %v6020_v38 }
 0x4c2   : > { %4585 = vmatmul.msk.f32.gmra.mxu2 %vm999_vm5, %v6024_v6  ;;  %v3413_v6 = vpop.f32.mrf.mxu3 }
 0x4c3   : > { %v3461_v61 = vadd.f32 %v3413_v6, %v6226_v21  ;;  %v6339_v21 = vld [vmem:[%s6443_s9 + $0x1] ss:$0 sm:$0xff] }
 0x4c5   : > { %v3293_v15 = vpop.f32.mrf.mxu2 }
 0x4c6   : > { %v6289_v11 = vadd.f32 %v3293_v15, %v3176_v36  ;;  %v3149_v46 = vpop.f32.mrf.mxu1 }
 0x4c7   : > { %v3177_v26 = vadd.f32 %v3149_v46, %v6171_v47 }
 0x4c9   : > { %4569 = vmatmul.msk.f32.gmra.mxu1 %vm999_vm5, %v6037_v51 }
 0x4ca   : > { %4586 = vmatmul.msk.f32.gmra.mxu2 %vm999_vm5, %v6041_v23  ;;  %v3561_v23 = vpop.f32.mrf.mxu0 }
 0x4cb   : > { %v3609_v44 = vadd.f32 %v3561_v23, %v3461_v61 }
 0x4cd   : > { %v3296_v7 = vpop.f32.mrf.mxu2 }
 0x4ce   : > { %v6296_v25 = vadd.f32 %v3296_v7, %v3177_v26  ;;  %v3152_v32 = vpop.f32.mrf.mxu1 }
 0x4cf   : > { %v3178_v38 = vadd.f32 %v3152_v32, %v6180_v40 }
 0x4d1   : > { %4570 = vmatmul.msk.f32.gmra.mxu1 %vm999_vm5, %v6051_v48  ;;  %v3416_v48 = vpop.f32.mrf.mxu3 }
 0x4d2   : > { %4587 = vmatmul.msk.f32.gmra.mxu2 %vm999_vm5, %v6055_v29  ;;  %v3462_v12 = vadd.f32 %v3416_v48, %v6233_v55 }
 0x4d5   : > { %v3299_v47 = vpop.f32.mrf.mxu2 }
 0x4d6   : > { %v6303_v16 = vadd.f32 %v3299_v47, %v3178_v38  ;;  %v3155_v51 = vpop.f32.mrf.mxu1 }
 0x4d7   : > { %v3179_v50 = vadd.f32 %v3155_v51, %v6189_v33  ;;  %v3564_v33 = vpop.f32.mrf.mxu0 }
 0x4d8   : > { %v3610_v58 = vadd.f32 %v3564_v33, %v3462_v12 }
 0x4d9   : > { %4571 = vmatmul.msk.f32.gmra.mxu1 %vm999_vm5, %v6197_v62  ;;  %v3419_v31 = vpop.f32.mrf.mxu3 }
 0x4da   : > { %4588 = vmatmul.msk.f32.gmra.mxu2 %vm999_vm5, %v6201_v20  ;;  %v3786_v20 = vld [vmem:[#allocation3 + $0x129] sm:$0xff]  ;;  %v3463_v15 = vadd.f32 %v3419_v31, %v6240_v22 }
 0x4dd   : > { %v3302_v40 = vpop.f32.mrf.mxu2 }
 0x4de   : > { %v6310_v0 = vadd.f32 %v3302_v40, %v3179_v50  ;;  %v3158_v27 = vpop.f32.mrf.mxu1 }
 0x4df   : > { %v3180_v29 = vadd.f32 %v3158_v27, %v6199_v42  ;;  %v3567_v42 = vpop.f32.mrf.mxu0 }
 0x4e0   : > { %v3611_v32 = vadd.f32 %v3567_v42, %v3463_v15 }
 0x4e1   : > { %4572 = vmatmul.msk.f32.gmra.mxu1 %vm999_vm5, %v6208_v28  ;;  %v3422_v5 = vpop.f32.mrf.mxu3 }
 0x4e2   : > { %4589 = vmatmul.msk.f32.gmra.mxu2 %vm999_vm5, %v6212_v1  ;;  %v3640_v1 = vld [vmem:[#allocation3 + $0x130] sm:$0xff]  ;;  %v3464_v23 = vadd.f32 %v3422_v5, %v6247_v41 }
 0x4e5   : > { %v3305_v14 = vpop.f32.mrf.mxu2 }
 0x4e6   : > { %v6317_v52 = vadd.f32 %v3305_v14, %v3180_v29  ;;  %v3161_v62 = vpop.f32.mrf.mxu1 }
 0x4e7   : > { %v3181_v54 = vadd.f32 %v3161_v62, %v6210_v18  ;;  %v3570_v13 = vpop.f32.mrf.mxu0 }
 0x4e8   : > { %v3612_v29 = vadd.f32 %v3570_v13, %v3464_v23 }
 0x4e9   : > { %4573 = vmatmul.msk.f32.gmra.mxu1 %vm999_vm5, %v3639_v34 }
 0x4ea   : > { %4590 = vmatmul.msk.f32.gmra.mxu2 %vm999_vm5, %v3786_v20 }
 0x4ed   : > { %v3308_v37 = vpop.f32.mrf.mxu2 }
 0x4ee   : > { %v6322_v28 = vadd.f32 %v3308_v37, %v3181_v54  ;;  %v3164_v39 = vpop.f32.mrf.mxu1 }
 0x4ef   : > { %v3182_v59 = vadd.f32 %v3164_v39, %v6219_v4  ;;  %v3425_v4 = vpop.f32.mrf.mxu3  ;;  %v3573_v3 = vpop.f32.mrf.mxu0 }
 0x4f0   : > { %v3465_v54 = vadd.f32 %v3425_v4, %v6254_v57 }
 0x4f1   : > { %4574 = vmatmul.msk.f32.gmra.mxu1 %vm999_vm5, %v3640_v1 }
 0x4f2   : > { %4591 = vmatmul.msk.f32.gmra.mxu2 %vm999_vm5, %v3787_v30  ;;  %v3613_v37 = vadd.f32 %v3573_v3, %v3465_v54 }
 0x4f5   : > { %v3311_v18 = vpop.f32.mrf.mxu2 }
 0x4f6   : > { %v6328_v43 = vadd.f32 %v3311_v18, %v3182_v59  ;;  %v3708_v19 = vpop.f32.mrf.mxu1 }
 0x4f7   : > { %v3756_v24 = vadd.f32 %v3708_v19, %v3609_v44  ;;  %v3428_v46 = vpop.f32.mrf.mxu3  ;;  %v3576_v6 = vpop.f32.mrf.mxu0 }
 0x4f8   : > { %v3466_v18 = vadd.f32 %v3428_v46, %v6261_v35 }
 0x4fa   : > { %v3614_v44 = vadd.f32 %v3576_v6, %v3466_v18 }
 0x4fd   : > { %v3855_v49 = vpop.f32.mrf.mxu2 }
 0x4fe   : > { %v3903_v17 = vadd.f32 %v3855_v49, %v3756_v24  ;;  %v3711_v60 = vpop.f32.mrf.mxu1 }
 0x4ff   : > { %v3757_v63 = vadd.f32 %v3711_v60, %v3610_v58  ;;  %v3431_v27 = vpop.f32.mrf.mxu3  ;;  %v3579_v34 = vpop.f32.mrf.mxu0 }
 0x500   : > { %v3921_v45 = vmul.f32 %v6333_v2, %v3903_v17  ;;  %v3467_v60 = vadd.f32 %v3431_v27, %v6268_v9 }
 0x502   : > { %v3939_v53 = vadd.f32 %v6339_v21, %v3921_v45 }
 0x504   : > { %v3955_v10 = vmax.f32 %v3939_v53, 0.0  ;;  %v3615_v53 = vadd.f32 %v3579_v34, %v3467_v60 }
 0x505   : > { %v3858_v36 = vpop.f32.mrf.mxu2 }
 0x506   : > { %3971 = vst.msk [vmem:[%s4812_s11] sm:$0xff] %vm999_vm5, %v3955_v10  ;;  %v3904_v55 = vadd.f32 %v3858_v36, %v3757_v63  ;;  %v3714_v26 = vpop.f32.mrf.mxu1 }
 0x507   : > { %v3758_v51 = vadd.f32 %v3714_v26, %v3611_v32  ;;  %v3434_v1 = vpop.f32.mrf.mxu3  ;;  %v3582_v57 = vpop.f32.mrf.mxu0 }
 0x508   : > { %v3922_v7 = vmul.f32 %v6333_v2, %v3904_v55  ;;  %v3468_v55 = vadd.f32 %v3434_v1, %v6275_v56 }
 0x50a   : > { %v3940_v38 = vadd.f32 %v6339_v21, %v3922_v7  ;;  %v3616_v32 = vadd.f32 %v3582_v57, %v3468_v55 }
 0x50c   : > { %v3956_v47 = vmax.f32 %v3940_v38, 0.0 }
 0x50d   : > { %v3861_v50 = vpop.f32.mrf.mxu2 }
 0x50e   : > { %3972 = vst.msk [vmem:[%s4812_s11 + $0x8] sm:$0xff] %vm999_vm5, %v3956_v47  ;;  %v3905_v22 = vadd.f32 %v3861_v50, %v3758_v51  ;;  %v3717_v40 = vpop.f32.mrf.mxu1 }
 0x50f   : > { %v3759_v62 = vadd.f32 %v3717_v40, %v3612_v29  ;;  %v3437_v12 = vpop.f32.mrf.mxu3  ;;  %v3585_v58 = vpop.f32.mrf.mxu0 }
 0x510   : > { %v3923_v48 = vmul.f32 %v6333_v2, %v3905_v22  ;;  %v3469_v23 = vadd.f32 %v3437_v12, %v6282_v8 }
 0x512   : > { %v3941_v33 = vadd.f32 %v6339_v21, %v3923_v48  ;;  %v3617_v27 = vadd.f32 %v3585_v58, %v3469_v23 }
 0x514   : > { %v3957_v14 = vmax.f32 %v3941_v33, 0.0 }
 0x515   : > { %v3864_v20 = vpop.f32.mrf.mxu2 }
 0x516   : > { %3973 = vst.msk [vmem:[%s4812_s11 + $0x10] sm:$0xff] %vm999_vm5, %v3957_v14  ;;  %v3906_v41 = vadd.f32 %v3864_v20, %v3759_v62  ;;  %v3720_v31 = vpop.f32.mrf.mxu1 }
 0x517   : > { %v3760_v59 = vadd.f32 %v3720_v31, %v3613_v37  ;;  %v3440_v9 = vpop.f32.mrf.mxu3  ;;  %v3588_v6 = vpop.f32.mrf.mxu0 }
 0x518   : > { %v3924_v42 = vmul.f32 %v6333_v2, %v3906_v41  ;;  %v3470_v20 = vadd.f32 %v3440_v9, %v6289_v11 }
 0x51a   : > { %v3942_v39 = vadd.f32 %v6339_v21, %v3924_v42  ;;  %v3618_v31 = vadd.f32 %v3588_v6, %v3470_v20 }
 0x51c   : > { %v3958_v30 = vmax.f32 %v3942_v39, 0.0 }
 0x51d   : > { %v3867_v5 = vpop.f32.mrf.mxu2 }
 0x51e   : > { %3974 = vst.msk [vmem:[%s4812_s11 + $0x18] sm:$0xff] %vm999_vm5, %v3958_v30  ;;  %v3907_v61 = vadd.f32 %v3867_v5, %v3760_v59  ;;  %v3723_v13 = vpop.f32.mrf.mxu1 }
 0x51f   : > { %v3761_v49 = vadd.f32 %v3723_v13, %v3614_v44  ;;  %v3443_v48 = vpop.f32.mrf.mxu3  ;;  %v3591_v62 = vpop.f32.mrf.mxu0 }
 0x520   : > { %v3925_v19 = vmul.f32 %v6333_v2, %v3907_v61  ;;  %v3471_v59 = vadd.f32 %v3443_v48, %v6296_v25 }
 0x522   : > { %v3943_v24 = vadd.f32 %v6339_v21, %v3925_v19  ;;  %v3619_v57 = vadd.f32 %v3591_v62, %v3471_v59 }
 0x524   : > { %v3959_v4 = vmax.f32 %v3943_v24, 0.0 }
 0x525   : > { %v3870_v17 = vpop.f32.mrf.mxu2 }
 0x526   : > { %3975 = vst.msk [vmem:[%s4812_s11 + $0x20] sm:$0xff] %vm999_vm5, %v3959_v4  ;;  %v3908_v35 = vadd.f32 %v3870_v17, %v3761_v49  ;;  %v3726_v45 = vpop.f32.mrf.mxu1 }
 0x527   : > { %v3762_v36 = vadd.f32 %v3726_v45, %v3615_v53  ;;  %v3446_v37 = vpop.f32.mrf.mxu3  ;;  %v3594_v11 = vpop.f32.mrf.mxu0 }
 0x528   : > { %v3926_v3 = vmul.f32 %v6333_v2, %v3908_v35  ;;  %v3472_v49 = vadd.f32 %v3446_v37, %v6303_v16 }
 0x52a   : > { %v3944_v10 = vadd.f32 %v6339_v21, %v3926_v3  ;;  %v3620_v35 = vadd.f32 %v3594_v11, %v3472_v49 }
 0x52c   : > { %v3960_v63 = vmax.f32 %v3944_v10, 0.0 }
 0x52d   : > { %v3873_v15 = vpop.f32.mrf.mxu2 }
 0x52e   : > { %3976 = vst.msk [vmem:[%s4812_s11 + $0x28] sm:$0xff] %vm999_vm5, %v3960_v63  ;;  %v3909_v46 = vadd.f32 %v3873_v15, %v3762_v36  ;;  %v3729_v26 = vpop.f32.mrf.mxu1 }
 0x52f   : > { %v3763_v51 = vadd.f32 %v3729_v26, %v3616_v32  ;;  %v3449_v24 = vpop.f32.mrf.mxu3  ;;  %v3597_v60 = vpop.f32.mrf.mxu0 }
 0x530   : > { %v3927_v7 = vmul.f32 %v6333_v2, %v3909_v46  ;;  %v3473_v10 = vadd.f32 %v3449_v24, %v6310_v0 }
 0x532   : > { %v3945_v38 = vadd.f32 %v6339_v21, %v3927_v7  ;;  %v3621_v55 = vadd.f32 %v3597_v60, %v3473_v10 }
 0x534   : > { %v3961_v47 = vmax.f32 %v3945_v38, 0.0 }
 0x535   : > { %v3876_v50 = vpop.f32.mrf.mxu2 }
 0x536   : > { %3977 = vst.msk [vmem:[%s4812_s11 + $0x30] sm:$0xff] %vm999_vm5, %v3961_v47  ;;  %v3910_v56 = vadd.f32 %v3876_v50, %v3763_v51  ;;  %v3732_v22 = vpop.f32.mrf.mxu1 }
 0x537   : > { %v3764_v14 = vadd.f32 %v3732_v22, %v3617_v27  ;;  %v3452_v16 = vpop.f32.mrf.mxu3  ;;  %v3600_v9 = vpop.f32.mrf.mxu0 }
 0x538   : > { %v3928_v40 = vmul.f32 %v6333_v2, %v3910_v56  ;;  %v3474_v38 = vadd.f32 %v3452_v16, %v6317_v52 }
 0x53a   : > { %v3946_v29 = vadd.f32 %v6339_v21, %v3928_v40  ;;  %v3622_v50 = vadd.f32 %v3600_v9, %v3474_v38 }
 0x53c   : > { %v3962_v33 = vmax.f32 %v3946_v29, 0.0 }
 0x53d   : > { %v3879_v34 = vpop.f32.mrf.mxu2 }
 0x53e   : > { %3978 = vst.msk [vmem:[%s4812_s11 + $0x38] sm:$0xff] %vm999_vm5, %v3962_v33  ;;  %v3911_v8 = vadd.f32 %v3879_v34, %v3764_v14  ;;  %v3735_v54 = vpop.f32.mrf.mxu1 }
 0x53f   : > { %v3765_v1 = vadd.f32 %v3735_v54, %v3618_v31  ;;  %v3455_v51 = vpop.f32.mrf.mxu3  ;;  %v3603_v40 = vpop.f32.mrf.mxu0 }
 0x540   : > { %v3929_v41 = vmul.f32 %v6333_v2, %v3911_v8  ;;  %v3475_v27 = vadd.f32 %v3455_v51, %v6322_v28 }
 0x542   : > { %v3947_v42 = vadd.f32 %v6339_v21, %v3929_v41  ;;  %v3623_v14 = vadd.f32 %v3603_v40, %v3475_v27 }
 0x544   : > { %v3963_v39 = vmax.f32 %v3947_v42, 0.0 }
 0x545   : > { %v3882_v30 = vpop.f32.mrf.mxu2 }
 0x546   : > { %3979 = vst.msk [vmem:[%s4812_s11 + $0x40] sm:$0xff] %vm999_vm5, %v3963_v39  ;;  %v3912_v5 = vadd.f32 %v3882_v30, %v3765_v1  ;;  %v3738_v18 = vpop.f32.mrf.mxu1 }
 0x547   : > { %v3766_v44 = vadd.f32 %v3738_v18, %v3619_v57  ;;  %v3458_v34 = vpop.f32.mrf.mxu3  ;;  %v3606_v31 = vpop.f32.mrf.mxu0 }
 0x548   : > { %v3930_v61 = vmul.f32 %v6333_v2, %v3912_v5  ;;  %v3476_v41 = vadd.f32 %v3458_v34, %v6328_v43 }
 0x54a   : > { %v3948_v13 = vadd.f32 %v6339_v21, %v3930_v61  ;;  %v3624_v39 = vadd.f32 %v3606_v31, %v3476_v41 }
 0x54c   : > { %v3964_v19 = vmax.f32 %v3948_v13, 0.0 }
 0x54d   : > { %v3885_v4 = vpop.f32.mrf.mxu2 }
 0x54e   : > { %3980 = vst.msk [vmem:[%s4812_s11 + $0x48] sm:$0xff] %vm999_vm5, %v3964_v19  ;;  %v3913_v25 = vadd.f32 %v3885_v4, %v3766_v44  ;;  %v3741_v12 = vpop.f32.mrf.mxu1 }
 0x54f   : > { %v3767_v58 = vadd.f32 %v3741_v12, %v3620_v35 }
 0x550   : > { %v3931_v17 = vmul.f32 %v6333_v2, %v3913_v25 }
 0x552   : > { %v3949_v45 = vadd.f32 %v6339_v21, %v3931_v17 }
 0x554   : > { %v3965_v3 = vmax.f32 %v3949_v45, 0.0 }
 0x555   : > { %v3888_v53 = vpop.f32.mrf.mxu2 }
 0x556   : > { %3981 = vst.msk [vmem:[%s4812_s11 + $0x50] sm:$0xff] %vm999_vm5, %v3965_v3  ;;  %v3914_v63 = vadd.f32 %v3888_v53, %v3767_v58  ;;  %v3744_v36 = vpop.f32.mrf.mxu1 }
 0x557   : > { %v3768_v7 = vadd.f32 %v3744_v36, %v3621_v55 }
 0x558   : > { %v3932_v15 = vmul.f32 %v6333_v2, %v3914_v63 }
 0x55a   : > { %v3950_v46 = vadd.f32 %v6339_v21, %v3932_v15 }
 0x55c   : > { %v3966_v26 = vmax.f32 %v3950_v46, 0.0 }
 0x55d   : > { %v3891_v32 = vpop.f32.mrf.mxu2 }
 0x55e   : > { %3982 = vst.msk [vmem:[%s4812_s11 + $0x58] sm:$0xff] %vm999_vm5, %v3966_v26  ;;  %v3915_v0 = vadd.f32 %v3891_v32, %v3768_v7  ;;  %v3747_v6 = vpop.f32.mrf.mxu1 }
 0x55f   : > { %v3769_v22 = vadd.f32 %v3747_v6, %v3622_v50 }
 0x560   : > { %v3933_v47 = vmul.f32 %v6333_v2, %v3915_v0 }
 0x562   : > { %v3951_v23 = vadd.f32 %v6339_v21, %v3933_v47 }
 0x564   : > { %v3967_v56 = vmax.f32 %v3951_v23, 0.0 }
 0x565   : > { %v3894_v48 = vpop.f32.mrf.mxu2 }
 0x566   : > { %3983 = vst.msk [vmem:[%s4812_s11 + $0x60] sm:$0xff] %vm999_vm5, %v3967_v56  ;;  %v3916_v52 = vadd.f32 %v3894_v48, %v3769_v22  ;;  %v3750_v29 = vpop.f32.mrf.mxu1 }
 0x567   : > { %v3770_v8 = vadd.f32 %v3750_v29, %v3623_v14 }
 0x568   : > { %v3934_v33 = vmul.f32 %v6333_v2, %v3916_v52 }
 0x56a   : > { %v3952_v62 = vadd.f32 %v6339_v21, %v3934_v33 }
 0x56c   : > { %v3968_v20 = vmax.f32 %v3952_v62, 0.0 }
 0x56d   : > { %v3897_v54 = vpop.f32.mrf.mxu2 }
 0x56e   : > { %3984 = vst.msk [vmem:[%s4812_s11 + $0x68] sm:$0xff] %vm999_vm5, %v3968_v20  ;;  %v3917_v28 = vadd.f32 %v3897_v54, %v3770_v8  ;;  %v3753_v37 = vpop.f32.mrf.mxu1 }
 0x56f   : > { %v3771_v59 = vadd.f32 %v3753_v37, %v3624_v39 }
 0x570   : > { %v3935_v42 = vmul.f32 %v6333_v2, %v3917_v28 }
 0x572   : > { %v3953_v1 = vadd.f32 %v6339_v21, %v3935_v42 }
 0x574   : > { %v3969_v30 = vmax.f32 %v3953_v1, 0.0 }
 0x575   : > { %v3900_v5 = vpop.f32.mrf.mxu2 }
 0x576   : > { %3985 = vst.msk [vmem:[%s4812_s11 + $0x70] sm:$0xff] %vm999_vm5, %v3969_v30  ;;  %v3918_v11 = vadd.f32 %v3900_v5, %v3771_v59 }
 0x578   : > { %v3936_v18 = vmul.f32 %v6333_v2, %v3918_v11 }
 0x57a   : > { %v3954_v43 = vadd.f32 %v6339_v21, %v3936_v18 }
 0x57c   : > { %v3970_v61 = vmax.f32 %v3954_v43, 0.0 }
 0x57e   : > { %3986 = vst.msk [vmem:[%s4812_s11 + $0x78] sm:$0xff] %vm999_vm5, %v3970_v61 }
 0x57f PF: > { %s20_s17 = sadd.s32 1, %s4699_s17   ;;  %s6521_s13 = smov %s4691_s15 }
 0x580   : > { %p17_p1 = scmp.ge.s32.totalorder %s20_s17, 6   ;;  %s6522_s14 = smov %s4695_s16 }
 0x581   : > { %s6523_s15 = smov %s6526_s18  ;;  %s6524_s16 = smov %s6530_s19 }
 0x582   :  { %19 = sbr.rel (!%p17_p1) target bundleno = 4 (0x4), region = 143 }

</bundles_post_ra>
